<compile_context>
chip_gen: v7x
topology: tpu7x:2x2x1
jax: 0.10.0
libtpu: 0.0.40
codegen_flags: <defaults>
</compile_context>

<pallas_src>
import math
import jax
import jax.numpy as jnp
from jax.experimental import pallas as pl
from jax.experimental.pallas import tpu as pltpu

MM = jnp.bfloat16  # MXU operand dtype (f32 accumulation everywhere)


# --------------------------------------------------------------------------
# in-kernel helpers
# --------------------------------------------------------------------------
def _layernorm(x, gamma, beta, eps=1e-5):
    # one-pass variance: E[x^2] - mu^2 (one XLU reduction fewer per row)
    mu = jnp.mean(x, axis=-1, keepdims=True)
    var = jnp.mean(x * x, axis=-1, keepdims=True) - mu * mu
    return (x - mu) * jax.lax.rsqrt(var + eps) * gamma + beta


# --------------------------------------------------------------------------
# fused cross-attention encoder-layer kernel
# grid = (batch, query-tile); K/V projections cached per batch in VMEM scratch
# --------------------------------------------------------------------------
def make_xa_layer_kernel(d_model, nhead, fuse_final_norm):
    dh = d_model // nhead
    mm = MM

    def kernel(q_ref, k_ref, v_ref,
               wq_ref, bq_ref, wk_ref, bk_ref, wv_ref, bv_ref,
               wo_ref, bo_ref, w1_ref, b1_ref, w2_ref, b2_ref,
               g1_ref, be1_ref, g2_ref, be2_ref, *rest):
        if fuse_final_norm:
            gf_ref, bf_ref, o_ref, kh_sc, vh_sc = rest
        else:
            o_ref, kh_sc, vh_sc = rest

        # ---- per-batch K/V projection: compute once (first query tile of each
        #      batch element), keep head-laid-out bf16 copies in VMEM scratch.
        @pl.when(pl.program_id(1) == 0)
        def _():
            xk = k_ref[0].astype(mm)                     # (Sk, D) bf16
            xv = v_ref[0].astype(mm)
            sk = xk.shape[0]
            k_p = jnp.dot(xk, wk_ref[...],
                          preferred_element_type=jnp.float32) + bk_ref[...]
            v_p = jnp.dot(xv, wv_ref[...],
                          preferred_element_type=jnp.float32) + bv_ref[...]
            kh_sc[...] = k_p.reshape(sk, nhead, dh).transpose(1, 0, 2).astype(mm)
            vh_sc[...] = v_p.reshape(sk, nhead, dh).transpose(1, 0, 2).astype(mm)

        xq = q_ref[0]                                    # (TQ, D) f32
        tq = xq.shape[0]

        # --- q in-projection (1/sqrt(dh) already folded into wq/bq on the host)
        q_p = jnp.dot(xq.astype(mm), wq_ref[...],
                      preferred_element_type=jnp.float32) + bq_ref[...]
        qh = q_p.reshape(tq, nhead, dh).transpose(1, 0, 2).astype(mm)  # (H,TQ,dh)
        kh = kh_sc[...]                                  # (H, Sk, dh) bf16
        vh = vh_sc[...]

        # --- batched-heads attention (exact softmax per query tile)
        s = jnp.einsum("hqd,hkd->hqk", qh, kh,
                       preferred_element_type=jnp.float32)             # (H,TQ,Sk)
        s = s - jnp.max(s, axis=-1, keepdims=True)
        e = jnp.exp(s)
        p_attn = e * pl.reciprocal(jnp.sum(e, axis=-1, keepdims=True), approx=True)
        ctx = jnp.einsum("hqk,hkd->hqd", p_attn.astype(mm), vh,
                         preferred_element_type=jnp.float32)           # (H,TQ,dh)
        ctx = ctx.transpose(1, 0, 2).reshape(tq, d_model)              # (TQ, D)

        # --- out-projection + residual + LayerNorm1
        attn_out = jnp.dot(ctx.astype(mm), wo_ref[...],
                           preferred_element_type=jnp.float32) + bo_ref[...]
        y = _layernorm(xq.astype(jnp.float32) + attn_out, g1_ref[...], be1_ref[...])

        # --- feed-forward + residual + LayerNorm2
        h1 = jnp.dot(y.astype(mm), w1_ref[...],
                     preferred_element_type=jnp.float32) + b1_ref[...]
        h1 = jnp.maximum(h1, 0.0)                                      # ReLU
        h2 = jnp.dot(h1.astype(mm), w2_ref[...],
                     preferred_element_type=jnp.float32) + b2_ref[...]
        z = _layernorm(y + h2, g2_ref[...], be2_ref[...])

        # --- optional fused final LayerNorm (the encoder's `norm`)
        if fuse_final_norm:
            z = _layernorm(z, gf_ref[...], bf_ref[...])

        o_ref[0] = z.astype(o_ref.dtype)

    return kernel


def _pick_q_tile(s, target=256):
    """Largest multiple of 8 that divides s and is <= target, else s (full)."""
    if s <= target:
        return s
    for t in range(target, 7, -8):
        if s % t == 0 and t % 8 == 0:
            return t
    return s


def _vmem_budget_bytes(TQ, Sk, D, F_, nhead, weight_buffers):
    """Rough VMEM residency estimate (bytes) for one grid step."""
    weights = (4 * D * D + 2 * D * F_) * 2 * weight_buffers       # bf16 weights
    params = (10 * D + F_) * 4 * weight_buffers                   # biases + LN (f32)
    q_io = 2 * (2 * TQ * D * 4)                                   # q in + out tiles, f32, 2-buf
    kv_in = 2 * (2 * Sk * D * 2)                                  # k + v blocks, bf16, 2-buf
    kv_cache = 2 * Sk * D * 2                                     # head-laid bf16 scratch
    scores = 2 * nhead * TQ * Sk * 4                              # scores + exp, f32
    ffn = TQ * F_ * 4
    interm = 6 * TQ * D * 4
    return weights + params + q_io + kv_in + kv_cache + scores + ffn + interm


def xa_layer_forward(x, k, v, p, nhead, final_norm=None, q_tile_target=256):
    """x: (B, Sq, D) f32 query/activations; k/v: (B, Sk, D) bf16 fixed memory."""
    B, Sq, D = x.shape
    Sk = k.shape[1]
    F_ = p["w1"].shape[1]
    TQ = _pick_q_tile(Sq, q_tile_target)
    nq = Sq // TQ
    dh = D // nhead

    fuse = final_norm is not None
    kernel = make_xa_layer_kernel(D, nhead, fuse)

    args = [x, k, v,
            p["wq"], p["bq"], p["wk"], p["bk"], p["wv"], p["bv"],
            p["wo"], p["bo"], p["w1"], p["b1"], p["w2"], p["b2"],
            p["g1"], p["be1"], p["g2"], p["be2"]]
    if fuse:
        args += [final_norm["g"], final_norm["b"]]

    cost = pl.CostEstimate(
        flops=2 * B * (2 * Sq * D * D + 2 * Sk * D * D
                       + 2 * Sq * Sk * D + 2 * Sq * D * F_),
        transcendentals=B * nhead * Sq * Sk,
        bytes_accessed=(2 * B * Sq * D * 4 + 2 * B * Sk * D * 2
                        + (4 * D * D + 2 * D * F_) * 2 + (10 * D + F_) * 4))

    def build(single_buffer_weights):
        def const_spec(shape):
            z = (0,) * len(shape)
            idx = lambda b, t, _z=z: _z
            if single_buffer_weights:
                # constant blocks never change index -> single buffering halves
                # their VMEM residency at zero perf cost
                return pl.BlockSpec(shape, idx, pipeline_mode=pl.Buffered(1))
            return pl.BlockSpec(shape, idx)

        in_specs = [
            pl.BlockSpec((1, TQ, D), lambda b, t: (b, t, 0)),    # q tile (f32)
            pl.BlockSpec((1, Sk, D), lambda b, t: (b, 0, 0)),    # k (bf16, full seq)
            pl.BlockSpec((1, Sk, D), lambda b, t: (b, 0, 0)),    # v (bf16)
            const_spec((D, D)), const_spec((1, D)),              # Wq (pre-T, scaled), bq
            const_spec((D, D)), const_spec((1, D)),              # Wk, bk
            const_spec((D, D)), const_spec((1, D)),              # Wv, bv
            const_spec((D, D)), const_spec((1, D)),              # Wo, bo
            const_spec((D, F_)), const_spec((1, F_)),            # W1, b1
            const_spec((F_, D)), const_spec((1, D)),             # W2, b2
            const_spec((1, D)), const_spec((1, D)),              # norm1 gamma, beta
            const_spec((1, D)), const_spec((1, D)),              # norm2 gamma, beta
        ]
        if fuse:
            in_specs += [const_spec((1, D)), const_spec((1, D))]

        budget = _vmem_budget_bytes(TQ, Sk, D, F_, nhead,
                                    1 if single_buffer_weights else 2)
        vmem_limit = int(min(max(2 * budget, 32 * 2 ** 20), 64 * 2 ** 20))

        return pl.pallas_call(
            kernel,
            out_shape=jax.ShapeDtypeStruct((B, Sq, D), x.dtype),
            grid=(B, nq),
            in_specs=in_specs,
            out_specs=pl.BlockSpec((1, TQ, D), lambda b, t: (b, t, 0)),
            scratch_shapes=[pltpu.VMEM((nhead, Sk, dh), MM),     # cached K heads
                            pltpu.VMEM((nhead, Sk, dh), MM)],    # cached V heads
            compiler_params=pltpu.CompilerParams(
                dimension_semantics=("parallel", "arbitrary"),
                vmem_limit_bytes=vmem_limit),
            cost_estimate=cost,
        )

    try:
        return build(True)(*args)
    except Exception:
        # pipeline_mode=pl.Buffered(1) not accepted on this jax build; fall back
        # to default double-buffered constant blocks (identical numerics).
        return build(False)(*args)


# --------------------------------------------------------------------------
# XATransformerEncoder.forward  (q/k/v: (S, B, D) seq-first like PyTorch)
# --------------------------------------------------------------------------
def xa_transformer_encoder(q, k, v, layer_params, nhead, final_norm=None,
                           q_tile_target=256):
    x = jnp.transpose(q, (1, 0, 2))                     # (Sq,B,D) -> (B,Sq,D) f32
    kb = jnp.transpose(k, (1, 0, 2)).astype(MM)         # bf16: halves K/V DMA bytes
    vb = jnp.transpose(v, (1, 0, 2)).astype(MM)
    n = len(layer_params)
    for i, p in enumerate(layer_params):
        fuse = (final_norm is not None) and (i == n - 1)
        x = xa_layer_forward(x, kb, vb, p, nhead,
                             final_norm if fuse else None,
                             q_tile_target=q_tile_target)
    return jnp.transpose(x, (1, 0, 2))                  # back to (Sq,B,D)


# --------------------------------------------------------------------------
# host-side parameter preparation (pre-transpose + bf16, fold 1/sqrt(dh) into Wq)
# torch layout: Linear weight (out, in); MHA in_proj_weight (3D, D), bias (3D,)
# --------------------------------------------------------------------------
def prepare_layer_params(tp, nhead):
    D = tp["out_w"].shape[0]
    scale = 1.0 / math.sqrt(D // nhead)
    bf = lambda w: jnp.asarray(w, jnp.bfloat16)
    row = lambda b: jnp.asarray(b, jnp.float32).reshape(1, -1)
    wq, wk, wv = tp["in_proj_w"][:D], tp["in_proj_w"][D:2 * D], tp["in_proj_w"][2 * D:]
    bq, bk, bv = tp["in_proj_b"][:D], tp["in_proj_b"][D:2 * D], tp["in_proj_b"][2 * D:]
    return {
        "wq": bf(wq.T * scale), "bq": row(bq * scale),
        "wk": bf(wk.T), "bk": row(bk),
        "wv": bf(wv.T), "bv": row(bv),
        "wo": bf(tp["out_w"].T), "bo": row(tp["out_b"]),
        "w1": bf(tp["w1"].T), "b1": row(tp["b1"]),
        "w2": bf(tp["w2"].T), "b2": row(tp["b2"]),
        "g1": row(tp["g1"]), "be1": row(tp["be1"]),
        "g2": row(tp["g2"]), "be2": row(tp["be2"]),
    }


# --------------------------------------------------------------------------
# pure-JAX reference (mirrors bf16 matmul operands, f32 accumulation)
# --------------------------------------------------------------------------
def _ln_ref(x, g, b, eps=1e-5):
    mu = x.mean(-1, keepdims=True)
    var = ((x - mu) ** 2).mean(-1, keepdims=True)
    return (x - mu) / jnp.sqrt(var + eps) * g + b


def _ref_layer(x, k, v, tp, nhead, mm=jnp.bfloat16):
    B, Sq, D = x.shape
    Sk = k.shape[1]
    dh = D // nhead
    wq, wk, wv = jnp.split(tp["in_proj_w"], 3, axis=0)
    bq, bk, bv = jnp.split(tp["in_proj_b"], 3)
    dot = lambda a, w: jnp.dot(a.astype(mm), w.T.astype(mm),
                               preferred_element_type=jnp.float32)
    qp = dot(x, wq) + bq
    kp = dot(k, wk) + bk
    vp = dot(v, wv) + bv

    def heads(t, S):
        return t.reshape(B, S, nhead, dh).transpose(0, 2, 1, 3)

    qh = heads(qp, Sq) / math.sqrt(dh)
    kh, vh = heads(kp, Sk), heads(vp, Sk)
    s = jnp.einsum("bhqd,bhkd->bhqk", qh.astype(mm), kh.astype(mm),
                   preferred_element_type=jnp.float32)
    p_attn = jax.nn.softmax(s, axis=-1)
    o = jnp.einsum("bhqk,bhkd->bhqd", p_attn.astype(mm), vh.astype(mm),
                   preferred_element_type=jnp.float32)
    o = o.transpose(0, 2, 1, 3).reshape(B, Sq, D)
    o = dot(o, tp["out_w"]) + tp["out_b"]
    y = _ln_ref(x + o, tp["g1"], tp["be1"])
    h = jnp.maximum(dot(y, tp["w1"]) + tp["b1"], 0.0)
    h = dot(h, tp["w2"]) + tp["b2"]
    return _ln_ref(y + h, tp["g2"], tp["be2"])


def ref_encoder(q, k, v, torch_layers, nhead, final_norm=None):
    x = jnp.transpose(q, (1, 0, 2))
    kb = jnp.transpose(k, (1, 0, 2))
    vb = jnp.transpose(v, (1, 0, 2))
    for tp in torch_layers:
        x = _ref_layer(x, kb, vb, tp, nhead)
    if final_norm is not None:
        x = _ln_ref(x, final_norm["g"], final_norm["b"])
    return jnp.transpose(x, (1, 0, 2))


# --------------------------------------------------------------------------
# deterministic synthetic parameters (torch layout)
# --------------------------------------------------------------------------
def init_torch_layer_params(key, d_model, dim_ff):
    ks = jax.random.split(key, 12)
    n = lambda k, shp, s=0.05: jax.random.normal(k, shp, jnp.float32) * s
    return {
        "in_proj_w": n(ks[0], (3 * d_model, d_model)),
        "in_proj_b": n(ks[1], (3 * d_model,), 0.02),
        "out_w": n(ks[2], (d_model, d_model)),
        "out_b": n(ks[3], (d_model,), 0.02),
        "w1": n(ks[4], (dim_ff, d_model)),
        "b1": n(ks[5], (dim_ff,), 0.02),
        "w2": n(ks[6], (d_model, dim_ff)),
        "b2": n(ks[7], (d_model,), 0.02),
        "g1": 1.0 + n(ks[8], (d_model,), 0.1),
        "be1": n(ks[9], (d_model,), 0.05),
        "g2": 1.0 + n(ks[10], (d_model,), 0.1),
        "be2": n(ks[11], (d_model,), 0.05),
    }


if __name__ == "__main__":
    Sq, Sk, B, D, H, FF, L = 8, 16, 2, 32, 4, 64, 2

    key = jax.random.PRNGKey(0)
    kq, kk, kv, kn, *kl = jax.random.split(key, 4 + L)

    q = jax.random.normal(kq, (Sq, B, D), jnp.float32)   # (seq_q, batch, d_model)
    k = jax.random.normal(kk, (Sk, B, D), jnp.float32)   # (seq_k, batch, d_model)
    v = jax.random.normal(kv, (Sk, B, D), jnp.float32)

    torch_layers = [init_torch_layer_params(kk_, D, FF) for kk_ in kl]
    final_norm_t = {"g": 1.0 + 0.1 * jax.random.normal(kn, (D,), jnp.float32),
                    "b": jnp.zeros((D,), jnp.float32)}

    layer_params = [prepare_layer_params(tp, H) for tp in torch_layers]
    final_norm = {"g": final_norm_t["g"].reshape(1, -1),
                  "b": final_norm_t["b"].reshape(1, -1)}

    out = xa_transformer_encoder(q, k, v, layer_params, H, final_norm)
    out = jax.block_until_ready(out)

    ref = ref_encoder(q, k, v, torch_layers, H, final_norm_t)
    assert out.shape == (Sq, B, D)
    max_err = float(jnp.max(jnp.abs(out - ref)))
    assert jnp.allclose(out, ref, rtol=2e-2, atol=2e-2), \
        f"mismatch vs reference, max abs err {max_err}"

    print("KERNEL_OK")
</pallas_src>

<mosaic_0001>
module attributes {stable_mosaic.version = 11 : i64} {
  func.func @kernel(%arg0: i32, %arg1: i32, %arg2: memref<1x8x32xf32, #tpu.memory_space<vmem>>, %arg3: memref<1x16x32xbf16, #tpu.memory_space<vmem>>, %arg4: memref<1x16x32xbf16, #tpu.memory_space<vmem>>, %arg5: memref<32x32xbf16, #tpu.memory_space<vmem>>, %arg6: memref<1x32xf32, #tpu.memory_space<vmem>>, %arg7: memref<32x32xbf16, #tpu.memory_space<vmem>>, %arg8: memref<1x32xf32, #tpu.memory_space<vmem>>, %arg9: memref<32x32xbf16, #tpu.memory_space<vmem>>, %arg10: memref<1x32xf32, #tpu.memory_space<vmem>>, %arg11: memref<32x32xbf16, #tpu.memory_space<vmem>>, %arg12: memref<1x32xf32, #tpu.memory_space<vmem>>, %arg13: memref<32x64xbf16, #tpu.memory_space<vmem>>, %arg14: memref<1x64xf32, #tpu.memory_space<vmem>>, %arg15: memref<64x32xbf16, #tpu.memory_space<vmem>>, %arg16: memref<1x32xf32, #tpu.memory_space<vmem>>, %arg17: memref<1x32xf32, #tpu.memory_space<vmem>>, %arg18: memref<1x32xf32, #tpu.memory_space<vmem>>, %arg19: memref<1x32xf32, #tpu.memory_space<vmem>>, %arg20: memref<1x32xf32, #tpu.memory_space<vmem>>, %arg21: memref<1x8x32xf32, #tpu.memory_space<vmem>>, %arg22: memref<4x16x8xbf16, #tpu.memory_space<vmem>>, %arg23: memref<4x16x8xbf16, #tpu.memory_space<vmem>>) attributes {dimension_semantics = [#tpu.dimension_semantics<parallel>, #tpu.dimension_semantics<arbitrary>], iteration_bounds = array<i64: 2, 1>, scalar_prefetch = 0 : i64, scratch_operands = 2 : i64, tpu.core_type = #tpu.core_type<tc>, window_params = [{transform_indices = @transform_0, window_bounds = array<i64: 1, 8, 32>}, {transform_indices = @transform_1, window_bounds = array<i64: 1, 16, 32>}, {transform_indices = @transform_2, window_bounds = array<i64: 1, 16, 32>}, {pipeline_mode = #tpu.pipeline_mode<synchronous>, transform_indices = @transform_3, window_bounds = array<i64: 32, 32>}, {pipeline_mode = #tpu.pipeline_mode<synchronous>, transform_indices = @transform_4, window_bounds = array<i64: 1, 32>}, {pipeline_mode = #tpu.pipeline_mode<synchronous>, transform_indices = @transform_5, window_bounds = array<i64: 32, 32>}, {pipeline_mode = #tpu.pipeline_mode<synchronous>, transform_indices = @transform_6, window_bounds = array<i64: 1, 32>}, {pipeline_mode = #tpu.pipeline_mode<synchronous>, transform_indices = @transform_7, window_bounds = array<i64: 32, 32>}, {pipeline_mode = #tpu.pipeline_mode<synchronous>, transform_indices = @transform_8, window_bounds = array<i64: 1, 32>}, {pipeline_mode = #tpu.pipeline_mode<synchronous>, transform_indices = @transform_9, window_bounds = array<i64: 32, 32>}, {pipeline_mode = #tpu.pipeline_mode<synchronous>, transform_indices = @transform_10, window_bounds = array<i64: 1, 32>}, {pipeline_mode = #tpu.pipeline_mode<synchronous>, transform_indices = @transform_11, window_bounds = array<i64: 32, 64>}, {pipeline_mode = #tpu.pipeline_mode<synchronous>, transform_indices = @transform_12, window_bounds = array<i64: 1, 64>}, {pipeline_mode = #tpu.pipeline_mode<synchronous>, transform_indices = @transform_13, window_bounds = array<i64: 64, 32>}, {pipeline_mode = #tpu.pipeline_mode<synchronous>, transform_indices = @transform_14, window_bounds = array<i64: 1, 32>}, {pipeline_mode = #tpu.pipeline_mode<synchronous>, transform_indices = @transform_15, window_bounds = array<i64: 1, 32>}, {pipeline_mode = #tpu.pipeline_mode<synchronous>, transform_indices = @transform_16, window_bounds = array<i64: 1, 32>}, {pipeline_mode = #tpu.pipeline_mode<synchronous>, transform_indices = @transform_17, window_bounds = array<i64: 1, 32>}, {pipeline_mode = #tpu.pipeline_mode<synchronous>, transform_indices = @transform_18, window_bounds = array<i64: 1, 32>}, {transform_indices = @transform_19, window_bounds = array<i64: 1, 8, 32>}]} {
    %c0_i32 = arith.constant 0 : i32
    %0 = arith.cmpi eq, %arg1, %c0_i32 : i32
    %1 = arith.extui %0 : i1 to i32
    %c0_i32_0 = arith.constant 0 : i32
    %2 = arith.cmpi ne, %1, %c0_i32_0 : i32
    scf.if %2 {
      %c0_54 = arith.constant 0 : index
      %c0_55 = arith.constant 0 : index
      %c0_56 = arith.constant 0 : index
      %104 = vector.load %arg3[%c0_54, %c0_55, %c0_56] : memref<1x16x32xbf16, #tpu.memory_space<vmem>>, vector<1x16x32xbf16>
      %105 = vector.shape_cast %104 : vector<1x16x32xbf16> to vector<16x32xbf16>
      %c0_57 = arith.constant 0 : index
      %c0_58 = arith.constant 0 : index
      %c0_59 = arith.constant 0 : index
      %106 = vector.load %arg4[%c0_57, %c0_58, %c0_59] : memref<1x16x32xbf16, #tpu.memory_space<vmem>>, vector<1x16x32xbf16>
      %107 = vector.shape_cast %106 : vector<1x16x32xbf16> to vector<16x32xbf16>
      %c0_60 = arith.constant 0 : index
      %c0_61 = arith.constant 0 : index
      %108 = vector.load %arg7[%c0_60, %c0_61] : memref<32x32xbf16, #tpu.memory_space<vmem>>, vector<32x32xbf16>
      %cst_62 = arith.constant dense<0.000000e+00> : vector<16x32xf32>
      %109 = tpu.matmul %105, %108, %cst_62 {dimension_numbers = #tpu.dot_dimension_numbers<[1], [0], [0], [1], [0, 0, 1, 1], [], []>} : vector<16x32xbf16>, vector<32x32xbf16>, vector<16x32xf32> -> vector<16x32xf32>
      %c0_63 = arith.constant 0 : index
      %c0_64 = arith.constant 0 : index
      %110 = vector.load %arg8[%c0_63, %c0_64] : memref<1x32xf32, #tpu.memory_space<vmem>>, vector<1x32xf32>
      %111 = vector.broadcast %110 : vector<1x32xf32> to vector<16x32xf32>
      %112 = arith.addf %109, %111 : vector<16x32xf32>
      %c0_65 = arith.constant 0 : index
      %c0_66 = arith.constant 0 : index
      %113 = vector.load %arg9[%c0_65, %c0_66] : memref<32x32xbf16, #tpu.memory_space<vmem>>, vector<32x32xbf16>
      %cst_67 = arith.constant dense<0.000000e+00> : vector<16x32xf32>
      %114 = tpu.matmul %107, %113, %cst_67 {dimension_numbers = #tpu.dot_dimension_numbers<[1], [0], [0], [1], [0, 0, 1, 1], [], []>} : vector<16x32xbf16>, vector<32x32xbf16>, vector<16x32xf32> -> vector<16x32xf32>
      %c0_68 = arith.constant 0 : index
      %c0_69 = arith.constant 0 : index
      %115 = vector.load %arg10[%c0_68, %c0_69] : memref<1x32xf32, #tpu.memory_space<vmem>>, vector<1x32xf32>
      %116 = vector.broadcast %115 : vector<1x32xf32> to vector<16x32xf32>
      %117 = arith.addf %114, %116 : vector<16x32xf32>
      %118 = vector.shape_cast %112 : vector<16x32xf32> to vector<16x4x8xf32>
      %119 = tpu.transpose %118, [1, 0, 2] : vector<16x4x8xf32> -> vector<4x16x8xf32>
      %120 = arith.truncf %119 : vector<4x16x8xf32> to vector<4x16x8xbf16>
      %c0_70 = arith.constant 0 : index
      %c0_71 = arith.constant 0 : index
      %c0_72 = arith.constant 0 : index
      %121 = vector.load %arg22[%c0_70, %c0_71, %c0_72] : memref<4x16x8xbf16, #tpu.memory_space<vmem>>, vector<4x16x8xbf16>
      tpu.vector_store %arg22[%c0_70, %c0_71, %c0_72], %120 {strides = array<i32>} : memref<4x16x8xbf16, #tpu.memory_space<vmem>>, vector<4x16x8xbf16>,
      %122 = vector.shape_cast %117 : vector<16x32xf32> to vector<16x4x8xf32>
      %123 = tpu.transpose %122, [1, 0, 2] : vector<16x4x8xf32> -> vector<4x16x8xf32>
      %124 = arith.truncf %123 : vector<4x16x8xf32> to vector<4x16x8xbf16>
      %c0_73 = arith.constant 0 : index
      %c0_74 = arith.constant 0 : index
      %c0_75 = arith.constant 0 : index
      %125 = vector.load %arg23[%c0_73, %c0_74, %c0_75] : memref<4x16x8xbf16, #tpu.memory_space<vmem>>, vector<4x16x8xbf16>
      tpu.vector_store %arg23[%c0_73, %c0_74, %c0_75], %124 {strides = array<i32>} : memref<4x16x8xbf16, #tpu.memory_space<vmem>>, vector<4x16x8xbf16>,
    } else {
    }
    %c0 = arith.constant 0 : index
    %c0_1 = arith.constant 0 : index
    %c0_2 = arith.constant 0 : index
    %3 = vector.load %arg2[%c0, %c0_1, %c0_2] : memref<1x8x32xf32, #tpu.memory_space<vmem>>, vector<1x8x32xf32>
    %4 = vector.shape_cast %3 : vector<1x8x32xf32> to vector<8x32xf32>
    %5 = arith.truncf %4 : vector<8x32xf32> to vector<8x32xbf16>
    %c0_3 = arith.constant 0 : index
    %c0_4 = arith.constant 0 : index
    %6 = vector.load %arg5[%c0_3, %c0_4] : memref<32x32xbf16, #tpu.memory_space<vmem>>, vector<32x32xbf16>
    %cst = arith.constant dense<0.000000e+00> : vector<8x32xf32>
    %7 = tpu.matmul %5, %6, %cst {dimension_numbers = #tpu.dot_dimension_numbers<[1], [0], [0], [1], [0, 0, 1, 1], [], []>} : vector<8x32xbf16>, vector<32x32xbf16>, vector<8x32xf32> -> vector<8x32xf32>
    %c0_5 = arith.constant 0 : index
    %c0_6 = arith.constant 0 : index
    %8 = vector.load %arg6[%c0_5, %c0_6] : memref<1x32xf32, #tpu.memory_space<vmem>>, vector<1x32xf32>
    %9 = vector.broadcast %8 : vector<1x32xf32> to vector<8x32xf32>
    %10 = arith.addf %7, %9 : vector<8x32xf32>
    %11 = vector.shape_cast %10 : vector<8x32xf32> to vector<8x4x8xf32>
    %12 = tpu.transpose %11, [1, 0, 2] : vector<8x4x8xf32> -> vector<4x8x8xf32>
    %13 = arith.truncf %12 : vector<4x8x8xf32> to vector<4x8x8xbf16>
    %c0_7 = arith.constant 0 : index
    %c0_8 = arith.constant 0 : index
    %c0_9 = arith.constant 0 : index
    %14 = vector.load %arg22[%c0_7, %c0_8, %c0_9] : memref<4x16x8xbf16, #tpu.memory_space<vmem>>, vector<4x16x8xbf16>
    %c0_10 = arith.constant 0 : index
    %c0_11 = arith.constant 0 : index
    %c0_12 = arith.constant 0 : index
    %15 = vector.load %arg23[%c0_10, %c0_11, %c0_12] : memref<4x16x8xbf16, #tpu.memory_space<vmem>>, vector<4x16x8xbf16>
    "tpu.trace_start"() <{level = 10 : i32, message = "hqd,hkd->hqk"}> : () -> ()
    %cst_13 = arith.constant dense<0.000000e+00> : vector<4x8x16xf32>
    %16 = tpu.matmul %13, %14, %cst_13 {dimension_numbers = #tpu.dot_dimension_numbers<[2], [2], [1], [1], [0, 0, 0, 1, 1, 1], [0], [0]>} : vector<4x8x8xbf16>, vector<4x16x8xbf16>, vector<4x8x16xf32> -> vector<4x8x16xf32>
    "tpu.trace_stop"() : () -> ()
    %cst_14 = arith.constant dense<0xFF800000> : vector<4x8xf32>
    %17 = vector.multi_reduction <maximumf>, %16, %cst_14 [2] : vector<4x8x16xf32> to vector<4x8xf32>
    %18 = vector.shape_cast %17 : vector<4x8xf32> to vector<4x8x1xf32>
    %19 = vector.broadcast %18 : vector<4x8x1xf32> to vector<4x8x16xf32>
    %20 = arith.subf %16, %19 : vector<4x8x16xf32>
    %21 = math.exp %20 : vector<4x8x16xf32>
    %cst_15 = arith.constant dense<0.000000e+00> : vector<4x8xf32>
    %22 = vector.multi_reduction <add>, %21, %cst_15 [2] : vector<4x8x16xf32> to vector<4x8xf32>
    %23 = vector.shape_cast %22 : vector<4x8xf32> to vector<4x8x1xf32>
    %24 = tpu.reciprocal %23 {approx = true} : vector<4x8x1xf32> -> vector<4x8x1xf32>
    %25 = vector.broadcast %24 : vector<4x8x1xf32> to vector<4x8x16xf32>
    %26 = arith.mulf %21, %25 : vector<4x8x16xf32>
    %27 = arith.truncf %26 : vector<4x8x16xf32> to vector<4x8x16xbf16>
    "tpu.trace_start"() <{level = 10 : i32, message = "hqk,hkd->hqd"}> : () -> ()
    %cst_16 = arith.constant dense<0.000000e+00> : vector<4x8x8xf32>
    %28 = tpu.matmul %27, %15, %cst_16 {dimension_numbers = #tpu.dot_dimension_numbers<[2], [1], [1], [2], [0, 0, 0, 1, 1, 2], [0], [0]>} : vector<4x8x16xbf16>, vector<4x16x8xbf16>, vector<4x8x8xf32> -> vector<4x8x8xf32>
    "tpu.trace_stop"() : () -> ()
    %29 = tpu.transpose %28, [1, 0, 2] : vector<4x8x8xf32> -> vector<8x4x8xf32>
    %30 = vector.shape_cast %29 : vector<8x4x8xf32> to vector<8x32xf32>
    %31 = arith.truncf %30 : vector<8x32xf32> to vector<8x32xbf16>
    %c0_17 = arith.constant 0 : index
    %c0_18 = arith.constant 0 : index
    %32 = vector.load %arg11[%c0_17, %c0_18] : memref<32x32xbf16, #tpu.memory_space<vmem>>, vector<32x32xbf16>
    %cst_19 = arith.constant dense<0.000000e+00> : vector<8x32xf32>
    %33 = tpu.matmul %31, %32, %cst_19 {dimension_numbers = #tpu.dot_dimension_numbers<[1], [0], [0], [1], [0, 0, 1, 1], [], []>} : vector<8x32xbf16>, vector<32x32xbf16>, vector<8x32xf32> -> vector<8x32xf32>
    %c0_20 = arith.constant 0 : index
    %c0_21 = arith.constant 0 : index
    %34 = vector.load %arg12[%c0_20, %c0_21] : memref<1x32xf32, #tpu.memory_space<vmem>>, vector<1x32xf32>
    %35 = vector.broadcast %34 : vector<1x32xf32> to vector<8x32xf32>
    %36 = arith.addf %33, %35 : vector<8x32xf32>
    %37 = arith.addf %4, %36 : vector<8x32xf32>
    %c0_22 = arith.constant 0 : index
    %c0_23 = arith.constant 0 : index
    %38 = vector.load %arg17[%c0_22, %c0_23] : memref<1x32xf32, #tpu.memory_space<vmem>>, vector<1x32xf32>
    %c0_24 = arith.constant 0 : index
    %c0_25 = arith.constant 0 : index
    %39 = vector.load %arg18[%c0_24, %c0_25] : memref<1x32xf32, #tpu.memory_space<vmem>>, vector<1x32xf32>
    %cst_26 = arith.constant dense<0.000000e+00> : vector<8xf32>
    %40 = vector.multi_reduction <add>, %37, %cst_26 [1] : vector<8x32xf32> to vector<8xf32>
    %41 = vector.shape_cast %40 : vector<8xf32> to vector<8x1xf32>
    %cst_27 = arith.constant 3.200000e+01 : f32
    %42 = vector.broadcast %cst_27 : f32 to vector<8x1xf32>
    %43 = arith.divf %41, %42 : vector<8x1xf32>
    %44 = arith.mulf %37, %37 : vector<8x32xf32>
    %cst_28 = arith.constant dense<0.000000e+00> : vector<8xf32>
    %45 = vector.multi_reduction <add>, %44, %cst_28 [1] : vector<8x32xf32> to vector<8xf32>
    %46 = vector.shape_cast %45 : vector<8xf32> to vector<8x1xf32>
    %cst_29 = arith.constant 3.200000e+01 : f32
    %47 = vector.broadcast %cst_29 : f32 to vector<8x1xf32>
    %48 = arith.divf %46, %47 : vector<8x1xf32>
    %49 = arith.mulf %43, %43 : vector<8x1xf32>
    %50 = arith.subf %48, %49 : vector<8x1xf32>
    %51 = vector.broadcast %43 : vector<8x1xf32> to vector<8x32xf32>
    %52 = arith.subf %37, %51 : vector<8x32xf32>
    %cst_30 = arith.constant 9.99999974E-6 : f32
    %53 = vector.broadcast %cst_30 : f32 to vector<8x1xf32>
    %54 = arith.addf %50, %53 : vector<8x1xf32>
    %55 = math.rsqrt %54 : vector<8x1xf32>
    %56 = vector.broadcast %55 : vector<8x1xf32> to vector<8x32xf32>
    %57 = arith.mulf %52, %56 : vector<8x32xf32>
    %58 = vector.broadcast %38 : vector<1x32xf32> to vector<8x32xf32>
    %59 = arith.mulf %57, %58 : vector<8x32xf32>
    %60 = vector.broadcast %39 : vector<1x32xf32> to vector<8x32xf32>
    %61 = arith.addf %59, %60 : vector<8x32xf32>
    %62 = arith.truncf %61 : vector<8x32xf32> to vector<8x32xbf16>
    %c0_31 = arith.constant 0 : index
    %c0_32 = arith.constant 0 : index
    %63 = vector.load %arg13[%c0_31, %c0_32] : memref<32x64xbf16, #tpu.memory_space<vmem>>, vector<32x64xbf16>
    %cst_33 = arith.constant dense<0.000000e+00> : vector<8x64xf32>
    %64 = tpu.matmul %62, %63, %cst_33 {dimension_numbers = #tpu.dot_dimension_numbers<[1], [0], [0], [1], [0, 0, 1, 1], [], []>} : vector<8x32xbf16>, vector<32x64xbf16>, vector<8x64xf32> -> vector<8x64xf32>
    %c0_34 = arith.constant 0 : index
    %c0_35 = arith.constant 0 : index
    %65 = vector.load %arg14[%c0_34, %c0_35] : memref<1x64xf32, #tpu.memory_space<vmem>>, vector<1x64xf32>
    %66 = vector.broadcast %65 : vector<1x64xf32> to vector<8x64xf32>
    %67 = arith.addf %64, %66 : vector<8x64xf32>
    %cst_36 = arith.constant 0.000000e+00 : f32
    %68 = vector.broadcast %cst_36 : f32 to vector<8x64xf32>
    %69 = arith.maximumf %67, %68 : vector<8x64xf32>
    %70 = arith.truncf %69 : vector<8x64xf32> to vector<8x64xbf16>
    %c0_37 = arith.constant 0 : index
    %c0_38 = arith.constant 0 : index
    %71 = vector.load %arg15[%c0_37, %c0_38] : memref<64x32xbf16, #tpu.memory_space<vmem>>, vector<64x32xbf16>
    %cst_39 = arith.constant dense<0.000000e+00> : vector<8x32xf32>
    %72 = tpu.matmul %70, %71, %cst_39 {dimension_numbers = #tpu.dot_dimension_numbers<[1], [0], [0], [1], [0, 0, 1, 1], [], []>} : vector<8x64xbf16>, vector<64x32xbf16>, vector<8x32xf32> -> vector<8x32xf32>
    %c0_40 = arith.constant 0 : index
    %c0_41 = arith.constant 0 : index
    %73 = vector.load %arg16[%c0_40, %c0_41] : memref<1x32xf32, #tpu.memory_space<vmem>>, vector<1x32xf32>
    %74 = vector.broadcast %73 : vector<1x32xf32> to vector<8x32xf32>
    %75 = arith.addf %72, %74 : vector<8x32xf32>
    %76 = arith.addf %61, %75 : vector<8x32xf32>
    %c0_42 = arith.constant 0 : index
    %c0_43 = arith.constant 0 : index
    %77 = vector.load %arg19[%c0_42, %c0_43] : memref<1x32xf32, #tpu.memory_space<vmem>>, vector<1x32xf32>
    %c0_44 = arith.constant 0 : index
    %c0_45 = arith.constant 0 : index
    %78 = vector.load %arg20[%c0_44, %c0_45] : memref<1x32xf32, #tpu.memory_space<vmem>>, vector<1x32xf32>
    %cst_46 = arith.constant dense<0.000000e+00> : vector<8xf32>
    %79 = vector.multi_reduction <add>, %76, %cst_46 [1] : vector<8x32xf32> to vector<8xf32>
    %80 = vector.shape_cast %79 : vector<8xf32> to vector<8x1xf32>
    %cst_47 = arith.constant 3.200000e+01 : f32
    %81 = vector.broadcast %cst_47 : f32 to vector<8x1xf32>
    %82 = arith.divf %80, %81 : vector<8x1xf32>
    %83 = arith.mulf %76, %76 : vector<8x32xf32>
    %cst_48 = arith.constant dense<0.000000e+00> : vector<8xf32>
    %84 = vector.multi_reduction <add>, %83, %cst_48 [1] : vector<8x32xf32> to vector<8xf32>
    %85 = vector.shape_cast %84 : vector<8xf32> to vector<8x1xf32>
    %cst_49 = arith.constant 3.200000e+01 : f32
    %86 = vector.broadcast %cst_49 : f32 to vector<8x1xf32>
    %87 = arith.divf %85, %86 : vector<8x1xf32>
    %88 = arith.mulf %82, %82 : vector<8x1xf32>
    %89 = arith.subf %87, %88 : vector<8x1xf32>
    %90 = vector.broadcast %82 : vector<8x1xf32> to vector<8x32xf32>
    %91 = arith.subf %76, %90 : vector<8x32xf32>
    %cst_50 = arith.constant 9.99999974E-6 : f32
    %92 = vector.broadcast %cst_50 : f32 to vector<8x1xf32>
    %93 = arith.addf %89, %92 : vector<8x1xf32>
    %94 = math.rsqrt %93 : vector<8x1xf32>
    %95 = vector.broadcast %94 : vector<8x1xf32> to vector<8x32xf32>
    %96 = arith.mulf %91, %95 : vector<8x32xf32>
    %97 = vector.broadcast %77 : vector<1x32xf32> to vector<8x32xf32>
    %98 = arith.mulf %96, %97 : vector<8x32xf32>
    %99 = vector.broadcast %78 : vector<1x32xf32> to vector<8x32xf32>
    %100 = arith.addf %98, %99 : vector<8x32xf32>
    %c0_51 = arith.constant 0 : index
    %c0_52 = arith.constant 0 : index
    %c0_53 = arith.constant 0 : index
    %101 = vector.load %arg21[%c0_51, %c0_52, %c0_53] : memref<1x8x32xf32, #tpu.memory_space<vmem>>, vector<1x8x32xf32>
    %102 = vector.shape_cast %101 : vector<1x8x32xf32> to vector<8x32xf32>
    %103 = vector.shape_cast %100 : vector<8x32xf32> to vector<1x8x32xf32>
    tpu.vector_store %arg21[%c0_51, %c0_52, %c0_53], %103 {strides = array<i32>} : memref<1x8x32xf32, #tpu.memory_space<vmem>>, vector<1x8x32xf32>,
    return
  }
  func.func @transform_0(%arg0: i32, %arg1: i32) -> (i32, i32, i32) {
    %c0_i32 = arith.constant 0 : i32
    %c0_i32_0 = arith.constant 0 : i32
    return %arg0, %arg1, %c0_i32 : i32, i32, i32
  }
  func.func @transform_1(%arg0: i32, %arg1: i32) -> (i32, i32, i32) {
    %c0_i32 = arith.constant 0 : i32
    %c0_i32_0 = arith.constant 0 : i32
    %c0_i32_1 = arith.constant 0 : i32
    return %arg0, %c0_i32, %c0_i32_0 : i32, i32, i32
  }
  func.func @transform_2(%arg0: i32, %arg1: i32) -> (i32, i32, i32) {
    %c0_i32 = arith.constant 0 : i32
    %c0_i32_0 = arith.constant 0 : i32
    %c0_i32_1 = arith.constant 0 : i32
    return %arg0, %c0_i32, %c0_i32_0 : i32, i32, i32
  }
  func.func @transform_3(%arg0: i32, %arg1: i32) -> (i32, i32) {
    %c0_i32 = arith.constant 0 : i32
    %c0_i32_0 = arith.constant 0 : i32
    %c0_i32_1 = arith.constant 0 : i32
    return %c0_i32, %c0_i32_0 : i32, i32
  }
  func.func @transform_4(%arg0: i32, %arg1: i32) -> (i32, i32) {
    %c0_i32 = arith.constant 0 : i32
    %c0_i32_0 = arith.constant 0 : i32
    %c0_i32_1 = arith.constant 0 : i32
    return %c0_i32, %c0_i32_0 : i32, i32
  }
  func.func @transform_5(%arg0: i32, %arg1: i32) -> (i32, i32) {
    %c0_i32 = arith.constant 0 : i32
    %c0_i32_0 = arith.constant 0 : i32
    %c0_i32_1 = arith.constant 0 : i32
    return %c0_i32, %c0_i32_0 : i32, i32
  }
  func.func @transform_6(%arg0: i32, %arg1: i32) -> (i32, i32) {
    %c0_i32 = arith.constant 0 : i32
    %c0_i32_0 = arith.constant 0 : i32
    %c0_i32_1 = arith.constant 0 : i32
    return %c0_i32, %c0_i32_0 : i32, i32
  }
  func.func @transform_7(%arg0: i32, %arg1: i32) -> (i32, i32) {
    %c0_i32 = arith.constant 0 : i32
    %c0_i32_0 = arith.constant 0 : i32
    %c0_i32_1 = arith.constant 0 : i32
    return %c0_i32, %c0_i32_0 : i32, i32
  }
  func.func @transform_8(%arg0: i32, %arg1: i32) -> (i32, i32) {
    %c0_i32 = arith.constant 0 : i32
    %c0_i32_0 = arith.constant 0 : i32
    %c0_i32_1 = arith.constant 0 : i32
    return %c0_i32, %c0_i32_0 : i32, i32
  }
  func.func @transform_9(%arg0: i32, %arg1: i32) -> (i32, i32) {
    %c0_i32 = arith.constant 0 : i32
    %c0_i32_0 = arith.constant 0 : i32
    %c0_i32_1 = arith.constant 0 : i32
    return %c0_i32, %c0_i32_0 : i32, i32
  }
  func.func @transform_10(%arg0: i32, %arg1: i32) -> (i32, i32) {
    %c0_i32 = arith.constant 0 : i32
    %c0_i32_0 = arith.constant 0 : i32
    %c0_i32_1 = arith.constant 0 : i32
    return %c0_i32, %c0_i32_0 : i32, i32
  }
  func.func @transform_11(%arg0: i32, %arg1: i32) -> (i32, i32) {
    %c0_i32 = arith.constant 0 : i32
    %c0_i32_0 = arith.constant 0 : i32
    %c0_i32_1 = arith.constant 0 : i32
    return %c0_i32, %c0_i32_0 : i32, i32
  }
  func.func @transform_12(%arg0: i32, %arg1: i32) -> (i32, i32) {
    %c0_i32 = arith.constant 0 : i32
    %c0_i32_0 = arith.constant 0 : i32
    %c0_i32_1 = arith.constant 0 : i32
    return %c0_i32, %c0_i32_0 : i32, i32
  }
  func.func @transform_13(%arg0: i32, %arg1: i32) -> (i32, i32) {
    %c0_i32 = arith.constant 0 : i32
    %c0_i32_0 = arith.constant 0 : i32
    %c0_i32_1 = arith.constant 0 : i32
    return %c0_i32, %c0_i32_0 : i32, i32
  }
  func.func @transform_14(%arg0: i32, %arg1: i32) -> (i32, i32) {
    %c0_i32 = arith.constant 0 : i32
    %c0_i32_0 = arith.constant 0 : i32
    %c0_i32_1 = arith.constant 0 : i32
    return %c0_i32, %c0_i32_0 : i32, i32
  }
  func.func @transform_15(%arg0: i32, %arg1: i32) -> (i32, i32) {
    %c0_i32 = arith.constant 0 : i32
    %c0_i32_0 = arith.constant 0 : i32
    %c0_i32_1 = arith.constant 0 : i32
    return %c0_i32, %c0_i32_0 : i32, i32
  }
  func.func @transform_16(%arg0: i32, %arg1: i32) -> (i32, i32) {
    %c0_i32 = arith.constant 0 : i32
    %c0_i32_0 = arith.constant 0 : i32
    %c0_i32_1 = arith.constant 0 : i32
    return %c0_i32, %c0_i32_0 : i32, i32
  }
  func.func @transform_17(%arg0: i32, %arg1: i32) -> (i32, i32) {
    %c0_i32 = arith.constant 0 : i32
    %c0_i32_0 = arith.constant 0 : i32
    %c0_i32_1 = arith.constant 0 : i32
    return %c0_i32, %c0_i32_0 : i32, i32
  }
  func.func @transform_18(%arg0: i32, %arg1: i32) -> (i32, i32) {
    %c0_i32 = arith.constant 0 : i32
    %c0_i32_0 = arith.constant 0 : i32
    %c0_i32_1 = arith.constant 0 : i32
    return %c0_i32, %c0_i32_0 : i32, i32
  }
  func.func @transform_19(%arg0: i32, %arg1: i32) -> (i32, i32, i32) {
    %c0_i32 = arith.constant 0 : i32
    %c0_i32_0 = arith.constant 0 : i32
    return %arg0, %arg1, %c0_i32 : i32, i32, i32
  }
}

module attributes {stable_mosaic.version = 11 : i64} {
  func.func @kernel(%arg0: i32, %arg1: i32, %arg2: memref<1x8x32xf32, #tpu.memory_space<vmem>>, %arg3: memref<1x16x32xbf16, #tpu.memory_space<vmem>>, %arg4: memref<1x16x32xbf16, #tpu.memory_space<vmem>>, %arg5: memref<32x32xbf16, #tpu.memory_space<vmem>>, %arg6: memref<1x32xf32, #tpu.memory_space<vmem>>, %arg7: memref<32x32xbf16, #tpu.memory_space<vmem>>, %arg8: memref<1x32xf32, #tpu.memory_space<vmem>>, %arg9: memref<32x32xbf16, #tpu.memory_space<vmem>>, %arg10: memref<1x32xf32, #tpu.memory_space<vmem>>, %arg11: memref<32x32xbf16, #tpu.memory_space<vmem>>, %arg12: memref<1x32xf32, #tpu.memory_space<vmem>>, %arg13: memref<32x64xbf16, #tpu.memory_space<vmem>>, %arg14: memref<1x64xf32, #tpu.memory_space<vmem>>, %arg15: memref<64x32xbf16, #tpu.memory_space<vmem>>, %arg16: memref<1x32xf32, #tpu.memory_space<vmem>>, %arg17: memref<1x32xf32, #tpu.memory_space<vmem>>, %arg18: memref<1x32xf32, #tpu.memory_space<vmem>>, %arg19: memref<1x32xf32, #tpu.memory_space<vmem>>, %arg20: memref<1x32xf32, #tpu.memory_space<vmem>>, %arg21: memref<1x8x32xf32, #tpu.memory_space<vmem>>, %arg22: memref<4x16x8xbf16, #tpu.memory_space<vmem>>, %arg23: memref<4x16x8xbf16, #tpu.memory_space<vmem>>) attributes {dimension_semantics = [#tpu.dimension_semantics<parallel>, #tpu.dimension_semantics<arbitrary>], iteration_bounds = array<i64: 2, 1>, scalar_prefetch = 0 : i64, scratch_operands = 2 : i64, tpu.core_type = #tpu.core_type<tc>, window_params = [{transform_indices = @transform_0, window_bounds = array<i64: 1, 8, 32>}, {transform_indices = @transform_1, window_bounds = array<i64: 1, 16, 32>}, {transform_indices = @transform_2, window_bounds = array<i64: 1, 16, 32>}, {pipeline_mode = #tpu.pipeline_mode<synchronous>, transform_indices = @transform_3, window_bounds = array<i64: 32, 32>}, {pipeline_mode = #tpu.pipeline_mode<synchronous>, transform_indices = @transform_4, window_bounds = array<i64: 1, 32>}, {pipeline_mode = #tpu.pipeline_mode<synchronous>, transform_indices = @transform_5, window_bounds = array<i64: 32, 32>}, {pipeline_mode = #tpu.pipeline_mode<synchronous>, transform_indices = @transform_6, window_bounds = array<i64: 1, 32>}, {pipeline_mode = #tpu.pipeline_mode<synchronous>, transform_indices = @transform_7, window_bounds = array<i64: 32, 32>}, {pipeline_mode = #tpu.pipeline_mode<synchronous>, transform_indices = @transform_8, window_bounds = array<i64: 1, 32>}, {pipeline_mode = #tpu.pipeline_mode<synchronous>, transform_indices = @transform_9, window_bounds = array<i64: 32, 32>}, {pipeline_mode = #tpu.pipeline_mode<synchronous>, transform_indices = @transform_10, window_bounds = array<i64: 1, 32>}, {pipeline_mode = #tpu.pipeline_mode<synchronous>, transform_indices = @transform_11, window_bounds = array<i64: 32, 64>}, {pipeline_mode = #tpu.pipeline_mode<synchronous>, transform_indices = @transform_12, window_bounds = array<i64: 1, 64>}, {pipeline_mode = #tpu.pipeline_mode<synchronous>, transform_indices = @transform_13, window_bounds = array<i64: 64, 32>}, {pipeline_mode = #tpu.pipeline_mode<synchronous>, transform_indices = @transform_14, window_bounds = array<i64: 1, 32>}, {pipeline_mode = #tpu.pipeline_mode<synchronous>, transform_indices = @transform_15, window_bounds = array<i64: 1, 32>}, {pipeline_mode = #tpu.pipeline_mode<synchronous>, transform_indices = @transform_16, window_bounds = array<i64: 1, 32>}, {pipeline_mode = #tpu.pipeline_mode<synchronous>, transform_indices = @transform_17, window_bounds = array<i64: 1, 32>}, {pipeline_mode = #tpu.pipeline_mode<synchronous>, transform_indices = @transform_18, window_bounds = array<i64: 1, 32>}, {transform_indices = @transform_19, window_bounds = array<i64: 1, 8, 32>}]} {
    %c0_i32 = arith.constant 0 : i32
    %0 = arith.cmpi eq, %arg1, %c0_i32 : i32
    %1 = arith.extui %0 : i1 to i32
    %c0_i32_0 = arith.constant 0 : i32
    %2 = arith.cmpi ne, %1, %c0_i32_0 : i32
    scf.if %2 {
      %c0_54 = arith.constant 0 : index
      %c0_55 = arith.constant 0 : index
      %c0_56 = arith.constant 0 : index
      %104 = vector.load %arg3[%c0_54, %c0_55, %c0_56] : memref<1x16x32xbf16, #tpu.memory_space<vmem>>, vector<1x16x32xbf16>
      %105 = vector.shape_cast %104 : vector<1x16x32xbf16> to vector<16x32xbf16>
      %c0_57 = arith.constant 0 : index
      %c0_58 = arith.constant 0 : index
      %c0_59 = arith.constant 0 : index
      %106 = vector.load %arg4[%c0_57, %c0_58, %c0_59] : memref<1x16x32xbf16, #tpu.memory_space<vmem>>, vector<1x16x32xbf16>
      %107 = vector.shape_cast %106 : vector<1x16x32xbf16> to vector<16x32xbf16>
      %c0_60 = arith.constant 0 : index
      %c0_61 = arith.constant 0 : index
      %108 = vector.load %arg7[%c0_60, %c0_61] : memref<32x32xbf16, #tpu.memory_space<vmem>>, vector<32x32xbf16>
      %cst_62 = arith.constant dense<0.000000e+00> : vector<16x32xf32>
      %109 = tpu.matmul %105, %108, %cst_62 {dimension_numbers = #tpu.dot_dimension_numbers<[1], [0], [0], [1], [0, 0, 1, 1], [], []>} : vector<16x32xbf16>, vector<32x32xbf16>, vector<16x32xf32> -> vector<16x32xf32>
      %c0_63 = arith.constant 0 : index
      %c0_64 = arith.constant 0 : index
      %110 = vector.load %arg8[%c0_63, %c0_64] : memref<1x32xf32, #tpu.memory_space<vmem>>, vector<1x32xf32>
      %111 = vector.broadcast %110 : vector<1x32xf32> to vector<16x32xf32>
      %112 = arith.addf %109, %111 : vector<16x32xf32>
      %c0_65 = arith.constant 0 : index
      %c0_66 = arith.constant 0 : index
      %113 = vector.load %arg9[%c0_65, %c0_66] : memref<32x32xbf16, #tpu.memory_space<vmem>>, vector<32x32xbf16>
      %cst_67 = arith.constant dense<0.000000e+00> : vector<16x32xf32>
      %114 = tpu.matmul %107, %113, %cst_67 {dimension_numbers = #tpu.dot_dimension_numbers<[1], [0], [0], [1], [0, 0, 1, 1], [], []>} : vector<16x32xbf16>, vector<32x32xbf16>, vector<16x32xf32> -> vector<16x32xf32>
      %c0_68 = arith.constant 0 : index
      %c0_69 = arith.constant 0 : index
      %115 = vector.load %arg10[%c0_68, %c0_69] : memref<1x32xf32, #tpu.memory_space<vmem>>, vector<1x32xf32>
      %116 = vector.broadcast %115 : vector<1x32xf32> to vector<16x32xf32>
      %117 = arith.addf %114, %116 : vector<16x32xf32>
      %118 = vector.shape_cast %112 : vector<16x32xf32> to vector<16x4x8xf32>
      %119 = tpu.transpose %118, [1, 0, 2] : vector<16x4x8xf32> -> vector<4x16x8xf32>
      %120 = arith.truncf %119 : vector<4x16x8xf32> to vector<4x16x8xbf16>
      %c0_70 = arith.constant 0 : index
      %c0_71 = arith.constant 0 : index
      %c0_72 = arith.constant 0 : index
      %121 = vector.load %arg22[%c0_70, %c0_71, %c0_72] : memref<4x16x8xbf16, #tpu.memory_space<vmem>>, vector<4x16x8xbf16>
      tpu.vector_store %arg22[%c0_70, %c0_71, %c0_72], %120 {strides = array<i32>} : memref<4x16x8xbf16, #tpu.memory_space<vmem>>, vector<4x16x8xbf16>,
      %122 = vector.shape_cast %117 : vector<16x32xf32> to vector<16x4x8xf32>
      %123 = tpu.transpose %122, [1, 0, 2] : vector<16x4x8xf32> -> vector<4x16x8xf32>
      %124 = arith.truncf %123 : vector<4x16x8xf32> to vector<4x16x8xbf16>
      %c0_73 = arith.constant 0 : index
      %c0_74 = arith.constant 0 : index
      %c0_75 = arith.constant 0 : index
      %125 = vector.load %arg23[%c0_73, %c0_74, %c0_75] : memref<4x16x8xbf16, #tpu.memory_space<vmem>>, vector<4x16x8xbf16>
      tpu.vector_store %arg23[%c0_73, %c0_74, %c0_75], %124 {strides = array<i32>} : memref<4x16x8xbf16, #tpu.memory_space<vmem>>, vector<4x16x8xbf16>,
    } else {
    }
    %c0 = arith.constant 0 : index
    %c0_1 = arith.constant 0 : index
    %c0_2 = arith.constant 0 : index
    %3 = vector.load %arg2[%c0, %c0_1, %c0_2] : memref<1x8x32xf32, #tpu.memory_space<vmem>>, vector<1x8x32xf32>
    %4 = vector.shape_cast %3 : vector<1x8x32xf32> to vector<8x32xf32>
    %5 = arith.truncf %4 : vector<8x32xf32> to vector<8x32xbf16>
    %c0_3 = arith.constant 0 : index
    %c0_4 = arith.constant 0 : index
    %6 = vector.load %arg5[%c0_3, %c0_4] : memref<32x32xbf16, #tpu.memory_space<vmem>>, vector<32x32xbf16>
    %cst = arith.constant dense<0.000000e+00> : vector<8x32xf32>
    %7 = tpu.matmul %5, %6, %cst {dimension_numbers = #tpu.dot_dimension_numbers<[1], [0], [0], [1], [0, 0, 1, 1], [], []>} : vector<8x32xbf16>, vector<32x32xbf16>, vector<8x32xf32> -> vector<8x32xf32>
    %c0_5 = arith.constant 0 : index
    %c0_6 = arith.constant 0 : index
    %8 = vector.load %arg6[%c0_5, %c0_6] : memref<1x32xf32, #tpu.memory_space<vmem>>, vector<1x32xf32>
    %9 = vector.broadcast %8 : vector<1x32xf32> to vector<8x32xf32>
    %10 = arith.addf %7, %9 : vector<8x32xf32>
    %11 = vector.shape_cast %10 : vector<8x32xf32> to vector<8x4x8xf32>
    %12 = tpu.transpose %11, [1, 0, 2] : vector<8x4x8xf32> -> vector<4x8x8xf32>
    %13 = arith.truncf %12 : vector<4x8x8xf32> to vector<4x8x8xbf16>
    %c0_7 = arith.constant 0 : index
    %c0_8 = arith.constant 0 : index
    %c0_9 = arith.constant 0 : index
    %14 = vector.load %arg22[%c0_7, %c0_8, %c0_9] : memref<4x16x8xbf16, #tpu.memory_space<vmem>>, vector<4x16x8xbf16>
    %c0_10 = arith.constant 0 : index
    %c0_11 = arith.constant 0 : index
    %c0_12 = arith.constant 0 : index
    %15 = vector.load %arg23[%c0_10, %c0_11, %c0_12] : memref<4x16x8xbf16, #tpu.memory_space<vmem>>, vector<4x16x8xbf16>
    "tpu.trace_start"() <{level = 10 : i32, message = "hqd,hkd->hqk"}> : () -> ()
    %cst_13 = arith.constant dense<0.000000e+00> : vector<4x8x16xf32>
    %16 = tpu.matmul %13, %14, %cst_13 {dimension_numbers = #tpu.dot_dimension_numbers<[2], [2], [1], [1], [0, 0, 0, 1, 1, 1], [0], [0]>} : vector<4x8x8xbf16>, vector<4x16x8xbf16>, vector<4x8x16xf32> -> vector<4x8x16xf32>
    "tpu.trace_stop"() : () -> ()
    %cst_14 = arith.constant dense<0xFF800000> : vector<4x8xf32>
    %17 = vector.multi_reduction <maximumf>, %16, %cst_14 [2] : vector<4x8x16xf32> to vector<4x8xf32>
    %18 = vector.shape_cast %17 : vector<4x8xf32> to vector<4x8x1xf32>
    %19 = vector.broadcast %18 : vector<4x8x1xf32> to vector<4x8x16xf32>
    %20 = arith.subf %16, %19 : vector<4x8x16xf32>
    %21 = math.exp %20 : vector<4x8x16xf32>
    %cst_15 = arith.constant dense<0.000000e+00> : vector<4x8xf32>
    %22 = vector.multi_reduction <add>, %21, %cst_15 [2] : vector<4x8x16xf32> to vector<4x8xf32>
    %23 = vector.shape_cast %22 : vector<4x8xf32> to vector<4x8x1xf32>
    %24 = tpu.reciprocal %23 {approx = true} : vector<4x8x1xf32> -> vector<4x8x1xf32>
    %25 = vector.broadcast %24 : vector<4x8x1xf32> to vector<4x8x16xf32>
    %26 = arith.mulf %21, %25 : vector<4x8x16xf32>
    %27 = arith.truncf %26 : vector<4x8x16xf32> to vector<4x8x16xbf16>
    "tpu.trace_start"() <{level = 10 : i32, message = "hqk,hkd->hqd"}> : () -> ()
    %cst_16 = arith.constant dense<0.000000e+00> : vector<4x8x8xf32>
    %28 = tpu.matmul %27, %15, %cst_16 {dimension_numbers = #tpu.dot_dimension_numbers<[2], [1], [1], [2], [0, 0, 0, 1, 1, 2], [0], [0]>} : vector<4x8x16xbf16>, vector<4x16x8xbf16>, vector<4x8x8xf32> -> vector<4x8x8xf32>
    "tpu.trace_stop"() : () -> ()
    %29 = tpu.transpose %28, [1, 0, 2] : vector<4x8x8xf32> -> vector<8x4x8xf32>
    %30 = vector.shape_cast %29 : vector<8x4x8xf32> to vector<8x32xf32>
    %31 = arith.truncf %30 : vector<8x32xf32> to vector<8x32xbf16>
    %c0_17 = arith.constant 0 : index
    %c0_18 = arith.constant 0 : index
    %32 = vector.load %arg11[%c0_17, %c0_18] : memref<32x32xbf16, #tpu.memory_space<vmem>>, vector<32x32xbf16>
    %cst_19 = arith.constant dense<0.000000e+00> : vector<8x32xf32>
    %33 = tpu.matmul %31, %32, %cst_19 {dimension_numbers = #tpu.dot_dimension_numbers<[1], [0], [0], [1], [0, 0, 1, 1], [], []>} : vector<8x32xbf16>, vector<32x32xbf16>, vector<8x32xf32> -> vector<8x32xf32>
    %c0_20 = arith.constant 0 : index
    %c0_21 = arith.constant 0 : index
    %34 = vector.load %arg12[%c0_20, %c0_21] : memref<1x32xf32, #tpu.memory_space<vmem>>, vector<1x32xf32>
    %35 = vector.broadcast %34 : vector<1x32xf32> to vector<8x32xf32>
    %36 = arith.addf %33, %35 : vector<8x32xf32>
    %37 = arith.addf %4, %36 : vector<8x32xf32>
    %c0_22 = arith.constant 0 : index
    %c0_23 = arith.constant 0 : index
    %38 = vector.load %arg17[%c0_22, %c0_23] : memref<1x32xf32, #tpu.memory_space<vmem>>, vector<1x32xf32>
    %c0_24 = arith.constant 0 : index
    %c0_25 = arith.constant 0 : index
    %39 = vector.load %arg18[%c0_24, %c0_25] : memref<1x32xf32, #tpu.memory_space<vmem>>, vector<1x32xf32>
    %cst_26 = arith.constant dense<0.000000e+00> : vector<8xf32>
    %40 = vector.multi_reduction <add>, %37, %cst_26 [1] : vector<8x32xf32> to vector<8xf32>
    %41 = vector.shape_cast %40 : vector<8xf32> to vector<8x1xf32>
    %cst_27 = arith.constant 3.200000e+01 : f32
    %42 = vector.broadcast %cst_27 : f32 to vector<8x1xf32>
    %43 = arith.divf %41, %42 : vector<8x1xf32>
    %44 = arith.mulf %37, %37 : vector<8x32xf32>
    %cst_28 = arith.constant dense<0.000000e+00> : vector<8xf32>
    %45 = vector.multi_reduction <add>, %44, %cst_28 [1] : vector<8x32xf32> to vector<8xf32>
    %46 = vector.shape_cast %45 : vector<8xf32> to vector<8x1xf32>
    %cst_29 = arith.constant 3.200000e+01 : f32
    %47 = vector.broadcast %cst_29 : f32 to vector<8x1xf32>
    %48 = arith.divf %46, %47 : vector<8x1xf32>
    %49 = arith.mulf %43, %43 : vector<8x1xf32>
    %50 = arith.subf %48, %49 : vector<8x1xf32>
    %51 = vector.broadcast %43 : vector<8x1xf32> to vector<8x32xf32>
    %52 = arith.subf %37, %51 : vector<8x32xf32>
    %cst_30 = arith.constant 9.99999974E-6 : f32
    %53 = vector.broadcast %cst_30 : f32 to vector<8x1xf32>
    %54 = arith.addf %50, %53 : vector<8x1xf32>
    %55 = math.rsqrt %54 : vector<8x1xf32>
    %56 = vector.broadcast %55 : vector<8x1xf32> to vector<8x32xf32>
    %57 = arith.mulf %52, %56 : vector<8x32xf32>
    %58 = vector.broadcast %38 : vector<1x32xf32> to vector<8x32xf32>
    %59 = arith.mulf %57, %58 : vector<8x32xf32>
    %60 = vector.broadcast %39 : vector<1x32xf32> to vector<8x32xf32>
    %61 = arith.addf %59, %60 : vector<8x32xf32>
    %62 = arith.truncf %61 : vector<8x32xf32> to vector<8x32xbf16>
    %c0_31 = arith.constant 0 : index
    %c0_32 = arith.constant 0 : index
    %63 = vector.load %arg13[%c0_31, %c0_32] : memref<32x64xbf16, #tpu.memory_space<vmem>>, vector<32x64xbf16>
    %cst_33 = arith.constant dense<0.000000e+00> : vector<8x64xf32>
    %64 = tpu.matmul %62, %63, %cst_33 {dimension_numbers = #tpu.dot_dimension_numbers<[1], [0], [0], [1], [0, 0, 1, 1], [], []>} : vector<8x32xbf16>, vector<32x64xbf16>, vector<8x64xf32> -> vector<8x64xf32>
    %c0_34 = arith.constant 0 : index
    %c0_35 = arith.constant 0 : index
    %65 = vector.load %arg14[%c0_34, %c0_35] : memref<1x64xf32, #tpu.memory_space<vmem>>, vector<1x64xf32>
    %66 = vector.broadcast %65 : vector<1x64xf32> to vector<8x64xf32>
    %67 = arith.addf %64, %66 : vector<8x64xf32>
    %cst_36 = arith.constant 0.000000e+00 : f32
    %68 = vector.broadcast %cst_36 : f32 to vector<8x64xf32>
    %69 = arith.maximumf %67, %68 : vector<8x64xf32>
    %70 = arith.truncf %69 : vector<8x64xf32> to vector<8x64xbf16>
    %c0_37 = arith.constant 0 : index
    %c0_38 = arith.constant 0 : index
    %71 = vector.load %arg15[%c0_37, %c0_38] : memref<64x32xbf16, #tpu.memory_space<vmem>>, vector<64x32xbf16>
    %cst_39 = arith.constant dense<0.000000e+00> : vector<8x32xf32>
    %72 = tpu.matmul %70, %71, %cst_39 {dimension_numbers = #tpu.dot_dimension_numbers<[1], [0], [0], [1], [0, 0, 1, 1], [], []>} : vector<8x64xbf16>, vector<64x32xbf16>, vector<8x32xf32> -> vector<8x32xf32>
    %c0_40 = arith.constant 0 : index
    %c0_41 = arith.constant 0 : index
    %73 = vector.load %arg16[%c0_40, %c0_41] : memref<1x32xf32, #tpu.memory_space<vmem>>, vector<1x32xf32>
    %74 = vector.broadcast %73 : vector<1x32xf32> to vector<8x32xf32>
    %75 = arith.addf %72, %74 : vector<8x32xf32>
    %76 = arith.addf %61, %75 : vector<8x32xf32>
    %c0_42 = arith.constant 0 : index
    %c0_43 = arith.constant 0 : index
    %77 = vector.load %arg19[%c0_42, %c0_43] : memref<1x32xf32, #tpu.memory_space<vmem>>, vector<1x32xf32>
    %c0_44 = arith.constant 0 : index
    %c0_45 = arith.constant 0 : index
    %78 = vector.load %arg20[%c0_44, %c0_45] : memref<1x32xf32, #tpu.memory_space<vmem>>, vector<1x32xf32>
    %cst_46 = arith.constant dense<0.000000e+00> : vector<8xf32>
    %79 = vector.multi_reduction <add>, %76, %cst_46 [1] : vector<8x32xf32> to vector<8xf32>
    %80 = vector.shape_cast %79 : vector<8xf32> to vector<8x1xf32>
    %cst_47 = arith.constant 3.200000e+01 : f32
    %81 = vector.broadcast %cst_47 : f32 to vector<8x1xf32>
    %82 = arith.divf %80, %81 : vector<8x1xf32>
    %83 = arith.mulf %76, %76 : vector<8x32xf32>
    %cst_48 = arith.constant dense<0.000000e+00> : vector<8xf32>
    %84 = vector.multi_reduction <add>, %83, %cst_48 [1] : vector<8x32xf32> to vector<8xf32>
    %85 = vector.shape_cast %84 : vector<8xf32> to vector<8x1xf32>
    %cst_49 = arith.constant 3.200000e+01 : f32
    %86 = vector.broadcast %cst_49 : f32 to vector<8x1xf32>
    %87 = arith.divf %85, %86 : vector<8x1xf32>
    %88 = arith.mulf %82, %82 : vector<8x1xf32>
    %89 = arith.subf %87, %88 : vector<8x1xf32>
    %90 = vector.broadcast %82 : vector<8x1xf32> to vector<8x32xf32>
    %91 = arith.subf %76, %90 : vector<8x32xf32>
    %cst_50 = arith.constant 9.99999974E-6 : f32
    %92 = vector.broadcast %cst_50 : f32 to vector<8x1xf32>
    %93 = arith.addf %89, %92 : vector<8x1xf32>
    %94 = math.rsqrt %93 : vector<8x1xf32>
    %95 = vector.broadcast %94 : vector<8x1xf32> to vector<8x32xf32>
    %96 = arith.mulf %91, %95 : vector<8x32xf32>
    %97 = vector.broadcast %77 : vector<1x32xf32> to vector<8x32xf32>
    %98 = arith.mulf %96, %97 : vector<8x32xf32>
    %99 = vector.broadcast %78 : vector<1x32xf32> to vector<8x32xf32>
    %100 = arith.addf %98, %99 : vector<8x32xf32>
    %c0_51 = arith.constant 0 : index
    %c0_52 = arith.constant 0 : index
    %c0_53 = arith.constant 0 : index
    %101 = vector.load %arg21[%c0_51, %c0_52, %c0_53] : memref<1x8x32xf32, #tpu.memory_space<vmem>>, vector<1x8x32xf32>
    %102 = vector.shape_cast %101 : vector<1x8x32xf32> to vector<8x32xf32>
    %103 = vector.shape_cast %100 : vector<8x32xf32> to vector<1x8x32xf32>
    tpu.vector_store %arg21[%c0_51, %c0_52, %c0_53], %103 {strides = array<i32>} : memref<1x8x32xf32, #tpu.memory_space<vmem>>, vector<1x8x32xf32>,
    return
  }
  func.func @transform_0(%arg0: i32, %arg1: i32) -> (i32, i32, i32) {
    %c0_i32 = arith.constant 0 : i32
    %c0_i32_0 = arith.constant 0 : i32
    return %arg0, %arg1, %c0_i32 : i32, i32, i32
  }
  func.func @transform_1(%arg0: i32, %arg1: i32) -> (i32, i32, i32) {
    %c0_i32 = arith.constant 0 : i32
    %c0_i32_0 = arith.constant 0 : i32
    %c0_i32_1 = arith.constant 0 : i32
    return %arg0, %c0_i32, %c0_i32_0 : i32, i32, i32
  }
  func.func @transform_2(%arg0: i32, %arg1: i32) -> (i32, i32, i32) {
    %c0_i32 = arith.constant 0 : i32
    %c0_i32_0 = arith.constant 0 : i32
    %c0_i32_1 = arith.constant 0 : i32
    return %arg0, %c0_i32, %c0_i32_0 : i32, i32, i32
  }
  func.func @transform_3(%arg0: i32, %arg1: i32) -> (i32, i32) {
    %c0_i32 = arith.constant 0 : i32
    %c0_i32_0 = arith.constant 0 : i32
    %c0_i32_1 = arith.constant 0 : i32
    return %c0_i32, %c0_i32_0 : i32, i32
  }
  func.func @transform_4(%arg0: i32, %arg1: i32) -> (i32, i32) {
    %c0_i32 = arith.constant 0 : i32
    %c0_i32_0 = arith.constant 0 : i32
    %c0_i32_1 = arith.constant 0 : i32
    return %c0_i32, %c0_i32_0 : i32, i32
  }
  func.func @transform_5(%arg0: i32, %arg1: i32) -> (i32, i32) {
    %c0_i32 = arith.constant 0 : i32
    %c0_i32_0 = arith.constant 0 : i32
    %c0_i32_1 = arith.constant 0 : i32
    return %c0_i32, %c0_i32_0 : i32, i32
  }
  func.func @transform_6(%arg0: i32, %arg1: i32) -> (i32, i32) {
    %c0_i32 = arith.constant 0 : i32
    %c0_i32_0 = arith.constant 0 : i32
    %c0_i32_1 = arith.constant 0 : i32
    return %c0_i32, %c0_i32_0 : i32, i32
  }
  func.func @transform_7(%arg0: i32, %arg1: i32) -> (i32, i32) {
    %c0_i32 = arith.constant 0 : i32
    %c0_i32_0 = arith.constant 0 : i32
    %c0_i32_1 = arith.constant 0 : i32
    return %c0_i32, %c0_i32_0 : i32, i32
  }
  func.func @transform_8(%arg0: i32, %arg1: i32) -> (i32, i32) {
    %c0_i32 = arith.constant 0 : i32
    %c0_i32_0 = arith.constant 0 : i32
    %c0_i32_1 = arith.constant 0 : i32
    return %c0_i32, %c0_i32_0 : i32, i32
  }
  func.func @transform_9(%arg0: i32, %arg1: i32) -> (i32, i32) {
    %c0_i32 = arith.constant 0 : i32
    %c0_i32_0 = arith.constant 0 : i32
    %c0_i32_1 = arith.constant 0 : i32
    return %c0_i32, %c0_i32_0 : i32, i32
  }
  func.func @transform_10(%arg0: i32, %arg1: i32) -> (i32, i32) {
    %c0_i32 = arith.constant 0 : i32
    %c0_i32_0 = arith.constant 0 : i32
    %c0_i32_1 = arith.constant 0 : i32
    return %c0_i32, %c0_i32_0 : i32, i32
  }
  func.func @transform_11(%arg0: i32, %arg1: i32) -> (i32, i32) {
    %c0_i32 = arith.constant 0 : i32
    %c0_i32_0 = arith.constant 0 : i32
    %c0_i32_1 = arith.constant 0 : i32
    return %c0_i32, %c0_i32_0 : i32, i32
  }
  func.func @transform_12(%arg0: i32, %arg1: i32) -> (i32, i32) {
    %c0_i32 = arith.constant 0 : i32
    %c0_i32_0 = arith.constant 0 : i32
    %c0_i32_1 = arith.constant 0 : i32
    return %c0_i32, %c0_i32_0 : i32, i32
  }
  func.func @transform_13(%arg0: i32, %arg1: i32) -> (i32, i32) {
    %c0_i32 = arith.constant 0 : i32
    %c0_i32_0 = arith.constant 0 : i32
    %c0_i32_1 = arith.constant 0 : i32
    return %c0_i32, %c0_i32_0 : i32, i32
  }
  func.func @transform_14(%arg0: i32, %arg1: i32) -> (i32, i32) {
    %c0_i32 = arith.constant 0 : i32
    %c0_i32_0 = arith.constant 0 : i32
    %c0_i32_1 = arith.constant 0 : i32
    return %c0_i32, %c0_i32_0 : i32, i32
  }
  func.func @transform_15(%arg0: i32, %arg1: i32) -> (i32, i32) {
    %c0_i32 = arith.constant 0 : i32
    %c0_i32_0 = arith.constant 0 : i32
    %c0_i32_1 = arith.constant 0 : i32
    return %c0_i32, %c0_i32_0 : i32, i32
  }
  func.func @transform_16(%arg0: i32, %arg1: i32) -> (i32, i32) {
    %c0_i32 = arith.constant 0 : i32
    %c0_i32_0 = arith.constant 0 : i32
    %c0_i32_1 = arith.constant 0 : i32
    return %c0_i32, %c0_i32_0 : i32, i32
  }
  func.func @transform_17(%arg0: i32, %arg1: i32) -> (i32, i32) {
    %c0_i32 = arith.constant 0 : i32
    %c0_i32_0 = arith.constant 0 : i32
    %c0_i32_1 = arith.constant 0 : i32
    return %c0_i32, %c0_i32_0 : i32, i32
  }
  func.func @transform_18(%arg0: i32, %arg1: i32) -> (i32, i32) {
    %c0_i32 = arith.constant 0 : i32
    %c0_i32_0 = arith.constant 0 : i32
    %c0_i32_1 = arith.constant 0 : i32
    return %c0_i32, %c0_i32_0 : i32, i32
  }
  func.func @transform_19(%arg0: i32, %arg1: i32) -> (i32, i32, i32) {
    %c0_i32 = arith.constant 0 : i32
    %c0_i32_0 = arith.constant 0 : i32
    return %arg0, %arg1, %c0_i32 : i32, i32, i32
  }
}

</mosaic_0001>

<bundles_post_ra>
// kernel: tpu_custom_call.1
= control target key start
LH: loop header
LB: loop body
LE: loop exit
PB: predicated region body
PF: predicated region fallthrough
CT: control target
= control target key end

     0   :  { %s3992_s0 = inlined_call_operand.vmem [shape: f32[2,8,32], index: 0, kind: input, shape index: {}]   ;;  %s3993_s1 = inlined_call_operand.vmem [shape: bf16[2,16,32], index: 1, kind: input, shape index: {}]   ;;  %s3994_s2 = inlined_call_operand.vmem [shape: bf16[2,16,32], index: 2, kind: input, shape index: {}]   ;;  %s3995_s3 = inlined_call_operand.hbm [shape: bf16[32,32], index: 3, kind: input, shape index: {}]   ;;  %s3996_s4 = inlined_call_operand.vmem [shape: f32[1,32], index: 4, kind: input, shape index: {}]   ;;  %s3997_s5 = inlined_call_operand.hbm [shape: bf16[32,32], index: 5, kind: input, shape index: {}]   ;;  %s3998_s6 = inlined_call_operand.vmem [shape: f32[1,32], index: 6, kind: input, shape index: {}]   ;;  %s3999_s7 = inlined_call_operand.hbm [shape: bf16[32,32], index: 7, kind: input, shape index: {}]   ;;  %s4000_s8 = inlined_call_operand.hbm [shape: f32[1,32], index: 8, kind: input, shape index: {}]   ;;  %s4001_s9 = inlined_call_operand.vmem [shape: bf16[32,32], index: 9, kind: input, shape index: {}]   ;;  %s4002_s10 = inlined_call_operand.vmem [shape: f32[1,32], index: 10, kind: input, shape index: {}]   ;;  %s4003_s11 = inlined_call_operand.hbm [shape: bf16[32,64], index: 11, kind: input, shape index: {}]   ;;  %s4004_s12 = inlined_call_operand.vmem [shape: f32[1,64], index: 12, kind: input, shape index: {}]   ;;  %s4005_s13 = inlined_call_operand.vmem [shape: bf16[64,32], index: 13, kind: input, shape index: {}]   ;;  %s4006_s14 = inlined_call_operand.vmem [shape: f32[1,32], index: 14, kind: input, shape index: {}]   ;;  %s4007_s15 = inlined_call_operand.vmem [shape: f32[1,32], index: 15, kind: input, shape index: {}]   ;;  %s4008_s16 = inlined_call_operand.vmem [shape: f32[1,32], index: 16, kind: input, shape index: {}]   ;;  %s4009_s17 = inlined_call_operand.vmem [shape: f32[1,32], index: 17, kind: input, shape index: {}]   ;;  %s4010_s18 = inlined_call_operand.vmem [shape: f32[1,32], index: 18, kind: input, shape index: {}]   ;;  %s4011_s19 = inlined_call_operand.hbm [shape: f32[2,8,32], index: 19, kind: output, shape index: {}]  }
   0x1   :  { %4032 = sst [smem:[#allocation27_spill]] %s3992_s0 }
   0x2   :  { %4033 = sst [smem:[#allocation28_spill]] %s3993_s1 }
   0x3   :  { %4034 = sst [smem:[#allocation29_spill]] %s3994_s2 }
   0x4   :  { %4035 = sst [smem:[#allocation30_spill]] %s3995_s3 }
   0x5   :  { %4036 = sst [smem:[#allocation31_spill]] %s3997_s5 }
   0x6   :  { %4037 = sst [smem:[#allocation32_spill]] %s4006_s14 }
   0x7   :  { %4038 = sst [smem:[#allocation33_spill]] %s4009_s17 }
   0x8   :  { %4039 = sst [smem:[#allocation34_spill]] %s4010_s18 }
   0x9   :  { %4040 = sst [smem:[#allocation35_spill]] %s4011_s19 }
   0xa   :  { %24 = vsyncpa [#allocation5], 0 }
   0xb   :  { %25 = vsyncpa [#allocation8], 0 }
   0xc   :  { %26 = vsyncpa [#allocation11], 0 }
   0xd   :  { %27 = vsyncpa [#allocation6], 0 }
   0xe   :  { %29 = vsyncpa [#allocation6 + $0x1], 0  ;;  %s3438_s0 = smov 0   ;;  %s3440_s30 = smov 0  }
   0xf   :  { %s3442_s20 = smov 0   ;;  %s3444_s21 = smov 0  }
  0x10   :  { %s3446_s1 = smov 0   ;;  %s3448_s22 = smov 0  }
  0x11 LB: > { %4041 = sst [smem:[#allocation18_spill]] %s3298_s0  ;;  %s2719_s2 = sadd.s32 4294967295, %s3318_s22   ;;  %s3318_s22 = sphi %s3448_s22, %s35_s22   ;;  %s3314_s1 = sphi %s3446_s1, %s4082_s1   ;;  %s3310_s21 = sphi %s3444_s21, %s4081_s21   ;;  %s3306_s20 = sphi %s3442_s20, %s4080_s20   ;;  %s3302_s30 = sphi %s3440_s30, %s4079_s30   ;;  %s3298_s0 = sphi %s3438_s0, %s4078_s0  }
  0x12   : > { %4042 = sst [smem:[#allocation19_spill]] %s3302_s30  ;;  %s2720_s23 = sadd.s32 4294967294, %s3318_s22  }
  0x13   : > { %4043 = sst [smem:[#allocation20_spill]] %s3306_s20  ;;  %s47_s24 = sadd.s32 1, %s3314_s1 }
  0x14   : > { %4044 = sst [smem:[#allocation21_spill]] %s3314_s1  ;;  %s472_s25 = sadd.s32 1, %s3306_s20 }
  0x15   : > { %4045 = sst [smem:[#allocation22_spill]] %s3318_s22  ;;  %p49_p0 = scmp.ge.s32.totalorder %s47_s24, 2 }
  0x16   : > { %p482_p1 = scmp.ne.s32.totalorder %s3306_s20, %s3302_s30  ;;  %p483_p2 = scmp.eq.s32.totalorder %s2719_s2, 1 }
  0x17   : > { %p488_p3 = scmp.ne.s32.totalorder %s3302_s30, %s3298_s0  ;;  %s4084_s24 = smov (%p49_p0, %s47_s24), 0 }
  0x18   : > { %4046 = sst [smem:[#allocation23_spill]] %s4084_s24  ;;  %p3478_p4 = por %p483_p2, %p482_p1 }
  0x19   : > { %p489_p5 = scmp.eq.s32.totalorder %s2720_s23, 1  ;;  %s467_s26 = ssub.s32 %s3314_s1, %s4084_s24 }
  0x1a   : > { %s4047_s3 = scalar_select %p3478_p4, 1, 0 }
  0x1b   : > { %p2721_p6 = scmp.ge.s32.totalorder %s3318_s22, 1  ;;  %p470_p7 = scmp.eq.s32.totalorder %s467_s26, 0 }
  0x1c   : > { %4048 = sst [smem:[#allocation24_spill]] %s4047_s3  ;;  %p3485_p8 = por %p489_p5, %p488_p3 }
  0x1d   : > { %p496_p9 = scmp.lt.s32.totalorder %s3318_s22, 3  ;;  %p3497_p11 = scmp.eq.s32.totalorder %s2719_s2, 0 }
  0x1e   : > { %s4049_s27 = scalar_select %p3485_p8, 1, 0 }
  0x1f   : > { %s3491_s28 = scalar_select %p470_p7, %s3306_s20, %s472_s25  }
  0x20   : > { %4050 = sst [smem:[#allocation25_spill]] %s4049_s27  ;;  %p3493_p10 = pnand %p2721_p6, %p496_p9 }
  0x21   : > { %4051 = sst [smem:[#allocation26_spill]] %s3491_s28  ;;  %s3320_s23 = smov [#allocation7]  }
  0x22   : > { %s4052_s29 = scalar_select %p3493_p10, 1, 0 }
  0x23   : > { %s4053_s0 = scalar_select %p3497_p11, 1, 0 }
  0x24   : > { %p2956_p12 = pneg %p3493_p10  ;;  %s524_s26 = sshll.u32 %s3320_s23, 4  ;;  %s525_s26 = int_to_ptr.vmem [resolvable:$true] %s524_s26 }
  0x25   : > { %s3321_s25 = smov [#allocation10]   ;;  %s4055_s5 = sld [smem:[#allocation31_spill]] }
  0x26   : > { %p3505_p13 = pnand %p3497_p11, %p2956_p12  ;;  %s554_s1 = sshll.u32 %s3321_s25, 4  ;;  %s3509_s1 = int_to_ptr.vmem [resolvable:$true] %s554_s1 }
  0x28   : > { %p3519_p1 = pneg %p3505_p13 }
  0x2b   : > { %s3088_s20 = scalar_lea.hbm %s4055_s5, 256 }
  0x2c   : > { %p3089_p0 = scmp.ne.s32.totalorder %s4055_s5, %s3088_s20  ;;  %p3095_p5 = scmp.lt.u32.totalorder %s3088_s20, %s4055_s5 }
  0x2e   : > { %p3091_p2 = pnand %p3519_p1, %p3089_p0 }
  0x30   : > { %p3092_p3 = pneg %p3091_p2 }
  0x32   : > { %p3097_p6 = pnand %p3095_p5, %p3092_p3 }
  0x34   : > { %3100 = shalt.err (!%p3097_p6)
}
  0x35   : > { %s3101_s28 = scalar_lea.vmem %s525_s26, 256  ;;  %p3109_p8 = scmp.lt.s32.totalorder %s525_s26, %s525_s26 }
  0x36   : > { %p3102_p7 = scmp.ne.s32.totalorder %s525_s26, %s3101_s28  ;;  %p3110_p4 = scmp.lt.s32.totalorder %s3101_s28, %s3101_s28 }
  0x38   : > { %p3104_p9 = pnand %p3102_p7, %p3519_p1  ;;  %p3111_p11 = por %p3110_p4, %p3109_p8 }
  0x3a   : > { %p3105_p12 = pneg %p3104_p9 }
  0x3c   : > { %p3112_p10 = pnand %p3111_p11, %p3105_p12 }
  0x3e   : > { %3115 = shalt.err (!%p3112_p10)
}
  0x3f   : > { %s4028_s22 = smov 64   ;;  %s4030_s27 = smov 4  }
  0x40   : > { %2962 = dma.hbm_to_vmem [thread:$0]  (!%p3505_p13), %s4055_s5, 256, %s525_s26, [#allocation8], %s4028_s22, %s4028_s22, %s4030_s27  }
  0x41   : > { %s3116_s18 = scalar_lea.hbm %s4000_s8, 16 }
  0x42   : > { %p3117_p4 = scmp.ne.s32.totalorder %s4000_s8, %s3116_s18  ;;  %p3123_p11 = scmp.lt.u32.totalorder %s3116_s18, %s4000_s8 }
  0x44   : > { %p3119_p8 = pnand %p3117_p4, %p3519_p1 }
  0x46   : > { %p3120_p10 = pneg %p3119_p8 }
  0x48   : > { %p3125_p0 = pnand %p3123_p11, %p3120_p10 }
  0x4a   : > { %3128 = shalt.err (!%p3125_p0)
}
  0x4b   : > { %s3129_s26 = scalar_lea.vmem %s3509_s1, 16  ;;  %s3136_s17 = scalar_lea.vmem %s3509_s1, 32 }
  0x4c   : > { %p3130_p2 = scmp.ne.s32.totalorder %s3509_s1, %s3129_s26  ;;  %p3137_p6 = scmp.lt.s32.totalorder %s3509_s1, %s3509_s1 }
  0x4d   : > { %p3138_p7 = scmp.lt.s32.totalorder %s3136_s17, %s3129_s26 }
  0x4e   : > { %p3132_p3 = pnand %p3130_p2, %p3519_p1 }
  0x4f   : > { %p3139_p9 = por %p3138_p7, %p3137_p6 }
  0x50   : > { %p3133_p5 = pneg %p3132_p3 }
  0x52   : > { %p3140_p12 = pnand %p3139_p9, %p3133_p5 }
  0x54   : > { %3143 = shalt.err (!%p3140_p12)
}
  0x55   : > { %2968 = dma.hbm_to_vmem [thread:$0]  (!%p3505_p13), %s4000_s8, 16, %s3509_s1, [#allocation11]  }
  0x56   : > { %s3324_s3 = smov [#allocation4]   ;;  %s3325_s20 = smov [#allocation9]  }
  0x57   : > { %s508_s19 = sshll.u32 %s3324_s3, 4  ;;  %s540_s2 = sshll.u32 %s3325_s20, 4  ;;  %s509_s19 = int_to_ptr.vmem [resolvable:$true] %s508_s19  ;;  %s541_s2 = int_to_ptr.vmem [resolvable:$true] %s540_s2 }
  0x58   : > { %s4057_s22 = sld [smem:[#allocation30_spill]] }
  0x5e   : > { %s4058_s27 = smov %s4057_s22  ;;  %s3144_s26 = scalar_lea.hbm %s4057_s22, 256 }
  0x5f   : > { %p3145_p4 = scmp.ne.s32.totalorder %s4058_s27, %s3144_s26  ;;  %p3151_p11 = scmp.lt.u32.totalorder %s3144_s26, %s4058_s27 }
  0x61   : > { %p3147_p8 = pnand %p3145_p4, %p3519_p1 }
  0x63   : > { %p3148_p10 = pneg %p3147_p8 }
  0x65   : > { %p3153_p0 = pnand %p3151_p11, %p3148_p10 }
  0x67   : > { %3156 = shalt.err (!%p3153_p0)
}
  0x68   : > { %s3157_s1 = scalar_lea.vmem %s509_s19, 256  ;;  %p3165_p6 = scmp.lt.s32.totalorder %s509_s19, %s509_s19 }
  0x69   : > { %p3158_p2 = scmp.ne.s32.totalorder %s509_s19, %s3157_s1  ;;  %p3166_p7 = scmp.lt.s32.totalorder %s3157_s1, %s3157_s1 }
  0x6b   : > { %p3160_p3 = pnand %p3158_p2, %p3519_p1  ;;  %p3167_p9 = por %p3166_p7, %p3165_p6 }
  0x6d   : > { %p3161_p5 = pneg %p3160_p3 }
  0x6f   : > { %p3168_p12 = pnand %p3167_p9, %p3161_p5 }
  0x71   : > { %3171 = shalt.err (!%p3168_p12)
}
  0x72   : > { %s4059_s5 = smov 4   ;;  %s4060_s22 = smov 64  }
  0x73   : > { %2959 = dma.hbm_to_vmem [thread:$0]  (!%p3505_p13), %s4058_s27, 256, %s509_s19, [#allocation5], %s4060_s22, %s4060_s22, %s4059_s5  }
  0x74   : > { %s3172_s25 = scalar_lea.hbm %s3999_s7, 256 }
  0x75   : > { %p3173_p4 = scmp.ne.s32.totalorder %s3999_s7, %s3172_s25  ;;  %p3179_p11 = scmp.lt.u32.totalorder %s3172_s25, %s3999_s7 }
  0x77   : > { %p3175_p8 = pnand %p3173_p4, %p3519_p1 }
  0x79   : > { %p3176_p10 = pneg %p3175_p8 }
  0x7b   : > { %p3181_p0 = pnand %p3179_p11, %p3176_p10 }
  0x7d   : > { %3184 = shalt.err (!%p3181_p0)
}
  0x7e   : > { %s3185_s1 = scalar_lea.vmem %s541_s2, 256  ;;  %p3193_p6 = scmp.lt.s32.totalorder %s541_s2, %s541_s2 }
  0x7f   : > { %p3186_p2 = scmp.ne.s32.totalorder %s541_s2, %s3185_s1  ;;  %p3194_p7 = scmp.lt.s32.totalorder %s3185_s1, %s3185_s1 }
  0x81   : > { %p3188_p3 = pnand %p3186_p2, %p3519_p1  ;;  %p3195_p9 = por %p3194_p7, %p3193_p6 }
  0x83   : > { %p3189_p5 = pneg %p3188_p3 }
  0x85   : > { %p3196_p12 = pnand %p3195_p9, %p3189_p5 }
  0x87   : > { %3199 = shalt.err (!%p3196_p12)
}
  0x88   : > { %2965 = dma.hbm_to_vmem [thread:$0]  (!%p3505_p13), %s3999_s7, 256, %s541_s2, [#allocation8], %s4060_s22, %s4060_s22, %s4059_s5  }
  0x89   : > { %s3326_s30 = smov [#allocation12]   ;;  %s3200_s28 = scalar_lea.hbm %s4003_s11, 256 }
  0x8a   : > { %s570_s3 = sshll.u32 %s3326_s30, 4  ;;  %p3201_p4 = scmp.ne.s32.totalorder %s4003_s11, %s3200_s28  ;;  %s571_s3 = int_to_ptr.vmem [resolvable:$true] %s570_s3 }
  0x8b   : > { %p3207_p11 = scmp.lt.u32.totalorder %s3200_s28, %s4003_s11 }
  0x8c   : > { %p3203_p8 = pnand %p3201_p4, %p3519_p1 }
  0x8e   : > { %p3204_p10 = pneg %p3203_p8 }
  0x90   : > { %p3209_p0 = pnand %p3207_p11, %p3204_p10 }
  0x92   : > { %3212 = shalt.err (!%p3209_p0)
}
  0x93   : > { %s3213_s2 = scalar_lea.vmem %s571_s3, 256  ;;  %p3221_p6 = scmp.lt.s32.totalorder %s571_s3, %s571_s3 }
  0x94   : > { %p3214_p2 = scmp.ne.s32.totalorder %s571_s3, %s3213_s2  ;;  %p3222_p7 = scmp.lt.s32.totalorder %s3213_s2, %s3213_s2 }
  0x96   : > { %p3216_p3 = pnand %p3214_p2, %p3519_p1  ;;  %p3223_p9 = por %p3222_p7, %p3221_p6 }
  0x98   : > { %p3217_p5 = pneg %p3216_p3 }
  0x9a   : > { %p3224_p12 = pnand %p3223_p9, %p3217_p5 }
  0x9c   : > { %3227 = shalt.err (!%p3224_p12)
}
  0x9d   : > { %2971 = dma.hbm_to_vmem [thread:$0]  (!%p3505_p13), %s4003_s11, 256, %s571_s3, [#allocation11], %s4060_s22, %s4060_s22, %s4059_s5  }
  0x9e   : > { %p4061_p4 = scmp.ne.s32.totalorder %s4052_s29, 0 }
  0x9f   : > { %p4062_p1 = scmp.ne.s32.totalorder (!%p4061_p4), %s4053_s0, 0 }
  0xa0   : > { %633 = sbr.rel (%p4061_p4) target bundleno = 2465 (0x9a1), region = 96 }
  0xa7   : > { %3281 = dma.done.wait (%p4062_p1), [#allocation5], 256  }
  0xa8   : > { %3283 = vsyncadd (%p4062_p1), [#allocation5], 4294967040 }
  0xa9   : > { %3285 = dma.done.wait (%p4062_p1), [#allocation8], 512  }
  0xaa   : > { %3287 = vsyncadd (%p4062_p1), [#allocation8], 4294966784 }
  0xab   : > { %3289 = dma.done.wait (%p4062_p1), [#allocation11], 272  }
  0xac   : > { %3291 = vsyncadd (%p4062_p1), [#allocation11], 4294967024  ;;  %p717_p13 = scmp.lt.s32.totalorder %s3310_s21, 1  ;;  %v3327_v0 = vmov 0.0   ;;  %vm3328_vm0 = vmmov 0   ;;  %v3052_v1 = vld [vmem:[#allocation7] sm:$0xff]   ;;  %v913_v26 = vlaneseq }
  0xad   : > { %2834 = vmatprep.subr.bf16.mxu0 %v3327_v0  ;;  %2838 = vmatprep.mubr.msk.bf16.mxu0 %vm3328_vm0, %v3327_v0  ;;  %s4063_s5 = sld [smem:[#allocation28_spill]]  ;;  %v3053_v2 = vld [vmem:[#allocation7 + $0x8] sm:$0xff]   ;;  %vm771_vm1 = vcmask 261120   ;;  %v3055_v4 = vld [vmem:[#allocation4] sm:$0xff]   ;;  %s4064_s20 = sld [smem:[#allocation27_spill]]  ;;  %v3056_v5 = vld [vmem:[#allocation4 + $0x8] sm:$0xff]  }
  0xae   : > { %s718_s24 = scalar_select %p717_p13, %s3310_s21, 1  ;;  %2842 = vmatprep.subr.bf16.mxu1 %v3327_v0  ;;  %2846 = vmatprep.mubr.msk.bf16.mxu1 %vm3328_vm0, %v3327_v0  ;;  %v2740_v8 = vld [vmem:[%s3998_s6] ss:$0 sm:$0xff]  ;;  %v3058_v22 = vld [vmem:[#allocation9 + $0x8] sm:$0xff]   ;;  %v3332_v24 = vmov 1983009808  }
  0xaf   : > { %2835 = vmatpush3.bf16.msra.mxu0 %v3052_v1  ;;  %s3329_s17 = smov 112   ;;  %s3330_s18 = smov 120   ;;  %v2758_v15 = vld [vmem:[%s3996_s4] ss:$0 sm:$0xff]  ;;  %v911_v25 = vunpack.c.l.s4 %v3332_v24  ;;  %v3333_v29 = vmov 1934713408  }
  0xb0   : > { %s3647_s29 = sshll.u32 %s718_s24, 3  ;;  %2836 = vmatprep.subr.bf16.mxu0 %v3327_v0  ;;  %s3331_s19 = smov 104   ;;  %v3057_v21 = vld [vmem:[#allocation9] sm:$0xff]   ;;  %v943_v30 = vunpack.c.l.s4 %v3333_v29  ;;  %v914_v32 = vshrl.u32 %v913_v26, 7  ;;  %vm1184_vm2 = vcmask 64512   ;;  %vm1901_vm3 = vcmask 130048  }
  0xb1   : > { %2843 = vmatpush3.bf16.msra.mxu1 %v3057_v21  ;;  %s4065_s0 = sld [smem:[#allocation29_spill]]  ;;  %v912_v31 = vunpack.c.0.s8 %v911_v25  ;;  %s3334_s3 = smov 16   ;;  %vm2272_vm4 = vcmask 195584   ;;  %vm2482_vm5 = vcmask 523264  }
  0xb2   : > { %2844 = vmatprep.subr.bf16.mxu1 %v3327_v0  ;;  %v944_v37 = vunpack.c.0.s8 %v943_v30  ;;  %s4066_s28 = sld [smem:[#allocation32_spill]]  ;;  %s4067_s26 = sld [smem:[#allocation19_spill]] }
  0xb3   : > { %s728_s22 = scalar_lea.vmem %s4063_s5, %s3647_s29  ;;  %s723_s25 = scalar_lea.vmem %s4064_s20, %s3647_s29  ;;  %2837 = vmatpush3.bf16.msra.mxu0 %v3053_v2  ;;  %v3705_v38 = vsub.s32 %v912_v31, %v914_v32 }
  0xb4   : > { %v3054_v3 = vld [vmem:[%s728_s22] sm:$0xff]   ;;  %2850 = vmatprep.subr.bf16.mxu0 %v3327_v0  ;;  %v3711_v49 = vsub.s32 %v944_v37, %v914_v32  ;;  %s3335_s20 = smov 8   ;;  %s4068_s1 = sld [smem:[#allocation24_spill]] }
  0xb5   : > { %v3659_v6 = vld [vmem:[%s723_s25] sm:$0xff]  ;;  %2845 = vmatpush3.bf16.msra.mxu1 %v3058_v22  ;;  %s3336_s25 = smov 24   ;;  %s4069_s14 = sld [smem:[#allocation33_spill]] }
  0xb6   : > { %2839 = vmatmul.mubr.msk.bf16.vlgmr.msra.gmra.mrb[0].mxu0 %vm771_vm1, %v3054_v3  ;;  %v1490_v7 = vpack.c.bf16 %v3659_v6, %v3659_v6  ;;  %2858 = vmatprep.subr.bf16.mxu1 %v3327_v0 }
  0xb7   : > { %2851 = vmatpush3.bf16.msra.mxu0 %v3055_v4  ;;  %2854 = vmatprep.mubr.msk.bf16.mxu0 %vm3328_vm0, %v3327_v0  ;;  %s733_s23 = scalar_lea.vmem %s4065_s0, %s3647_s29  ;;  %s2793_s29 = sshll.u32 %s3310_s21, 7 }
  0xb8   : > { %2852 = vmatprep.subr.bf16.mxu0 %v3327_v0  ;;  %v3059_v23 = vld [vmem:[%s733_s23] sm:$0xff]   ;;  %s4070_s23 = sld [smem:[#allocation34_spill]]  ;;  %s3337_s21 = smov [#allocation13]  }
  0xb9   : > { %2847 = vmatmul.mubr.msk.bf16.vlgmr.msra.gmra.mrb[0].mxu1 %vm771_vm1, %v3059_v23 }
  0xba   : > { %2860 = vmatprep.mubr.msk.bf16.mxu1 %vm3328_vm0, %v3327_v0  ;;  %p4073_p10 = scmp.ne.s32.totalorder %s4068_s1, 0 }
  0xbb   : > { %2853 = vmatpush3.bf16.msra.mxu0 %v3056_v5 }
  0xbc   : > { %2864 = vmatprep.subr.bf16.mxu0 %v3327_v0 }
  0xbe   : > { %2855 = vmatmul.mubr.msk.bf16.vlgmr.msra.gmra.mrb[4].mxu0 %vm771_vm1, %v1490_v7 }
  0xbf   : > { %2866 = vmatprep.mubr.msk.bf16.mxu0 %vm3328_vm0, %v3327_v0 }
 0x189   : > { %v809_v9 = vpop.f32.mrb[0].mxu0 }
 0x18a   : > { %v3674_v10 = vadd.f32 %v2740_v8, %v809_v9  ;;  %v2840_v11 = vpop.f32.mrb[1].mxu0 }
 0x18b   : > { %v812_v12 = vpop.f32.mrb[2].mxu0 }
 0x18c   : > { %896 = vrot.lane.b32.xlu1 %v3674_v10, %s3329_s17  ;;  %890 = vrot.lane.b32.xlu0 %v3674_v10, %s3330_s18  ;;  %v2841_v13 = vpop.f32.mrb[3].mxu0  ;;  %v813_v14 = vadd.f32 %v2740_v8, %v812_v12 }
 0x190   : > { %898 = vrot.lane.b32.xlu1 %v813_v14, %s3329_s17  ;;  %892 = vrot.lane.b32.xlu0 %v813_v14, %s3330_s18 }
 0x191   : > { %v1552_v16 = vpop.f32.mrb[4].mxu0 }
 0x192   : > { %v2856_v17 = vpop.f32.mrb[5].mxu0  ;;  %v3688_v19 = vadd.f32 %v2758_v15, %v1552_v16 }
 0x193   : > { %v1555_v18 = vpop.f32.mrb[6].mxu0 }
 0x194   : > { %904 = vrot.lane.b32.xlu1 %v813_v14, %s3331_s19  ;;  %902 = vrot.lane.b32.xlu0 %v3674_v10, %s3331_s19  ;;  %v2857_v20 = vpop.f32.mrb[7].mxu0 }
 0x198   : > { %1562 = vrot.lane.b32.xlu1 %v3688_v19, %s3329_s17  ;;  %1559 = vrot.lane.b32.xlu0 %v3688_v19, %s3330_s18 }
 0x19c   : > { %1565 = vrot.lane.b32.xlu0 %v3688_v19, %s3331_s19 }
 0x1fe   : > { %v897_v27 = vpop.permute.xlu1 %896  ;;  %v891_v28 = vpop.permute.xlu0 %890 }
 0x1ff   : > { %v908_v39 = vcombine.low %v3674_v10, %v897_v27  ;;  %v909_v40 = vcombine.high %v3674_v10, %v897_v27 }
 0x201   : > { %v916_v54 = vrot.slane %v908_v39, %v3705_v38  ;;  %v923_v55 = vrot.slane %v909_v40, %v3705_v38 }
 0x202   : > { %v899_v33 = vpop.permute.xlu1 %898  ;;  %v893_v34 = vpop.permute.xlu0 %892 }
 0x203   : > { %v976_v35 = vcombine.low %v813_v14, %v899_v33  ;;  %v977_v36 = vcombine.high %v813_v14, %v899_v33 }
 0x205   : > { %v984_v47 = vrot.slane %v976_v35, %v3705_v38  ;;  %v991_v48 = vrot.slane %v977_v36, %v3705_v38 }
 0x206   : > { %v905_v41 = vpop.permute.xlu1 %904  ;;  %v903_v42 = vpop.permute.xlu0 %902 }
 0x207   : > { %v992_v43 = vcombine.low %v893_v34, %v905_v41  ;;  %v993_v44 = vcombine.high %v893_v34, %v905_v41  ;;  %v924_v45 = vcombine.low %v891_v28, %v903_v42  ;;  %v925_v46 = vcombine.high %v891_v28, %v903_v42 }
 0x209   : > { %v1000_v50 = vrot.slane %v992_v43, %v3705_v38  ;;  %v1007_v51 = vrot.slane %v993_v44, %v3705_v38  ;;  %v932_v52 = vrot.slane %v924_v45, %v3705_v38  ;;  %v939_v53 = vrot.slane %v925_v46, %v3705_v38 }
 0x20a   : > { %v1560_v18 = vpop.permute.xlu0 %1559  ;;  %v1563_v45 = vpop.permute.xlu1 %1562 }
 0x20b   : > { %v1008_v56 = vcombine.low %v984_v47, %v1000_v50  ;;  %v1009_v57 = vcombine.high %v984_v47, %v1000_v50  ;;  %v1024_v58 = vcombine.low %v991_v48, %v1007_v51  ;;  %v1025_v59 = vcombine.high %v991_v48, %v1007_v51 }
 0x20c   : > { %v940_v60 = vcombine.low %v916_v54, %v932_v52  ;;  %v941_v61 = vcombine.high %v916_v54, %v932_v52  ;;  %v956_v62 = vcombine.low %v923_v55, %v939_v53  ;;  %v957_v63 = vcombine.high %v923_v55, %v939_v53 }
 0x20d   : > { %v1016_v1 = vrot.slane %v1008_v56, %v3711_v49  ;;  %v1023_v2 = vrot.slane %v1009_v57, %v3711_v49  ;;  %v1032_v3 = vrot.slane %v1024_v58, %v3711_v49  ;;  %v1039_v4 = vrot.slane %v1025_v59, %v3711_v49 }
 0x20e   : > { %v948_v5 = vrot.slane %v940_v60, %v3711_v49  ;;  %v955_v7 = vrot.slane %v941_v61, %v3711_v49  ;;  %v964_v8 = vrot.slane %v956_v62, %v3711_v49  ;;  %v971_v9 = vrot.slane %v957_v63, %v3711_v49  ;;  %v1566_v46 = vpop.permute.xlu0 %1565 }
 0x20f   : > { %v1112_v10 = vcombine.low %v1016_v1, %v1023_v2  ;;  %v2752_v11 = vcombine.high %v1016_v1, %v1023_v2  ;;  %v1128_v12 = vcombine.low %v1032_v3, %v1039_v4  ;;  %v2753_v13 = vcombine.high %v1032_v3, %v1039_v4 }
 0x210   : > { %v1044_v14 = vcombine.low %v948_v5, %v955_v7  ;;  %v2750_v15 = vcombine.high %v948_v5, %v955_v7  ;;  %v1060_v16 = vcombine.low %v964_v8, %v971_v9  ;;  %v2751_v17 = vcombine.high %v964_v8, %v971_v9 }
 0x211   : > { %v1119_v20 = vrot.slane %v1112_v10, %v3705_v38  ;;  %v1127_v21 = vrot.slane %v2752_v11, %v3705_v38  ;;  %v1135_v22 = vrot.slane %v1128_v12, %v3705_v38  ;;  %v1143_v23 = vrot.slane %v2753_v13, %v3705_v38 }
 0x212   : > { %v1051_v24 = vrot.slane %v1044_v14, %v3705_v38  ;;  %v1059_v25 = vrot.slane %v2750_v15, %v3705_v38  ;;  %v1067_v26 = vrot.slane %v1060_v16, %v3705_v38  ;;  %v1075_v27 = vrot.slane %v2751_v17, %v3705_v38 }
 0x213   : > { %v1144_v28 = vcombine.low %v1119_v20, %v1127_v21  ;;  %v1145_v29 = vcombine.high %v1119_v20, %v1127_v21  ;;  %v1160_v30 = vcombine.low %v1135_v22, %v1143_v23  ;;  %v1161_v31 = vcombine.high %v1135_v22, %v1143_v23 }
 0x214   : > { %v1076_v32 = vcombine.low %v1051_v24, %v1059_v25  ;;  %v1077_v33 = vcombine.high %v1051_v24, %v1059_v25  ;;  %v1092_v34 = vcombine.low %v1067_v26, %v1075_v27  ;;  %v1093_v35 = vcombine.high %v1067_v26, %v1075_v27 }
 0x215   : > { %v1152_v36 = vrot.slane %v1144_v28, %v3711_v49  ;;  %v1159_v37 = vrot.slane %v1145_v29, %v3711_v49  ;;  %v1168_v39 = vrot.slane %v1160_v30, %v3711_v49  ;;  %v1175_v40 = vrot.slane %v1161_v31, %v3711_v49 }
 0x216   : > { %v1084_v41 = vrot.slane %v1076_v32, %v3711_v49  ;;  %v1091_v42 = vrot.slane %v1077_v33, %v3711_v49  ;;  %v1100_v43 = vrot.slane %v1092_v34, %v3711_v49  ;;  %v1107_v44 = vrot.slane %v1093_v35, %v3711_v49 }
 0x217   : > { %v1176_v47 = vcombine.low %v1152_v36, %v1168_v39  ;;  %v1177_v48 = vcombine.high %v1152_v36, %v1168_v39  ;;  %v1178_v50 = vcombine.low %v1159_v37, %v1175_v40  ;;  %v1179_v51 = vcombine.high %v1159_v37, %v1175_v40 }
 0x218   : > { %v1108_v52 = vcombine.low %v1084_v41, %v1100_v43  ;;  %v1109_v53 = vcombine.high %v1084_v41, %v1100_v43  ;;  %v1110_v54 = vcombine.low %v1091_v42, %v1107_v44  ;;  %v1111_v55 = vcombine.high %v1091_v42, %v1107_v44 }
 0x219   : > { %v1568_v56 = vcombine.low %v3688_v19, %v1563_v45  ;;  %v1569_v57 = vcombine.high %v3688_v19, %v1563_v45  ;;  %v1584_v58 = vcombine.low %v1560_v18, %v1566_v46  ;;  %v1585_v59 = vcombine.high %v1560_v18, %v1566_v46 }
 0x21a   : > { %v1180_v60 = vpack.c.bf16 %v1176_v47, %v1108_v52  ;;  %v1181_v61 = vpack.c.bf16 %v1177_v48, %v1109_v53  ;;  %v1182_v62 = vpack.c.bf16 %v1178_v50, %v1110_v54  ;;  %v1183_v63 = vpack.c.bf16 %v1179_v51, %v1111_v55  ;;  %v881_v47 = vpop.f32.mrb[0].mxu1 }
 0x21b   : > { %v1576_v1 = vrot.slane %v1568_v56, %v3705_v38  ;;  %v1583_v2 = vrot.slane %v1569_v57, %v3705_v38  ;;  %v1592_v3 = vrot.slane %v1584_v58, %v3705_v38  ;;  %v1599_v4 = vrot.slane %v1585_v59, %v3705_v38  ;;  %v2848_v48 = vpop.f32.mrb[1].mxu1 }
 0x21c   : > { %1185 = vst.msk [vmem:[#allocation2] sm:$0xff] %vm1184_vm2, %v1180_v60  ;;  %1186 = vst.msk [vmem:[#allocation2 + $0x8] sm:$0xff] %vm1184_vm2, %v1181_v61  ;;  %v884_v50 = vpop.f32.mrb[2].mxu1 }
 0x21d   : > { %1187 = vst.msk [vmem:[#allocation2 + $0x10] sm:$0xff] %vm1184_vm2, %v1182_v62  ;;  %1188 = vst.msk [vmem:[#allocation2 + $0x18] sm:$0xff] %vm1184_vm2, %v1183_v63  ;;  %v1600_v19 = vcombine.low %v1576_v1, %v1592_v3  ;;  %v1601_v5 = vcombine.high %v1576_v1, %v1592_v3  ;;  %v1616_v7 = vcombine.low %v1583_v2, %v1599_v4  ;;  %v2849_v51 = vpop.f32.mrb[3].mxu1 }
 0x21e   : > { %v1617_v8 = vcombine.high %v1583_v2, %v1599_v4 }
 0x21f   : > { %v1608_v9 = vrot.slane %v1600_v19, %v3711_v49  ;;  %v1615_v10 = vrot.slane %v1601_v5, %v3711_v49  ;;  %v1624_v11 = vrot.slane %v1616_v7, %v3711_v49 }
 0x220   : > { %v1631_v12 = vrot.slane %v1617_v8, %v3711_v49 }
 0x221   : > { %v1636_v13 = vcombine.low %v1608_v9, %v1615_v10  ;;  %v2762_v14 = vcombine.high %v1608_v9, %v1615_v10  ;;  %v2745_v9 = vld [vmem:[#allocation10] ss:$0 sm:$0xff] }
 0x222   : > { %v1652_v15 = vcombine.low %v1624_v11, %v1631_v12  ;;  %v2763_v16 = vcombine.high %v1624_v11, %v1631_v12  ;;  %v885_v10 = vadd.f32 %v2745_v9, %v884_v50  ;;  %v882_v11 = vadd.f32 %v2745_v9, %v881_v47 }
 0x223   : > { %v1643_v17 = vrot.slane %v1636_v13, %v3705_v38  ;;  %v1651_v18 = vrot.slane %v2762_v14, %v3705_v38  ;;  %v1708_v22 = vld [vmem:[#allocation2] sm:$0xff]  ;;  %v1709_v23 = vld [vmem:[#allocation2 + $0x8] sm:$0xff] }
 0x224   : > { %v1659_v20 = vrot.slane %v1652_v15, %v3705_v38  ;;  %v1667_v21 = vrot.slane %v2763_v16, %v3705_v38  ;;  %v1721_v24 = vsel %vm1184_vm2, %v1708_v22, 0  ;;  %v1767_v25 = vsel %vm1184_vm2, %v1709_v23, 0  ;;  %v1710_v34 = vld [vmem:[#allocation2 + $0x10] sm:$0xff]  ;;  %v1711_v35 = vld [vmem:[#allocation2 + $0x18] sm:$0xff] }
 0x225   : > { %v1668_v26 = vcombine.low %v1643_v17, %v1651_v18  ;;  %2859 = vmatpush3.bf16.xpose.msra.mxu1 %v1721_v24  ;;  %2865 = vmatpush3.bf16.xpose.msra.mxu0 %v1767_v25  ;;  %v1669_v28 = vcombine.high %v1643_v17, %v1651_v18  ;;  %v1813_v41 = vsel %vm1184_vm2, %v1710_v34, 0  ;;  %v1859_v42 = vsel %vm1184_vm2, %v1711_v35, 0 }
 0x226   : > { %v1684_v27 = vcombine.low %v1659_v20, %v1667_v21  ;;  %2870 = vmatprep.subr.bf16.mxu1 %v3327_v0  ;;  %v1685_v29 = vcombine.high %v1659_v20, %v1667_v21  ;;  %2876 = vmatprep.subr.bf16.mxu0 %v3327_v0 }
 0x227   : > { %v1676_v30 = vrot.slane %v1668_v26, %v3711_v49  ;;  %v1683_v39 = vrot.slane %v1669_v28, %v3711_v49 }
 0x228   : > { %v1692_v31 = vrot.slane %v1684_v27, %v3711_v49  ;;  %v1699_v40 = vrot.slane %v1685_v29, %v3711_v49 }
 0x22a   : > { %v1700_v32 = vcombine.low %v1676_v30, %v1692_v31  ;;  %v1701_v33 = vcombine.high %v1676_v30, %v1692_v31  ;;  %v1702_v43 = vcombine.low %v1683_v39, %v1699_v40  ;;  %v1703_v44 = vcombine.high %v1683_v39, %v1699_v40 }
 0x22c   : > { %v1704_v36 = vpack.c.bf16 %v1700_v32, %v1700_v32  ;;  %v1705_v37 = vpack.c.bf16 %v1701_v33, %v1701_v33  ;;  %v1706_v45 = vpack.c.bf16 %v1702_v43, %v1702_v43  ;;  %v1707_v46 = vpack.c.bf16 %v1703_v44, %v1703_v44 }
 0x22e   : > { %2861 = vmatmul.mubr.msk.bf16.vlgmr.msra.gmra.mrb[4].mxu1 %vm1184_vm2, %v1704_v36  ;;  %2867 = vmatmul.mubr.msk.bf16.vlgmr.msra.gmra.mrb[8].mxu0 %vm1184_vm2, %v1705_v37 }
 0x22f   : > { %2871 = vmatpush3.bf16.xpose.msra.mxu1 %v1813_v41  ;;  %2877 = vmatpush3.bf16.xpose.msra.mxu0 %v1859_v42 }
 0x230   : > { %2872 = vmatprep.mubr.msk.bf16.mxu1 %vm3328_vm0, %v3327_v0  ;;  %2878 = vmatprep.mubr.msk.bf16.mxu0 %vm3328_vm0, %v3327_v0 }
 0x231   : > { %2882 = vmatprep.subr.bf16.mxu1 %v3327_v0  ;;  %2888 = vmatprep.subr.bf16.mxu0 %v3327_v0 }
 0x236   : > { %2873 = vmatmul.mubr.msk.bf16.vlgmr.msra.gmra.mrb[8].mxu1 %vm1184_vm2, %v1706_v45  ;;  %2879 = vmatmul.mubr.msk.bf16.vlgmr.msra.gmra.mrb[12].mxu0 %vm1184_vm2, %v1707_v46 }
 0x237   : > { %2884 = vmatprep.mubr.msk.bf16.mxu1 %vm3328_vm0, %v3327_v0  ;;  %2890 = vmatprep.mubr.msk.bf16.mxu0 %vm3328_vm0, %v3327_v0 }
 0x301   : > { %v1757_v52 = vpop.f32.mrb[4].mxu1  ;;  %v1803_v53 = vpop.f32.mrb[8].mxu0 }
 0x302   : > { %v2862_v54 = vpop.f32.mrb[5].mxu1  ;;  %v2868_v55 = vpop.f32.mrb[9].mxu0  ;;  %v1902_v56 = vsel %vm1901_vm3, %v1757_v52, -inf  ;;  %v1905_v57 = vsel %vm1901_vm3, %v1803_v53, -inf }
 0x303   : > { %1903 = vmax.xlane.f32.xlu1 %v1902_v56  ;;  %v1760_v58 = vpop.f32.mrb[6].mxu1  ;;  %1906 = vmax.xlane.f32.xlu0 %v1905_v57  ;;  %v1806_v59 = vpop.f32.mrb[10].mxu0 }
 0x304   : > { %v2863_v60 = vpop.f32.mrb[7].mxu1  ;;  %v2869_v61 = vpop.f32.mrb[11].mxu0 }
 0x309   : > { %v1849_v62 = vpop.f32.mrb[8].mxu1  ;;  %v1895_v63 = vpop.f32.mrb[12].mxu0 }
 0x30a   : > { %v2874_v1 = vpop.f32.mrb[9].mxu1  ;;  %v2880_v2 = vpop.f32.mrb[13].mxu0  ;;  %v1908_v3 = vsel %vm1901_vm3, %v1849_v62, -inf  ;;  %v1911_v4 = vsel %vm1901_vm3, %v1895_v63, -inf }
 0x30b   : > { %v1852_v19 = vpop.f32.mrb[10].mxu1  ;;  %1909 = vmax.xlane.f32.xlu0 %v1908_v3  ;;  %1912 = vmax.xlane.f32.xlu1 %v1911_v4  ;;  %v1898_v5 = vpop.f32.mrb[14].mxu0 }
 0x30c   : > { %v2875_v7 = vpop.f32.mrb[11].mxu1  ;;  %v2881_v8 = vpop.f32.mrb[15].mxu0 }
 0x31c   : > { %1193 = vrot.lane.b32.xlu1 %v885_v10, %s3330_s18 }
 0x320   : > { %1197 = vrot.lane.b32.xlu1 %v882_v11, %s3329_s17 }
 0x321   : > { %1191 = vrot.lane.b32.xlu0 %v882_v11, %s3330_s18 }
 0x324   : > { %1203 = vrot.lane.b32.xlu1 %v882_v11, %s3331_s19 }
 0x325   : > { %1199 = vrot.lane.b32.xlu0 %v885_v10, %s3329_s17  ;;  %s714_s17 = sand.u32 1, %s4067_s26  }
 0x326   : > { %s2734_s18 = sshll.u32 %s714_s17, 3  ;;  %s2560_s26 = scalar_lea.sflag [#allocation6], %s714_s17 }
 0x327   : > { %s716_s5 = scalar_lea.vmem [#allocation13], %s2734_s18  ;;  %s3232_s18 = sshll.u32 %s3337_s21, 4  ;;  %s3233_s18 = int_to_ptr.vmem [resolvable:$false] %s3232_s18 }
 0x328   : > { %s2574_s22 = sshll.u32 %s716_s5, 4  ;;  %s3946_s22 = int_to_ptr.vmem [resolvable:$true] %s2574_s22 }
 0x329   : > { %1205 = vrot.lane.b32.xlu0 %v885_v10, %s3331_s19  ;;  %s3228_s2 = scalar_lea.vmem %s3946_s22, 128  ;;  %s3234_s19 = scalar_lea.vmem %s3233_s18, 256 }
 0x32a   : > { %p3229_p8 = scmp.ne.s32.totalorder %s3946_s22, %s3228_s2  ;;  %p3235_p2 = scmp.lt.s32.totalorder %s3946_s22, %s3233_s18 }
 0x32b   : > { %p3236_p3 = scmp.lt.s32.totalorder %s3234_s19, %s3228_s2 }
 0x32c   : > { %p3230_p11 = pnand %p3229_p8, %p4073_p10 }
 0x32d   : > { %p3237_p5 = por %p3236_p3, %p3235_p2 }
 0x32e   : > { %p3231_p0 = pneg %p3230_p11 }
 0x330   : > { %p3238_p6 = pnand %p3237_p5, %p3231_p0 }
 0x390   : > { %v1904_v12 = vpop.xlane.xlu1 %1903  ;;  %v1907_v13 = vpop.xlane.xlu0 %1906 }
 0x391   : > { %v1914_v14 = vsub.f32 %v1757_v52, %v1904_v12  ;;  %v1915_v15 = vsub.f32 %v1803_v53, %v1907_v13 }
 0x393   : > { %v1918_v16 = vmul.f32 1.442695, %v1914_v14  ;;  %v1920_v17 = vmul.f32 1.442695, %v1915_v15 }
 0x395   : > { %3068 = vpow2.f32 %v1918_v16 }
 0x396   : > { %3070 = vpow2.f32 %v1920_v17 }
 0x398   : > { %v1910_v18 = vpop.xlane.xlu0 %1909  ;;  %v1913_v20 = vpop.xlane.xlu1 %1912 }
 0x399   : > { %v1916_v21 = vsub.f32 %v1849_v62, %v1910_v18  ;;  %v1917_v27 = vsub.f32 %v1895_v63, %v1913_v20 }
 0x39b   : > { %v1922_v22 = vmul.f32 1.442695, %v1916_v21  ;;  %v1924_v34 = vmul.f32 1.442695, %v1917_v27 }
 0x39c   : > { %v1192_v23 = vpop.permute.xlu0 %1191  ;;  %v1194_v24 = vpop.permute.xlu1 %1193 }
 0x39d   : > { %3072 = vpow2.f32 %v1922_v22 }
 0x39e   : > { %3074 = vpow2.f32 %v1924_v34 }
 0x39f   : > { %v3795_v25 = vpop.eup %3068 }
 0x3a0   : > { %v3797_v26 = vpop.eup %3070  ;;  %v1200_v28 = vpop.permute.xlu0 %1199  ;;  %v1926_v30 = vsel %vm1901_vm3, %v3795_v25, 0.0 }
 0x3a1   : > { %v1198_v29 = vpop.permute.xlu1 %1197  ;;  %1927 = vadd.xlane.f32.xlu1 %v1926_v30  ;;  %v1277_v31 = vcombine.low %v885_v10, %v1200_v28  ;;  %v1278_v32 = vcombine.high %v885_v10, %v1200_v28  ;;  %v1929_v33 = vsel %vm1901_vm3, %v3797_v26, 0.0 }
 0x3a2   : > { %1930 = vadd.xlane.f32.xlu0 %v1929_v33  ;;  %v1209_v35 = vcombine.low %v882_v11, %v1198_v29  ;;  %v1210_v36 = vcombine.high %v882_v11, %v1198_v29 }
 0x3a3   : > { %v1285_v44 = vrot.slane %v1277_v31, %v3705_v38  ;;  %v1292_v45 = vrot.slane %v1278_v32, %v3705_v38 }
 0x3a4   : > { %v1206_v37 = vpop.permute.xlu0 %1205  ;;  %v1217_v52 = vrot.slane %v1209_v35, %v3705_v38  ;;  %v1224_v53 = vrot.slane %v1210_v36, %v3705_v38 }
 0x3a5   : > { %v1204_v39 = vpop.permute.xlu1 %1203  ;;  %v1293_v40 = vcombine.low %v1194_v24, %v1206_v37  ;;  %v1294_v41 = vcombine.high %v1194_v24, %v1206_v37 }
 0x3a6   : > { %v1225_v42 = vcombine.low %v1192_v23, %v1204_v39  ;;  %v1226_v43 = vcombine.high %v1192_v23, %v1204_v39 }
 0x3a7   : > { %v3805_v46 = vpop.eup %3072  ;;  %v1301_v47 = vrot.slane %v1293_v40, %v3705_v38  ;;  %v1308_v48 = vrot.slane %v1294_v41, %v3705_v38 }
 0x3a8   : > { %v1233_v50 = vrot.slane %v1225_v42, %v3705_v38  ;;  %v1240_v51 = vrot.slane %v1226_v43, %v3705_v38  ;;  %v1932_v54 = vsel %vm1901_vm3, %v3805_v46, 0.0  ;;  %v3831_v31 = vpop.eup %3074 }
 0x3a9   : > { %v1309_v55 = vcombine.low %v1285_v44, %v1301_v47  ;;  %v1310_v56 = vcombine.high %v1285_v44, %v1301_v47  ;;  %v1325_v57 = vcombine.low %v1292_v45, %v1308_v48  ;;  %v1326_v58 = vcombine.high %v1292_v45, %v1308_v48  ;;  %1933 = vadd.xlane.f32.xlu0 %v1932_v54 }
 0x3aa   : > { %v1241_v59 = vcombine.low %v1217_v52, %v1233_v50  ;;  %v1242_v60 = vcombine.high %v1217_v52, %v1233_v50  ;;  %v1257_v61 = vcombine.low %v1224_v53, %v1240_v51  ;;  %v1258_v62 = vcombine.high %v1224_v53, %v1240_v51 }
 0x3ab   : > { %v1317_v63 = vrot.slane %v1309_v55, %v3711_v49  ;;  %v1324_v1 = vrot.slane %v1310_v56, %v3711_v49  ;;  %v1333_v2 = vrot.slane %v1325_v57, %v3711_v49  ;;  %v1340_v3 = vrot.slane %v1326_v58, %v3711_v49 }
 0x3ac   : > { %v1249_v4 = vrot.slane %v1241_v59, %v3711_v49  ;;  %v1256_v19 = vrot.slane %v1242_v60, %v3711_v49  ;;  %v1265_v5 = vrot.slane %v1257_v61, %v3711_v49  ;;  %v1272_v7 = vrot.slane %v1258_v62, %v3711_v49 }
 0x3ad   : > { %v1413_v8 = vcombine.low %v1317_v63, %v1324_v1  ;;  %v2756_v9 = vcombine.high %v1317_v63, %v1324_v1  ;;  %v1429_v10 = vcombine.low %v1333_v2, %v1340_v3  ;;  %v2757_v11 = vcombine.high %v1333_v2, %v1340_v3 }
 0x3ae   : > { %v1345_v12 = vcombine.low %v1249_v4, %v1256_v19  ;;  %v2754_v13 = vcombine.high %v1249_v4, %v1256_v19  ;;  %v1361_v14 = vcombine.low %v1265_v5, %v1272_v7  ;;  %v2755_v15 = vcombine.high %v1265_v5, %v1272_v7 }
 0x3af   : > { %v1420_v16 = vrot.slane %v1413_v8, %v3705_v38  ;;  %v1428_v17 = vrot.slane %v2756_v9, %v3705_v38  ;;  %v1436_v18 = vrot.slane %v1429_v10, %v3705_v38  ;;  %v1444_v20 = vrot.slane %v2757_v11, %v3705_v38 }
 0x3b0   : > { %v1352_v21 = vrot.slane %v1345_v12, %v3705_v38  ;;  %v1360_v22 = vrot.slane %v2754_v13, %v3705_v38  ;;  %v1368_v23 = vrot.slane %v1361_v14, %v3705_v38  ;;  %v1376_v24 = vrot.slane %v2755_v15, %v3705_v38 }
 0x3b1   : > { %v1445_v27 = vcombine.low %v1420_v16, %v1428_v17  ;;  %v1446_v28 = vcombine.high %v1420_v16, %v1428_v17  ;;  %v1461_v29 = vcombine.low %v1436_v18, %v1444_v20  ;;  %v1462_v30 = vcombine.high %v1436_v18, %v1444_v20 }
 0x3b2   : > { %v1377_v32 = vcombine.low %v1352_v21, %v1360_v22  ;;  %v1378_v33 = vcombine.high %v1352_v21, %v1360_v22  ;;  %v1393_v34 = vcombine.low %v1368_v23, %v1376_v24  ;;  %v1394_v35 = vcombine.high %v1368_v23, %v1376_v24 }
 0x3b3   : > { %v1453_v36 = vrot.slane %v1445_v27, %v3711_v49  ;;  %v1460_v37 = vrot.slane %v1446_v28, %v3711_v49  ;;  %v1469_v39 = vrot.slane %v1461_v29, %v3711_v49  ;;  %v1476_v40 = vrot.slane %v1462_v30, %v3711_v49 }
 0x3b4   : > { %v1385_v41 = vrot.slane %v1377_v32, %v3711_v49  ;;  %v1392_v42 = vrot.slane %v1378_v33, %v3711_v49  ;;  %v1401_v43 = vrot.slane %v1393_v34, %v3711_v49  ;;  %v1408_v44 = vrot.slane %v1394_v35, %v3711_v49 }
 0x3b5   : > { %v1477_v45 = vcombine.low %v1453_v36, %v1469_v39  ;;  %v1478_v47 = vcombine.high %v1453_v36, %v1469_v39  ;;  %v1479_v48 = vcombine.low %v1460_v37, %v1476_v40  ;;  %v1480_v50 = vcombine.high %v1460_v37, %v1476_v40 }
 0x3b6   : > { %v1409_v51 = vcombine.low %v1385_v41, %v1401_v43  ;;  %v1410_v52 = vcombine.high %v1385_v41, %v1401_v43  ;;  %v1411_v53 = vcombine.low %v1392_v42, %v1408_v44  ;;  %v1412_v54 = vcombine.high %v1392_v42, %v1408_v44  ;;  %v3060_v42 = vld [vmem:[%s4001_s9] sm:$0xff]  }
 0x3b7   : > { %v1935_v55 = vsel %vm1901_vm3, %v3831_v31, 0.0 }
 0x3b8   : > { %v1481_v56 = vpack.c.bf16 %v1477_v45, %v1409_v51  ;;  %v1482_v57 = vpack.c.bf16 %v1478_v47, %v1410_v52  ;;  %v1483_v58 = vpack.c.bf16 %v1479_v48, %v1411_v53  ;;  %v1484_v59 = vpack.c.bf16 %v1480_v50, %v1412_v54  ;;  %1936 = vadd.xlane.f32.xlu1 %v1935_v55  ;;  %v3061_v53 = vld [vmem:[%s4001_s9 + $0x8] sm:$0xff]  }
 0x3ba   : > { %1485 = vst.msk [vmem:[#allocation3] sm:$0xff] %vm1184_vm2, %v1481_v56  ;;  %1486 = vst.msk [vmem:[#allocation3 + $0x8] sm:$0xff] %vm1184_vm2, %v1482_v57 }
 0x3bb   : > { %1487 = vst.msk [vmem:[#allocation3 + $0x10] sm:$0xff] %vm1184_vm2, %v1483_v58  ;;  %1488 = vst.msk [vmem:[#allocation3 + $0x18] sm:$0xff] %vm1184_vm2, %v1484_v59 }
 0x3c1   : > { %v1712_v60 = vld [vmem:[#allocation3] sm:$0xff]  ;;  %v1713_v61 = vld [vmem:[#allocation3 + $0x8] sm:$0xff] }
 0x3c2   : > { %2883 = vmatpush3.bf16.msra.mxu1 %v1712_v60  ;;  %2889 = vmatpush3.bf16.msra.mxu0 %v1713_v61  ;;  %v1714_v8 = vld [vmem:[#allocation3 + $0x10] sm:$0xff]  ;;  %v1715_v9 = vld [vmem:[#allocation3 + $0x18] sm:$0xff] }
 0x3c3   : > { %2894 = vmatprep.subr.bf16.mxu1 %v3327_v0  ;;  %2900 = vmatprep.subr.bf16.mxu0 %v3327_v0 }
 0x42e   : > { %v1928_v62 = vpop.xlane.xlu1 %1927 }
 0x42f   : > { %3076 = vrcp.f32 %v1928_v62  ;;  %v1931_v63 = vpop.xlane.xlu0 %1930 }
 0x430   : > { %3078 = vrcp.f32 %v1931_v63 }
 0x436   : > { %v1934_v1 = vpop.xlane.xlu0 %1933 }
 0x437   : > { %3080 = vrcp.f32 %v1934_v1 }
 0x439   : > { %v3077_v2 = vpop.eup %3076 }
 0x43a   : > { %v1942_v3 = vmul.f32 %v3077_v2, %v3795_v25  ;;  %v3079_v4 = vpop.eup %3078 }
 0x43b   : > { %v1943_v19 = vmul.f32 %v3079_v4, %v3797_v26 }
 0x43c   : > { %v1946_v5 = vpack.c.bf16 %v1942_v3, %v1942_v3 }
 0x43d   : > { %v1947_v7 = vpack.c.bf16 %v1943_v19, %v1943_v19 }
 0x43e   : > { %2885 = vmatmul.mubr.msk.bf16.vlgmr.msra.gmra.mrb[12].mxu1 %vm1901_vm3, %v1946_v5 }
 0x43f   : > { %2895 = vmatpush3.bf16.msra.mxu1 %v1714_v8  ;;  %2896 = vmatprep.mubr.msk.bf16.mxu1 %vm3328_vm0, %v3327_v0 }
 0x440   : > { %2891 = vmatmul.mubr.msk.bf16.vlgmr.msra.gmra.mrb[16].mxu0 %vm1901_vm3, %v1947_v7  ;;  %2906 = vmatprep.subr.bf16.mxu1 %v3327_v0 }
 0x441   : > { %v3081_v10 = vpop.eup %3080  ;;  %2901 = vmatpush3.bf16.msra.mxu0 %v1715_v9  ;;  %2902 = vmatprep.mubr.msk.bf16.mxu0 %vm3328_vm0, %v3327_v0 }
 0x442   : > { %v1944_v25 = vmul.f32 %v3081_v10, %v3805_v46  ;;  %2914 = vmatprep.subr.bf16.mxu0 %v3327_v0 }
 0x444   : > { %v1948_v26 = vpack.c.bf16 %v1944_v25, %v1944_v25 }
 0x445   : > { %v1937_v11 = vpop.xlane.xlu1 %1936 }
 0x446   : > { %3082 = vrcp.f32 %v1937_v11  ;;  %2897 = vmatmul.mubr.msk.bf16.vlgmr.msra.gmra.mrb[16].mxu1 %vm1901_vm3, %v1948_v26 }
 0x447   : > { %2910 = vmatprep.mubr.msk.bf16.mxu1 %vm3328_vm0, %v3327_v0  ;;  %2907 = vmatpush3.bf16.msra.mxu1 %v3060_v42 }
 0x448   : > { %2908 = vmatprep.subr.bf16.mxu1 %v3327_v0 }
 0x44b   : > { %2909 = vmatpush3.bf16.msra.mxu1 %v3061_v53 }
 0x44c   : > { %2922 = vmatprep.subr.bf16.mxu1 %v3327_v0 }
 0x450   : > { %v3083_v12 = vpop.eup %3082 }
 0x451   : > { %v1945_v13 = vmul.f32 %v3083_v12, %v3831_v31 }
 0x453   : > { %v1949_v14 = vpack.c.bf16 %v1945_v13, %v1945_v13 }
 0x455   : > { %2903 = vmatmul.mubr.msk.bf16.vlgmr.msra.gmra.mrb[20].mxu0 %vm1901_vm3, %v1949_v14  ;;  %v2774_v14 = vld [vmem:[%s4002_s10] ss:$0 sm:$0xff] }
 0x456   : > { %2918 = vmatprep.mubr.msk.bf16.mxu0 %vm3328_vm0, %v3327_v0 }
 0x511   : > { %v1987_v46 = vpop.f32.mrb[12].mxu1 }
 0x512   : > { %v2886_v15 = vpop.f32.mrb[13].mxu1 }
 0x513   : > { %v2030_v16 = vpop.f32.mrb[16].mxu0  ;;  %v1990_v17 = vpop.f32.mrb[14].mxu1 }
 0x514   : > { %v2892_v18 = vpop.f32.mrb[17].mxu0  ;;  %v2887_v20 = vpop.f32.mrb[15].mxu1 }
 0x515   : > { %v2033_v21 = vpop.f32.mrb[18].mxu0 }
 0x516   : > { %v2893_v22 = vpop.f32.mrb[19].mxu0 }
 0x519   : > { %v2073_v23 = vpop.f32.mrb[16].mxu1 }
 0x51a   : > { %v2122_v24 = vcombine.low %v1987_v46, %v2073_v23  ;;  %v2123_v27 = vcombine.high %v1987_v46, %v2073_v23  ;;  %v2898_v28 = vpop.f32.mrb[17].mxu1 }
 0x51b   : > { %v2076_v29 = vpop.f32.mrb[18].mxu1  ;;  %v3064_v28 = vld [vmem:[%s4005_s13] sm:$0xff]  }
 0x51c   : > { %v2899_v30 = vpop.f32.mrb[19].mxu1  ;;  %v2130_v32 = vrot.slane %v2122_v24, %v3705_v38  ;;  %v2137_v33 = vrot.slane %v2123_v27, %v3705_v38  ;;  %v3062_v24 = vld [vmem:[#allocation12] sm:$0xff]   ;;  %v3063_v27 = vld [vmem:[#allocation12 + $0x8] sm:$0xff]  }
 0x51d   : > { %2915 = vmatpush3.bf16.msra.mxu0 %v3062_v24 }
 0x51e   : > { %2916 = vmatprep.subr.bf16.mxu0 %v3327_v0 }
 0x521   : > { %2917 = vmatpush3.bf16.msra.mxu0 %v3063_v27 }
 0x528   : > { %v2116_v31 = vpop.f32.mrb[20].mxu0 }
 0x529   : > { %v2138_v34 = vcombine.low %v2030_v16, %v2116_v31  ;;  %v2139_v35 = vcombine.high %v2030_v16, %v2116_v31  ;;  %v2904_v36 = vpop.f32.mrb[21].mxu0 }
 0x52a   : > { %v2119_v37 = vpop.f32.mrb[22].mxu0 }
 0x52b   : > { %v2146_v39 = vrot.slane %v2138_v34, %v3705_v38  ;;  %v2153_v40 = vrot.slane %v2139_v35, %v3705_v38  ;;  %v2905_v41 = vpop.f32.mrb[23].mxu0 }
 0x52c   : > { %v2779_v41 = vld [vmem:[%s4008_s16] ss:$0 sm:$0xff] }
 0x52d   : > { %v2154_v43 = vcombine.low %v2130_v32, %v2146_v39  ;;  %v2155_v44 = vcombine.high %v2130_v32, %v2146_v39  ;;  %v2170_v45 = vcombine.low %v2137_v33, %v2153_v40  ;;  %v2171_v47 = vcombine.high %v2137_v33, %v2153_v40  ;;  %v2778_v39 = vld [vmem:[%s4007_s15] ss:$0 sm:$0xff] }
 0x52f   : > { %v2162_v48 = vrot.slane %v2154_v43, %v3711_v49  ;;  %v2169_v50 = vrot.slane %v2155_v44, %v3711_v49  ;;  %v2178_v51 = vrot.slane %v2170_v45, %v3711_v49  ;;  %v2185_v52 = vrot.slane %v2171_v47, %v3711_v49  ;;  %v3066_v45 = vld [vmem:[%s4005_s13 + $0x10] sm:$0xff]   ;;  %v3067_v47 = vld [vmem:[%s4005_s13 + $0x18] sm:$0xff]  }
 0x531   : > { %v2190_v54 = vcombine.low %v2162_v48, %v2169_v50  ;;  %v2772_v55 = vcombine.high %v2162_v48, %v2169_v50  ;;  %v2206_v56 = vcombine.low %v2178_v51, %v2185_v52  ;;  %v2773_v57 = vcombine.high %v2178_v51, %v2185_v52  ;;  %v2780_v48 = vld [vmem:[%s4004_s12] ss:$0 sm:$0xff] }
 0x533   : > { %v2197_v58 = vrot.slane %v2190_v54, %v3705_v38  ;;  %v2205_v59 = vrot.slane %v2772_v55, %v3705_v38  ;;  %v2213_v60 = vrot.slane %v2206_v56, %v3705_v38  ;;  %v2221_v61 = vrot.slane %v2773_v57, %v3705_v38 }
 0x535   : > { %v2223_v62 = vcombine.high %v2197_v58, %v2205_v59  ;;  %v2239_v63 = vcombine.high %v2213_v60, %v2221_v61  ;;  %v2222_v1 = vcombine.low %v2197_v58, %v2205_v59  ;;  %v2238_v2 = vcombine.low %v2213_v60, %v2221_v61 }
 0x537   : > { %v2237_v3 = vrot.slane %v2223_v62, %v3711_v49  ;;  %v2253_v4 = vrot.slane %v2239_v63, %v3711_v49  ;;  %v2230_v19 = vrot.slane %v2222_v1, %v3711_v49  ;;  %v2246_v5 = vrot.slane %v2238_v2, %v3711_v49 }
 0x539   : > { %v2256_v7 = vcombine.low %v2237_v3, %v2253_v4  ;;  %v2255_v8 = vcombine.high %v2230_v19, %v2246_v5  ;;  %v2257_v9 = vcombine.high %v2237_v3, %v2253_v4  ;;  %v2254_v10 = vcombine.low %v2230_v19, %v2246_v5 }
 0x53b   : > { %2263 = vrot.lane.b32.xlu1 %v2256_v7, %s3334_s3  ;;  %2259 = vrot.lane.b32.xlu0 %v2255_v8, %s3335_s20  ;;  %s4071_s20 = sld [smem:[#allocation35_spill]] }
 0x53f   : > { %2267 = vrot.lane.b32.xlu1 %v2257_v9, %s3336_s25 }
 0x541   : > { %s4072_s25 = smov %s4071_s20 }
 0x5ad   : > { %v2264_v38 = vpop.permute.xlu1 %2263  ;;  %v2260_v25 = vpop.permute.xlu0 %2259 }
 0x5ae   : > { %v2270_v26 = vsel %vm1184_vm2, %v2254_v10, %v2260_v25  ;;  %v2790_v25 = vld [vmem:[%s4069_s14] ss:$0 sm:$0xff] }
 0x5af   : > { %v2271_v12 = vsel %vm1901_vm3, %v2270_v26, %v2264_v38 }
 0x5b1   : > { %v2268_v11 = vpop.permute.xlu1 %2267 }
 0x5b2   : > { %v2273_v13 = vsel %vm2272_vm4, %v2271_v12, %v2268_v11  ;;  %v2791_v11 = vld [vmem:[%s4070_s23] ss:$0 sm:$0xff] }
 0x5b3   : > { %v2274_v49 = vpack.c.bf16 %v2273_v13, %v2273_v13 }
 0x5b5   : > { %2911 = vmatmul.mubr.msk.bf16.vlgmr.msra.gmra.mrb[20].mxu1 %vm771_vm1, %v2274_v49 }
 0x5b6   : > { %2930 = vmatprep.mubr.msk.bf16.mxu1 %vm3328_vm0, %v3327_v0  ;;  %2923 = vmatpush3.bf16.msra.mxu1 %v3064_v28 }
 0x5b7   : > { %2924 = vmatprep.subr.bf16.mxu1 %v3327_v0 }
 0x688   : > { %v2335_v46 = vpop.f32.mrb[20].mxu1 }
 0x689   : > { %v2336_v15 = vadd.f32 %v2774_v14, %v2335_v46  ;;  %v2912_v16 = vpop.f32.mrb[21].mxu1 }
 0x68a   : > { %v2338_v17 = vpop.f32.mrb[22].mxu1 }
 0x68b   : > { %v2341_v18 = vadd.f32 %v2336_v15, %v3659_v6  ;;  %v2913_v20 = vpop.f32.mrb[23].mxu1  ;;  %v3065_v6 = vld [vmem:[%s4005_s13 + $0x8] sm:$0xff]  }
 0x68c   : > { %2925 = vmatpush3.bf16.msra.mxu1 %v3065_v6 }
 0x68d   : > { %v2344_v21 = vsel %vm771_vm1, %v2341_v18, 0.0  ;;  %v2349_v22 = vmul.f32 %v2341_v18, %v2341_v18  ;;  %2926 = vmatprep.subr.bf16.mxu1 %v3327_v0 }
 0x68e   : > { %2345 = vadd.xlane.f32.xlu0 %v2344_v21 }
 0x68f   : > { %v2350_v23 = vsel %vm771_vm1, %v2349_v22, 0.0 }
 0x690   : > { %2351 = vadd.xlane.f32.xlu1 %v2350_v23  ;;  %2927 = vmatpush3.bf16.msra.mxu1 %v3066_v45 }
 0x691   : > { %2928 = vmatprep.subr.bf16.mxu1 %v3327_v0  ;;  %v2784_v0 = vld [vmem:[%s4066_s28] ss:$0 sm:$0xff]  ;;  %s3944_s28 = scalar_lea.hbm %s4071_s20, %s2793_s29 }
 0x694   : > { %2929 = vmatpush3.bf16.msra.mxu1 %v3067_v47 }
 0x71b   : > { %v2346_v29 = vpop.xlane.xlu0 %2345 }
 0x71c   : > { %v2348_v30 = vmul.f32 0.03125, %v2346_v29 }
 0x71d   : > { %v2352_v31 = vpop.xlane.xlu1 %2351 }
 0x71e   : > { %v2354_v32 = vmul.f32 %v2348_v30, %v2348_v30  ;;  %v2353_v33 = vmul.f32 0.03125, %v2352_v31  ;;  %v2356_v36 = vsub.f32 %v2341_v18, %v2348_v30 }
 0x720   : > { %v2355_v34 = vsub.f32 %v2353_v33, %v2354_v32 }
 0x722   : > { %v2357_v35 = vadd.f32 1e-05, %v2355_v34 }
 0x724   : > { %3084 = vrsqrt.f32 %v2357_v35 }
 0x72e   : > { %v3085_v37 = vpop.eup %3084 }
 0x72f   : > { %v2359_v40 = vmul.f32 %v3085_v37, %v2356_v36 }
 0x731   : > { %v2366_v42 = vmul.f32 %v2778_v39, %v2359_v40 }
 0x733   : > { %v2373_v43 = vadd.f32 %v2779_v41, %v2366_v42 }
 0x735   : > { %v2374_v44 = vpack.c.bf16 %v2373_v43, %v2373_v43 }
 0x737   : > { %2919 = vmatmul.mubr.msk.bf16.vlgmr.msra.gmra.mrb[24].mxu0 %vm771_vm1, %v2374_v44 }
 0x80a   : > { %v2435_v50 = vpop.f32.mrb[24].mxu0 }
 0x80b   : > { %v2436_v51 = vadd.f32 %v2780_v48, %v2435_v50  ;;  %v2920_v52 = vpop.f32.mrb[25].mxu0 }
 0x80c   : > { %v2438_v53 = vpop.f32.mrb[26].mxu0 }
 0x80d   : > { %v2441_v54 = vmax.f32 %v2436_v51, 0.0  ;;  %v2921_v55 = vpop.f32.mrb[27].mxu0 }
 0x80f   : > { %v2442_v56 = vpack.c.bf16 %v2441_v54, %v2441_v54 }
 0x811   : > { %2931 = vmatmul.mubr.msk.bf16.vlgmr.msra.gmra.mrb[24].mxu1 %vm2482_vm5, %v2442_v56 }
 0x8e4   : > { %v2520_v57 = vpop.f32.mrb[24].mxu1 }
 0x8e5   : > { %v2521_v58 = vadd.f32 %v2784_v0, %v2520_v57  ;;  %v2932_v59 = vpop.f32.mrb[25].mxu1 }
 0x8e6   : > { %v2523_v60 = vpop.f32.mrb[26].mxu1 }
 0x8e7   : > { %v2526_v61 = vadd.f32 %v2521_v58, %v2373_v43  ;;  %v2933_v62 = vpop.f32.mrb[27].mxu1 }
 0x8e9   : > { %v2529_v63 = vsel %vm771_vm1, %v2526_v61, 0.0  ;;  %v2533_v1 = vmul.f32 %v2526_v61, %v2526_v61 }
 0x8ea   : > { %2530 = vadd.xlane.f32.xlu0 %v2529_v63 }
 0x8eb   : > { %v2534_v2 = vsel %vm771_vm1, %v2533_v1, 0.0 }
 0x8ee   : > { %2535 = vadd.xlane.f32.xlu0 %v2534_v2 }
 0x977   : > { %v2531_v3 = vpop.xlane.xlu0 %2530 }
 0x978   : > { %v2532_v4 = vmul.f32 0.03125, %v2531_v3 }
 0x97a   : > { %v2538_v5 = vmul.f32 %v2532_v4, %v2532_v4  ;;  %v2540_v10 = vsub.f32 %v2526_v61, %v2532_v4 }
 0x97b   : > { %v2536_v19 = vpop.xlane.xlu0 %2535 }
 0x97c   : > { %v2537_v7 = vmul.f32 0.03125, %v2536_v19 }
 0x97e   : > { %v2539_v8 = vsub.f32 %v2537_v7, %v2538_v5 }
 0x980   : > { %v2541_v9 = vadd.f32 1e-05, %v2539_v8 }
 0x982   : > { %3086 = vrsqrt.f32 %v2541_v9 }
 0x98c   : > { %v3087_v38 = vpop.eup %3086 }
 0x98d   : > { %v2543_v26 = vmul.f32 %v3087_v38, %v2540_v10 }
 0x98f   : > { %v2550_v12 = vmul.f32 %v2790_v25, %v2543_v26 }
 0x991   : > { %v2557_v13 = vadd.f32 %v2791_v11, %v2550_v12 }
 0x993   : > { %2558 = vst.msk [vmem:[%s716_s5] sm:$0xff] %vm771_vm1, %v2557_v13 }
 0x994   : > { %3241 = shalt.err (!%p3238_p6)
}
 0x995   : > { %s3242_s17 = scalar_lea.hbm %s3944_s28, 128  ;;  %s3246_s0 = scalar_lea.hbm %s4072_s25, 256 }
 0x996   : > { %p3243_p7 = scmp.ne.s32.totalorder %s3944_s28, %s3242_s17  ;;  %p3247_p4 = scmp.lt.u32.totalorder %s3944_s28, %s4072_s25 }
 0x997   : > { %p3248_p1 = scmp.lt.u32.totalorder %s3246_s0, %s3242_s17  ;;  %p3250_p8 = scmp.lt.u32.totalorder %s3242_s17, %s3944_s28 }
 0x998   : > { %p3244_p9 = pnand %p3243_p7, %p4073_p10 }
 0x999   : > { %p3249_p13 = por %p3248_p1, %p3247_p4 }
 0x99a   : > { %p3245_p12 = pneg %p3244_p9 }
 0x99b   : > { %p3251_p11 = por %p3250_p8, %p3249_p13 }
 0x99d   : > { %p3252_p0 = pnand %p3251_p11, %p3245_p12 }
 0x99f   : > { %3255 = shalt.err (!%p3252_p0)
}
 0x9a0   : > { %2954 = dma.vmem_to_hbm [thread:$0]  (%p4073_p10), %s3946_s22, 128, %s3944_s28, %s2560_s26  }
 0x9a1 PF: > { %s4074_s5 = sld [smem:[#allocation22_spill]]  ;;  %s4075_s30 = sld [smem:[#allocation18_spill]] }
 0x9a2   : > { %s4076_s3 = sld [smem:[#allocation25_spill]] }
 0x9a7   : > { %p2986_p2 = scmp.ge.s32.totalorder %s4074_s5, 2  ;;  %s2586_s20 = sand.u32 1, %s4075_s30  }
 0x9a8   : > { %p4077_p3 = scmp.ne.s32.totalorder %s4076_s3, 0  ;;  %s2587_s2 = scalar_lea.sflag [#allocation6], %s2586_s20 }
 0x9aa   : > { %p2973_p5 = pnand %p2986_p2, %p4077_p3 }
 0x9ac   : > { %3293 = dma.done.wait (!%p2973_p5), %s2587_s2, 128  }
 0x9ad   : > { %3295 = vsyncadd (!%p2973_p5), %s2587_s2, 4294967168  ;;  %s35_s22 = sadd.s32 1, %s4074_s5   ;;  %s4078_s0 = sld [smem:[#allocation19_spill]] }
 0x9ae   : > { %p32_p6 = scmp.ge.s32.totalorder %s35_s22, 4   ;;  %s4079_s30 = sld [smem:[#allocation20_spill]] }
 0x9af   : > { %s4080_s20 = sld [smem:[#allocation26_spill]]  ;;  %s4081_s21 = sld [smem:[#allocation21_spill]] }
 0x9b0   : > { %s4082_s1 = sld [smem:[#allocation23_spill]]  ;;  %34 = sbr.rel (!%p32_p6) target bundleno = 17 (0x11), region = 162 }
 0x9b7   :  { %2592 = vsyncpa [#allocation5], 1 }
 0x9b8   :  { %2594 = vsyncpa [#allocation5 + $0x1], 1 }
 0x9b9   :  { %2595 = vsyncpa [#allocation8], 1 }
 0x9ba   :  { %2596 = vsyncpa [#allocation11], 1 }
 0x9bb   :  { %2597 = vsyncpa [#allocation6], 1 }
 0x9bc   :  { %2599 = vsyncpa [#allocation6 + $0x1], 1 }

// kernel: tpu_custom_call.1
= control target key start
LH: loop header
LB: loop body
LE: loop exit
PB: predicated region body
PF: predicated region fallthrough
CT: control target
= control target key end

     0   :  { %s3992_s0 = inlined_call_operand.vmem [shape: f32[2,8,32], index: 0, kind: input, shape index: {}]   ;;  %s3993_s1 = inlined_call_operand.vmem [shape: bf16[2,16,32], index: 1, kind: input, shape index: {}]   ;;  %s3994_s2 = inlined_call_operand.vmem [shape: bf16[2,16,32], index: 2, kind: input, shape index: {}]   ;;  %s3995_s3 = inlined_call_operand.hbm [shape: bf16[32,32], index: 3, kind: input, shape index: {}]   ;;  %s3996_s4 = inlined_call_operand.vmem [shape: f32[1,32], index: 4, kind: input, shape index: {}]   ;;  %s3997_s5 = inlined_call_operand.hbm [shape: bf16[32,32], index: 5, kind: input, shape index: {}]   ;;  %s3998_s6 = inlined_call_operand.vmem [shape: f32[1,32], index: 6, kind: input, shape index: {}]   ;;  %s3999_s7 = inlined_call_operand.hbm [shape: bf16[32,32], index: 7, kind: input, shape index: {}]   ;;  %s4000_s8 = inlined_call_operand.hbm [shape: f32[1,32], index: 8, kind: input, shape index: {}]   ;;  %s4001_s9 = inlined_call_operand.vmem [shape: bf16[32,32], index: 9, kind: input, shape index: {}]   ;;  %s4002_s10 = inlined_call_operand.vmem [shape: f32[1,32], index: 10, kind: input, shape index: {}]   ;;  %s4003_s11 = inlined_call_operand.hbm [shape: bf16[32,64], index: 11, kind: input, shape index: {}]   ;;  %s4004_s12 = inlined_call_operand.vmem [shape: f32[1,64], index: 12, kind: input, shape index: {}]   ;;  %s4005_s13 = inlined_call_operand.vmem [shape: bf16[64,32], index: 13, kind: input, shape index: {}]   ;;  %s4006_s14 = inlined_call_operand.vmem [shape: f32[1,32], index: 14, kind: input, shape index: {}]   ;;  %s4007_s15 = inlined_call_operand.vmem [shape: f32[1,32], index: 15, kind: input, shape index: {}]   ;;  %s4008_s16 = inlined_call_operand.vmem [shape: f32[1,32], index: 16, kind: input, shape index: {}]   ;;  %s4009_s17 = inlined_call_operand.vmem [shape: f32[1,32], index: 17, kind: input, shape index: {}]   ;;  %s4010_s18 = inlined_call_operand.vmem [shape: f32[1,32], index: 18, kind: input, shape index: {}]   ;;  %s4011_s19 = inlined_call_operand.hbm [shape: f32[2,8,32], index: 19, kind: output, shape index: {}]  }
   0x1   :  { %4032 = sst [smem:[#allocation27_spill]] %s3992_s0 }
   0x2   :  { %4033 = sst [smem:[#allocation28_spill]] %s3993_s1 }
   0x3   :  { %4034 = sst [smem:[#allocation29_spill]] %s3994_s2 }
   0x4   :  { %4035 = sst [smem:[#allocation30_spill]] %s3995_s3 }
   0x5   :  { %4036 = sst [smem:[#allocation31_spill]] %s3997_s5 }
   0x6   :  { %4037 = sst [smem:[#allocation32_spill]] %s4006_s14 }
   0x7   :  { %4038 = sst [smem:[#allocation33_spill]] %s4009_s17 }
   0x8   :  { %4039 = sst [smem:[#allocation34_spill]] %s4010_s18 }
   0x9   :  { %4040 = sst [smem:[#allocation35_spill]] %s4011_s19 }
   0xa   :  { %24 = vsyncpa [#allocation5], 0 }
   0xb   :  { %25 = vsyncpa [#allocation8], 0 }
   0xc   :  { %26 = vsyncpa [#allocation11], 0 }
   0xd   :  { %27 = vsyncpa [#allocation6], 0 }
   0xe   :  { %29 = vsyncpa [#allocation6 + $0x1], 0  ;;  %s3438_s0 = smov 0   ;;  %s3440_s30 = smov 0  }
   0xf   :  { %s3442_s20 = smov 0   ;;  %s3444_s21 = smov 0  }
  0x10   :  { %s3446_s1 = smov 0   ;;  %s3448_s22 = smov 0  }
  0x11 LB: > { %4041 = sst [smem:[#allocation18_spill]] %s3298_s0  ;;  %s2719_s2 = sadd.s32 4294967295, %s3318_s22   ;;  %s3318_s22 = sphi %s3448_s22, %s35_s22   ;;  %s3314_s1 = sphi %s3446_s1, %s4082_s1   ;;  %s3310_s21 = sphi %s3444_s21, %s4081_s21   ;;  %s3306_s20 = sphi %s3442_s20, %s4080_s20   ;;  %s3302_s30 = sphi %s3440_s30, %s4079_s30   ;;  %s3298_s0 = sphi %s3438_s0, %s4078_s0  }
  0x12   : > { %4042 = sst [smem:[#allocation19_spill]] %s3302_s30  ;;  %s2720_s23 = sadd.s32 4294967294, %s3318_s22  }
  0x13   : > { %4043 = sst [smem:[#allocation20_spill]] %s3306_s20  ;;  %s47_s24 = sadd.s32 1, %s3314_s1 }
  0x14   : > { %4044 = sst [smem:[#allocation21_spill]] %s3314_s1  ;;  %s472_s25 = sadd.s32 1, %s3306_s20 }
  0x15   : > { %4045 = sst [smem:[#allocation22_spill]] %s3318_s22  ;;  %p49_p0 = scmp.ge.s32.totalorder %s47_s24, 2 }
  0x16   : > { %p482_p1 = scmp.ne.s32.totalorder %s3306_s20, %s3302_s30  ;;  %p483_p2 = scmp.eq.s32.totalorder %s2719_s2, 1 }
  0x17   : > { %p488_p3 = scmp.ne.s32.totalorder %s3302_s30, %s3298_s0  ;;  %s4084_s24 = smov (%p49_p0, %s47_s24), 0 }
  0x18   : > { %4046 = sst [smem:[#allocation23_spill]] %s4084_s24  ;;  %p3478_p4 = por %p483_p2, %p482_p1 }
  0x19   : > { %p489_p5 = scmp.eq.s32.totalorder %s2720_s23, 1  ;;  %s467_s26 = ssub.s32 %s3314_s1, %s4084_s24 }
  0x1a   : > { %s4047_s3 = scalar_select %p3478_p4, 1, 0 }
  0x1b   : > { %p2721_p6 = scmp.ge.s32.totalorder %s3318_s22, 1  ;;  %p470_p7 = scmp.eq.s32.totalorder %s467_s26, 0 }
  0x1c   : > { %4048 = sst [smem:[#allocation24_spill]] %s4047_s3  ;;  %p3485_p8 = por %p489_p5, %p488_p3 }
  0x1d   : > { %p496_p9 = scmp.lt.s32.totalorder %s3318_s22, 3  ;;  %p3497_p11 = scmp.eq.s32.totalorder %s2719_s2, 0 }
  0x1e   : > { %s4049_s27 = scalar_select %p3485_p8, 1, 0 }
  0x1f   : > { %s3491_s28 = scalar_select %p470_p7, %s3306_s20, %s472_s25  }
  0x20   : > { %4050 = sst [smem:[#allocation25_spill]] %s4049_s27  ;;  %p3493_p10 = pnand %p2721_p6, %p496_p9 }
  0x21   : > { %4051 = sst [smem:[#allocation26_spill]] %s3491_s28  ;;  %s3320_s23 = smov [#allocation7]  }
  0x22   : > { %s4052_s29 = scalar_select %p3493_p10, 1, 0 }
  0x23   : > { %s4053_s0 = scalar_select %p3497_p11, 1, 0 }
  0x24   : > { %p2956_p12 = pneg %p3493_p10  ;;  %s524_s26 = sshll.u32 %s3320_s23, 4  ;;  %s525_s26 = int_to_ptr.vmem [resolvable:$true] %s524_s26 }
  0x25   : > { %s3321_s25 = smov [#allocation10]   ;;  %s4055_s5 = sld [smem:[#allocation31_spill]] }
  0x26   : > { %p3505_p13 = pnand %p3497_p11, %p2956_p12  ;;  %s554_s1 = sshll.u32 %s3321_s25, 4  ;;  %s3509_s1 = int_to_ptr.vmem [resolvable:$true] %s554_s1 }
  0x28   : > { %p3519_p1 = pneg %p3505_p13 }
  0x2b   : > { %s3088_s20 = scalar_lea.hbm %s4055_s5, 256 }
  0x2c   : > { %p3089_p0 = scmp.ne.s32.totalorder %s4055_s5, %s3088_s20  ;;  %p3095_p5 = scmp.lt.u32.totalorder %s3088_s20, %s4055_s5 }
  0x2e   : > { %p3091_p2 = pnand %p3519_p1, %p3089_p0 }
  0x30   : > { %p3092_p3 = pneg %p3091_p2 }
  0x32   : > { %p3097_p6 = pnand %p3095_p5, %p3092_p3 }
  0x34   : > { %3100 = shalt.err (!%p3097_p6)
}
  0x35   : > { %s3101_s28 = scalar_lea.vmem %s525_s26, 256  ;;  %p3109_p8 = scmp.lt.s32.totalorder %s525_s26, %s525_s26 }
  0x36   : > { %p3102_p7 = scmp.ne.s32.totalorder %s525_s26, %s3101_s28  ;;  %p3110_p4 = scmp.lt.s32.totalorder %s3101_s28, %s3101_s28 }
  0x38   : > { %p3104_p9 = pnand %p3102_p7, %p3519_p1  ;;  %p3111_p11 = por %p3110_p4, %p3109_p8 }
  0x3a   : > { %p3105_p12 = pneg %p3104_p9 }
  0x3c   : > { %p3112_p10 = pnand %p3111_p11, %p3105_p12 }
  0x3e   : > { %3115 = shalt.err (!%p3112_p10)
}
  0x3f   : > { %s4028_s22 = smov 64   ;;  %s4030_s27 = smov 4  }
  0x40   : > { %2962 = dma.hbm_to_vmem [thread:$0]  (!%p3505_p13), %s4055_s5, 256, %s525_s26, [#allocation8], %s4028_s22, %s4028_s22, %s4030_s27  }
  0x41   : > { %s3116_s18 = scalar_lea.hbm %s4000_s8, 16 }
  0x42   : > { %p3117_p4 = scmp.ne.s32.totalorder %s4000_s8, %s3116_s18  ;;  %p3123_p11 = scmp.lt.u32.totalorder %s3116_s18, %s4000_s8 }
  0x44   : > { %p3119_p8 = pnand %p3117_p4, %p3519_p1 }
  0x46   : > { %p3120_p10 = pneg %p3119_p8 }
  0x48   : > { %p3125_p0 = pnand %p3123_p11, %p3120_p10 }
  0x4a   : > { %3128 = shalt.err (!%p3125_p0)
}
  0x4b   : > { %s3129_s26 = scalar_lea.vmem %s3509_s1, 16  ;;  %s3136_s17 = scalar_lea.vmem %s3509_s1, 32 }
  0x4c   : > { %p3130_p2 = scmp.ne.s32.totalorder %s3509_s1, %s3129_s26  ;;  %p3137_p6 = scmp.lt.s32.totalorder %s3509_s1, %s3509_s1 }
  0x4d   : > { %p3138_p7 = scmp.lt.s32.totalorder %s3136_s17, %s3129_s26 }
  0x4e   : > { %p3132_p3 = pnand %p3130_p2, %p3519_p1 }
  0x4f   : > { %p3139_p9 = por %p3138_p7, %p3137_p6 }
  0x50   : > { %p3133_p5 = pneg %p3132_p3 }
  0x52   : > { %p3140_p12 = pnand %p3139_p9, %p3133_p5 }
  0x54   : > { %3143 = shalt.err (!%p3140_p12)
}
  0x55   : > { %2968 = dma.hbm_to_vmem [thread:$0]  (!%p3505_p13), %s4000_s8, 16, %s3509_s1, [#allocation11]  }
  0x56   : > { %s3324_s3 = smov [#allocation4]   ;;  %s3325_s20 = smov [#allocation9]  }
  0x57   : > { %s508_s19 = sshll.u32 %s3324_s3, 4  ;;  %s540_s2 = sshll.u32 %s3325_s20, 4  ;;  %s509_s19 = int_to_ptr.vmem [resolvable:$true] %s508_s19  ;;  %s541_s2 = int_to_ptr.vmem [resolvable:$true] %s540_s2 }
  0x58   : > { %s4057_s22 = sld [smem:[#allocation30_spill]] }
  0x5e   : > { %s4058_s27 = smov %s4057_s22  ;;  %s3144_s26 = scalar_lea.hbm %s4057_s22, 256 }
  0x5f   : > { %p3145_p4 = scmp.ne.s32.totalorder %s4058_s27, %s3144_s26  ;;  %p3151_p11 = scmp.lt.u32.totalorder %s3144_s26, %s4058_s27 }
  0x61   : > { %p3147_p8 = pnand %p3145_p4, %p3519_p1 }
  0x63   : > { %p3148_p10 = pneg %p3147_p8 }
  0x65   : > { %p3153_p0 = pnand %p3151_p11, %p3148_p10 }
  0x67   : > { %3156 = shalt.err (!%p3153_p0)
}
  0x68   : > { %s3157_s1 = scalar_lea.vmem %s509_s19, 256  ;;  %p3165_p6 = scmp.lt.s32.totalorder %s509_s19, %s509_s19 }
  0x69   : > { %p3158_p2 = scmp.ne.s32.totalorder %s509_s19, %s3157_s1  ;;  %p3166_p7 = scmp.lt.s32.totalorder %s3157_s1, %s3157_s1 }
  0x6b   : > { %p3160_p3 = pnand %p3158_p2, %p3519_p1  ;;  %p3167_p9 = por %p3166_p7, %p3165_p6 }
  0x6d   : > { %p3161_p5 = pneg %p3160_p3 }
  0x6f   : > { %p3168_p12 = pnand %p3167_p9, %p3161_p5 }
  0x71   : > { %3171 = shalt.err (!%p3168_p12)
}
  0x72   : > { %s4059_s5 = smov 4   ;;  %s4060_s22 = smov 64  }
  0x73   : > { %2959 = dma.hbm_to_vmem [thread:$0]  (!%p3505_p13), %s4058_s27, 256, %s509_s19, [#allocation5], %s4060_s22, %s4060_s22, %s4059_s5  }
  0x74   : > { %s3172_s25 = scalar_lea.hbm %s3999_s7, 256 }
  0x75   : > { %p3173_p4 = scmp.ne.s32.totalorder %s3999_s7, %s3172_s25  ;;  %p3179_p11 = scmp.lt.u32.totalorder %s3172_s25, %s3999_s7 }
  0x77   : > { %p3175_p8 = pnand %p3173_p4, %p3519_p1 }
  0x79   : > { %p3176_p10 = pneg %p3175_p8 }
  0x7b   : > { %p3181_p0 = pnand %p3179_p11, %p3176_p10 }
  0x7d   : > { %3184 = shalt.err (!%p3181_p0)
}
  0x7e   : > { %s3185_s1 = scalar_lea.vmem %s541_s2, 256  ;;  %p3193_p6 = scmp.lt.s32.totalorder %s541_s2, %s541_s2 }
  0x7f   : > { %p3186_p2 = scmp.ne.s32.totalorder %s541_s2, %s3185_s1  ;;  %p3194_p7 = scmp.lt.s32.totalorder %s3185_s1, %s3185_s1 }
  0x81   : > { %p3188_p3 = pnand %p3186_p2, %p3519_p1  ;;  %p3195_p9 = por %p3194_p7, %p3193_p6 }
  0x83   : > { %p3189_p5 = pneg %p3188_p3 }
  0x85   : > { %p3196_p12 = pnand %p3195_p9, %p3189_p5 }
  0x87   : > { %3199 = shalt.err (!%p3196_p12)
}
  0x88   : > { %2965 = dma.hbm_to_vmem [thread:$0]  (!%p3505_p13), %s3999_s7, 256, %s541_s2, [#allocation8], %s4060_s22, %s4060_s22, %s4059_s5  }
  0x89   : > { %s3326_s30 = smov [#allocation12]   ;;  %s3200_s28 = scalar_lea.hbm %s4003_s11, 256 }
  0x8a   : > { %s570_s3 = sshll.u32 %s3326_s30, 4  ;;  %p3201_p4 = scmp.ne.s32.totalorder %s4003_s11, %s3200_s28  ;;  %s571_s3 = int_to_ptr.vmem [resolvable:$true] %s570_s3 }
  0x8b   : > { %p3207_p11 = scmp.lt.u32.totalorder %s3200_s28, %s4003_s11 }
  0x8c   : > { %p3203_p8 = pnand %p3201_p4, %p3519_p1 }
  0x8e   : > { %p3204_p10 = pneg %p3203_p8 }
  0x90   : > { %p3209_p0 = pnand %p3207_p11, %p3204_p10 }
  0x92   : > { %3212 = shalt.err (!%p3209_p0)
}
  0x93   : > { %s3213_s2 = scalar_lea.vmem %s571_s3, 256  ;;  %p3221_p6 = scmp.lt.s32.totalorder %s571_s3, %s571_s3 }
  0x94   : > { %p3214_p2 = scmp.ne.s32.totalorder %s571_s3, %s3213_s2  ;;  %p3222_p7 = scmp.lt.s32.totalorder %s3213_s2, %s3213_s2 }
  0x96   : > { %p3216_p3 = pnand %p3214_p2, %p3519_p1  ;;  %p3223_p9 = por %p3222_p7, %p3221_p6 }
  0x98   : > { %p3217_p5 = pneg %p3216_p3 }
  0x9a   : > { %p3224_p12 = pnand %p3223_p9, %p3217_p5 }
  0x9c   : > { %3227 = shalt.err (!%p3224_p12)
}
  0x9d   : > { %2971 = dma.hbm_to_vmem [thread:$0]  (!%p3505_p13), %s4003_s11, 256, %s571_s3, [#allocation11], %s4060_s22, %s4060_s22, %s4059_s5  }
  0x9e   : > { %p4061_p4 = scmp.ne.s32.totalorder %s4052_s29, 0 }
  0x9f   : > { %p4062_p1 = scmp.ne.s32.totalorder (!%p4061_p4), %s4053_s0, 0 }
  0xa0   : > { %633 = sbr.rel (%p4061_p4) target bundleno = 2465 (0x9a1), region = 96 }
  0xa7   : > { %3281 = dma.done.wait (%p4062_p1), [#allocation5], 256  }
  0xa8   : > { %3283 = vsyncadd (%p4062_p1), [#allocation5], 4294967040 }
  0xa9   : > { %3285 = dma.done.wait (%p4062_p1), [#allocation8], 512  }
  0xaa   : > { %3287 = vsyncadd (%p4062_p1), [#allocation8], 4294966784 }
  0xab   : > { %3289 = dma.done.wait (%p4062_p1), [#allocation11], 272  }
  0xac   : > { %3291 = vsyncadd (%p4062_p1), [#allocation11], 4294967024  ;;  %p717_p13 = scmp.lt.s32.totalorder %s3310_s21, 1  ;;  %v3327_v0 = vmov 0.0   ;;  %vm3328_vm0 = vmmov 0   ;;  %v3052_v1 = vld [vmem:[#allocation7] sm:$0xff]   ;;  %v913_v26 = vlaneseq }
  0xad   : > { %2834 = vmatprep.subr.bf16.mxu0 %v3327_v0  ;;  %2838 = vmatprep.mubr.msk.bf16.mxu0 %vm3328_vm0, %v3327_v0  ;;  %s4063_s5 = sld [smem:[#allocation28_spill]]  ;;  %v3053_v2 = vld [vmem:[#allocation7 + $0x8] sm:$0xff]   ;;  %vm771_vm1 = vcmask 261120   ;;  %v3055_v4 = vld [vmem:[#allocation4] sm:$0xff]   ;;  %s4064_s20 = sld [smem:[#allocation27_spill]]  ;;  %v3056_v5 = vld [vmem:[#allocation4 + $0x8] sm:$0xff]  }
  0xae   : > { %s718_s24 = scalar_select %p717_p13, %s3310_s21, 1  ;;  %2842 = vmatprep.subr.bf16.mxu1 %v3327_v0  ;;  %2846 = vmatprep.mubr.msk.bf16.mxu1 %vm3328_vm0, %v3327_v0  ;;  %v2740_v8 = vld [vmem:[%s3998_s6] ss:$0 sm:$0xff]  ;;  %v3058_v22 = vld [vmem:[#allocation9 + $0x8] sm:$0xff]   ;;  %v3332_v24 = vmov 1983009808  }
  0xaf   : > { %2835 = vmatpush3.bf16.msra.mxu0 %v3052_v1  ;;  %s3329_s17 = smov 112   ;;  %s3330_s18 = smov 120   ;;  %v2758_v15 = vld [vmem:[%s3996_s4] ss:$0 sm:$0xff]  ;;  %v911_v25 = vunpack.c.l.s4 %v3332_v24  ;;  %v3333_v29 = vmov 1934713408  }
  0xb0   : > { %s3647_s29 = sshll.u32 %s718_s24, 3  ;;  %2836 = vmatprep.subr.bf16.mxu0 %v3327_v0  ;;  %s3331_s19 = smov 104   ;;  %v3057_v21 = vld [vmem:[#allocation9] sm:$0xff]   ;;  %v943_v30 = vunpack.c.l.s4 %v3333_v29  ;;  %v914_v32 = vshrl.u32 %v913_v26, 7  ;;  %vm1184_vm2 = vcmask 64512   ;;  %vm1901_vm3 = vcmask 130048  }
  0xb1   : > { %2843 = vmatpush3.bf16.msra.mxu1 %v3057_v21  ;;  %s4065_s0 = sld [smem:[#allocation29_spill]]  ;;  %v912_v31 = vunpack.c.0.s8 %v911_v25  ;;  %s3334_s3 = smov 16   ;;  %vm2272_vm4 = vcmask 195584   ;;  %vm2482_vm5 = vcmask 523264  }
  0xb2   : > { %2844 = vmatprep.subr.bf16.mxu1 %v3327_v0  ;;  %v944_v37 = vunpack.c.0.s8 %v943_v30  ;;  %s4066_s28 = sld [smem:[#allocation32_spill]]  ;;  %s4067_s26 = sld [smem:[#allocation19_spill]] }
  0xb3   : > { %s728_s22 = scalar_lea.vmem %s4063_s5, %s3647_s29  ;;  %s723_s25 = scalar_lea.vmem %s4064_s20, %s3647_s29  ;;  %2837 = vmatpush3.bf16.msra.mxu0 %v3053_v2  ;;  %v3705_v38 = vsub.s32 %v912_v31, %v914_v32 }
  0xb4   : > { %v3054_v3 = vld [vmem:[%s728_s22] sm:$0xff]   ;;  %2850 = vmatprep.subr.bf16.mxu0 %v3327_v0  ;;  %v3711_v49 = vsub.s32 %v944_v37, %v914_v32  ;;  %s3335_s20 = smov 8   ;;  %s4068_s1 = sld [smem:[#allocation24_spill]] }
  0xb5   : > { %v3659_v6 = vld [vmem:[%s723_s25] sm:$0xff]  ;;  %2845 = vmatpush3.bf16.msra.mxu1 %v3058_v22  ;;  %s3336_s25 = smov 24   ;;  %s4069_s14 = sld [smem:[#allocation33_spill]] }
  0xb6   : > { %2839 = vmatmul.mubr.msk.bf16.vlgmr.msra.gmra.mrb[0].mxu0 %vm771_vm1, %v3054_v3  ;;  %v1490_v7 = vpack.c.bf16 %v3659_v6, %v3659_v6  ;;  %2858 = vmatprep.subr.bf16.mxu1 %v3327_v0 }
  0xb7   : > { %2851 = vmatpush3.bf16.msra.mxu0 %v3055_v4  ;;  %2854 = vmatprep.mubr.msk.bf16.mxu0 %vm3328_vm0, %v3327_v0  ;;  %s733_s23 = scalar_lea.vmem %s4065_s0, %s3647_s29  ;;  %s2793_s29 = sshll.u32 %s3310_s21, 7 }
  0xb8   : > { %2852 = vmatprep.subr.bf16.mxu0 %v3327_v0  ;;  %v3059_v23 = vld [vmem:[%s733_s23] sm:$0xff]   ;;  %s4070_s23 = sld [smem:[#allocation34_spill]]  ;;  %s3337_s21 = smov [#allocation13]  }
  0xb9   : > { %2847 = vmatmul.mubr.msk.bf16.vlgmr.msra.gmra.mrb[0].mxu1 %vm771_vm1, %v3059_v23 }
  0xba   : > { %2860 = vmatprep.mubr.msk.bf16.mxu1 %vm3328_vm0, %v3327_v0  ;;  %p4073_p10 = scmp.ne.s32.totalorder %s4068_s1, 0 }
  0xbb   : > { %2853 = vmatpush3.bf16.msra.mxu0 %v3056_v5 }
  0xbc   : > { %2864 = vmatprep.subr.bf16.mxu0 %v3327_v0 }
  0xbe   : > { %2855 = vmatmul.mubr.msk.bf16.vlgmr.msra.gmra.mrb[4].mxu0 %vm771_vm1, %v1490_v7 }
  0xbf   : > { %2866 = vmatprep.mubr.msk.bf16.mxu0 %vm3328_vm0, %v3327_v0 }
 0x189   : > { %v809_v9 = vpop.f32.mrb[0].mxu0 }
 0x18a   : > { %v3674_v10 = vadd.f32 %v2740_v8, %v809_v9  ;;  %v2840_v11 = vpop.f32.mrb[1].mxu0 }
 0x18b   : > { %v812_v12 = vpop.f32.mrb[2].mxu0 }
 0x18c   : > { %896 = vrot.lane.b32.xlu1 %v3674_v10, %s3329_s17  ;;  %890 = vrot.lane.b32.xlu0 %v3674_v10, %s3330_s18  ;;  %v2841_v13 = vpop.f32.mrb[3].mxu0  ;;  %v813_v14 = vadd.f32 %v2740_v8, %v812_v12 }
 0x190   : > { %898 = vrot.lane.b32.xlu1 %v813_v14, %s3329_s17  ;;  %892 = vrot.lane.b32.xlu0 %v813_v14, %s3330_s18 }
 0x191   : > { %v1552_v16 = vpop.f32.mrb[4].mxu0 }
 0x192   : > { %v2856_v17 = vpop.f32.mrb[5].mxu0  ;;  %v3688_v19 = vadd.f32 %v2758_v15, %v1552_v16 }
 0x193   : > { %v1555_v18 = vpop.f32.mrb[6].mxu0 }
 0x194   : > { %904 = vrot.lane.b32.xlu1 %v813_v14, %s3331_s19  ;;  %902 = vrot.lane.b32.xlu0 %v3674_v10, %s3331_s19  ;;  %v2857_v20 = vpop.f32.mrb[7].mxu0 }
 0x198   : > { %1562 = vrot.lane.b32.xlu1 %v3688_v19, %s3329_s17  ;;  %1559 = vrot.lane.b32.xlu0 %v3688_v19, %s3330_s18 }
 0x19c   : > { %1565 = vrot.lane.b32.xlu0 %v3688_v19, %s3331_s19 }
 0x1fe   : > { %v897_v27 = vpop.permute.xlu1 %896  ;;  %v891_v28 = vpop.permute.xlu0 %890 }
 0x1ff   : > { %v908_v39 = vcombine.low %v3674_v10, %v897_v27  ;;  %v909_v40 = vcombine.high %v3674_v10, %v897_v27 }
 0x201   : > { %v916_v54 = vrot.slane %v908_v39, %v3705_v38  ;;  %v923_v55 = vrot.slane %v909_v40, %v3705_v38 }
 0x202   : > { %v899_v33 = vpop.permute.xlu1 %898  ;;  %v893_v34 = vpop.permute.xlu0 %892 }
 0x203   : > { %v976_v35 = vcombine.low %v813_v14, %v899_v33  ;;  %v977_v36 = vcombine.high %v813_v14, %v899_v33 }
 0x205   : > { %v984_v47 = vrot.slane %v976_v35, %v3705_v38  ;;  %v991_v48 = vrot.slane %v977_v36, %v3705_v38 }
 0x206   : > { %v905_v41 = vpop.permute.xlu1 %904  ;;  %v903_v42 = vpop.permute.xlu0 %902 }
 0x207   : > { %v992_v43 = vcombine.low %v893_v34, %v905_v41  ;;  %v993_v44 = vcombine.high %v893_v34, %v905_v41  ;;  %v924_v45 = vcombine.low %v891_v28, %v903_v42  ;;  %v925_v46 = vcombine.high %v891_v28, %v903_v42 }
 0x209   : > { %v1000_v50 = vrot.slane %v992_v43, %v3705_v38  ;;  %v1007_v51 = vrot.slane %v993_v44, %v3705_v38  ;;  %v932_v52 = vrot.slane %v924_v45, %v3705_v38  ;;  %v939_v53 = vrot.slane %v925_v46, %v3705_v38 }
 0x20a   : > { %v1560_v18 = vpop.permute.xlu0 %1559  ;;  %v1563_v45 = vpop.permute.xlu1 %1562 }
 0x20b   : > { %v1008_v56 = vcombine.low %v984_v47, %v1000_v50  ;;  %v1009_v57 = vcombine.high %v984_v47, %v1000_v50  ;;  %v1024_v58 = vcombine.low %v991_v48, %v1007_v51  ;;  %v1025_v59 = vcombine.high %v991_v48, %v1007_v51 }
 0x20c   : > { %v940_v60 = vcombine.low %v916_v54, %v932_v52  ;;  %v941_v61 = vcombine.high %v916_v54, %v932_v52  ;;  %v956_v62 = vcombine.low %v923_v55, %v939_v53  ;;  %v957_v63 = vcombine.high %v923_v55, %v939_v53 }
 0x20d   : > { %v1016_v1 = vrot.slane %v1008_v56, %v3711_v49  ;;  %v1023_v2 = vrot.slane %v1009_v57, %v3711_v49  ;;  %v1032_v3 = vrot.slane %v1024_v58, %v3711_v49  ;;  %v1039_v4 = vrot.slane %v1025_v59, %v3711_v49 }
 0x20e   : > { %v948_v5 = vrot.slane %v940_v60, %v3711_v49  ;;  %v955_v7 = vrot.slane %v941_v61, %v3711_v49  ;;  %v964_v8 = vrot.slane %v956_v62, %v3711_v49  ;;  %v971_v9 = vrot.slane %v957_v63, %v3711_v49  ;;  %v1566_v46 = vpop.permute.xlu0 %1565 }
 0x20f   : > { %v1112_v10 = vcombine.low %v1016_v1, %v1023_v2  ;;  %v2752_v11 = vcombine.high %v1016_v1, %v1023_v2  ;;  %v1128_v12 = vcombine.low %v1032_v3, %v1039_v4  ;;  %v2753_v13 = vcombine.high %v1032_v3, %v1039_v4 }
 0x210   : > { %v1044_v14 = vcombine.low %v948_v5, %v955_v7  ;;  %v2750_v15 = vcombine.high %v948_v5, %v955_v7  ;;  %v1060_v16 = vcombine.low %v964_v8, %v971_v9  ;;  %v2751_v17 = vcombine.high %v964_v8, %v971_v9 }
 0x211   : > { %v1119_v20 = vrot.slane %v1112_v10, %v3705_v38  ;;  %v1127_v21 = vrot.slane %v2752_v11, %v3705_v38  ;;  %v1135_v22 = vrot.slane %v1128_v12, %v3705_v38  ;;  %v1143_v23 = vrot.slane %v2753_v13, %v3705_v38 }
 0x212   : > { %v1051_v24 = vrot.slane %v1044_v14, %v3705_v38  ;;  %v1059_v25 = vrot.slane %v2750_v15, %v3705_v38  ;;  %v1067_v26 = vrot.slane %v1060_v16, %v3705_v38  ;;  %v1075_v27 = vrot.slane %v2751_v17, %v3705_v38 }
 0x213   : > { %v1144_v28 = vcombine.low %v1119_v20, %v1127_v21  ;;  %v1145_v29 = vcombine.high %v1119_v20, %v1127_v21  ;;  %v1160_v30 = vcombine.low %v1135_v22, %v1143_v23  ;;  %v1161_v31 = vcombine.high %v1135_v22, %v1143_v23 }
 0x214   : > { %v1076_v32 = vcombine.low %v1051_v24, %v1059_v25  ;;  %v1077_v33 = vcombine.high %v1051_v24, %v1059_v25  ;;  %v1092_v34 = vcombine.low %v1067_v26, %v1075_v27  ;;  %v1093_v35 = vcombine.high %v1067_v26, %v1075_v27 }
 0x215   : > { %v1152_v36 = vrot.slane %v1144_v28, %v3711_v49  ;;  %v1159_v37 = vrot.slane %v1145_v29, %v3711_v49  ;;  %v1168_v39 = vrot.slane %v1160_v30, %v3711_v49  ;;  %v1175_v40 = vrot.slane %v1161_v31, %v3711_v49 }
 0x216   : > { %v1084_v41 = vrot.slane %v1076_v32, %v3711_v49  ;;  %v1091_v42 = vrot.slane %v1077_v33, %v3711_v49  ;;  %v1100_v43 = vrot.slane %v1092_v34, %v3711_v49  ;;  %v1107_v44 = vrot.slane %v1093_v35, %v3711_v49 }
 0x217   : > { %v1176_v47 = vcombine.low %v1152_v36, %v1168_v39  ;;  %v1177_v48 = vcombine.high %v1152_v36, %v1168_v39  ;;  %v1178_v50 = vcombine.low %v1159_v37, %v1175_v40  ;;  %v1179_v51 = vcombine.high %v1159_v37, %v1175_v40 }
 0x218   : > { %v1108_v52 = vcombine.low %v1084_v41, %v1100_v43  ;;  %v1109_v53 = vcombine.high %v1084_v41, %v1100_v43  ;;  %v1110_v54 = vcombine.low %v1091_v42, %v1107_v44  ;;  %v1111_v55 = vcombine.high %v1091_v42, %v1107_v44 }
 0x219   : > { %v1568_v56 = vcombine.low %v3688_v19, %v1563_v45  ;;  %v1569_v57 = vcombine.high %v3688_v19, %v1563_v45  ;;  %v1584_v58 = vcombine.low %v1560_v18, %v1566_v46  ;;  %v1585_v59 = vcombine.high %v1560_v18, %v1566_v46 }
 0x21a   : > { %v1180_v60 = vpack.c.bf16 %v1176_v47, %v1108_v52  ;;  %v1181_v61 = vpack.c.bf16 %v1177_v48, %v1109_v53  ;;  %v1182_v62 = vpack.c.bf16 %v1178_v50, %v1110_v54  ;;  %v1183_v63 = vpack.c.bf16 %v1179_v51, %v1111_v55  ;;  %v881_v47 = vpop.f32.mrb[0].mxu1 }
 0x21b   : > { %v1576_v1 = vrot.slane %v1568_v56, %v3705_v38  ;;  %v1583_v2 = vrot.slane %v1569_v57, %v3705_v38  ;;  %v1592_v3 = vrot.slane %v1584_v58, %v3705_v38  ;;  %v1599_v4 = vrot.slane %v1585_v59, %v3705_v38  ;;  %v2848_v48 = vpop.f32.mrb[1].mxu1 }
 0x21c   : > { %1185 = vst.msk [vmem:[#allocation2] sm:$0xff] %vm1184_vm2, %v1180_v60  ;;  %1186 = vst.msk [vmem:[#allocation2 + $0x8] sm:$0xff] %vm1184_vm2, %v1181_v61  ;;  %v884_v50 = vpop.f32.mrb[2].mxu1 }
 0x21d   : > { %1187 = vst.msk [vmem:[#allocation2 + $0x10] sm:$0xff] %vm1184_vm2, %v1182_v62  ;;  %1188 = vst.msk [vmem:[#allocation2 + $0x18] sm:$0xff] %vm1184_vm2, %v1183_v63  ;;  %v1600_v19 = vcombine.low %v1576_v1, %v1592_v3  ;;  %v1601_v5 = vcombine.high %v1576_v1, %v1592_v3  ;;  %v1616_v7 = vcombine.low %v1583_v2, %v1599_v4  ;;  %v2849_v51 = vpop.f32.mrb[3].mxu1 }
 0x21e   : > { %v1617_v8 = vcombine.high %v1583_v2, %v1599_v4 }
 0x21f   : > { %v1608_v9 = vrot.slane %v1600_v19, %v3711_v49  ;;  %v1615_v10 = vrot.slane %v1601_v5, %v3711_v49  ;;  %v1624_v11 = vrot.slane %v1616_v7, %v3711_v49 }
 0x220   : > { %v1631_v12 = vrot.slane %v1617_v8, %v3711_v49 }
 0x221   : > { %v1636_v13 = vcombine.low %v1608_v9, %v1615_v10  ;;  %v2762_v14 = vcombine.high %v1608_v9, %v1615_v10  ;;  %v2745_v9 = vld [vmem:[#allocation10] ss:$0 sm:$0xff] }
 0x222   : > { %v1652_v15 = vcombine.low %v1624_v11, %v1631_v12  ;;  %v2763_v16 = vcombine.high %v1624_v11, %v1631_v12  ;;  %v885_v10 = vadd.f32 %v2745_v9, %v884_v50  ;;  %v882_v11 = vadd.f32 %v2745_v9, %v881_v47 }
 0x223   : > { %v1643_v17 = vrot.slane %v1636_v13, %v3705_v38  ;;  %v1651_v18 = vrot.slane %v2762_v14, %v3705_v38  ;;  %v1708_v22 = vld [vmem:[#allocation2] sm:$0xff]  ;;  %v1709_v23 = vld [vmem:[#allocation2 + $0x8] sm:$0xff] }
 0x224   : > { %v1659_v20 = vrot.slane %v1652_v15, %v3705_v38  ;;  %v1667_v21 = vrot.slane %v2763_v16, %v3705_v38  ;;  %v1721_v24 = vsel %vm1184_vm2, %v1708_v22, 0  ;;  %v1767_v25 = vsel %vm1184_vm2, %v1709_v23, 0  ;;  %v1710_v34 = vld [vmem:[#allocation2 + $0x10] sm:$0xff]  ;;  %v1711_v35 = vld [vmem:[#allocation2 + $0x18] sm:$0xff] }
 0x225   : > { %v1668_v26 = vcombine.low %v1643_v17, %v1651_v18  ;;  %2859 = vmatpush3.bf16.xpose.msra.mxu1 %v1721_v24  ;;  %2865 = vmatpush3.bf16.xpose.msra.mxu0 %v1767_v25  ;;  %v1669_v28 = vcombine.high %v1643_v17, %v1651_v18  ;;  %v1813_v41 = vsel %vm1184_vm2, %v1710_v34, 0  ;;  %v1859_v42 = vsel %vm1184_vm2, %v1711_v35, 0 }
 0x226   : > { %v1684_v27 = vcombine.low %v1659_v20, %v1667_v21  ;;  %2870 = vmatprep.subr.bf16.mxu1 %v3327_v0  ;;  %v1685_v29 = vcombine.high %v1659_v20, %v1667_v21  ;;  %2876 = vmatprep.subr.bf16.mxu0 %v3327_v0 }
 0x227   : > { %v1676_v30 = vrot.slane %v1668_v26, %v3711_v49  ;;  %v1683_v39 = vrot.slane %v1669_v28, %v3711_v49 }
 0x228   : > { %v1692_v31 = vrot.slane %v1684_v27, %v3711_v49  ;;  %v1699_v40 = vrot.slane %v1685_v29, %v3711_v49 }
 0x22a   : > { %v1700_v32 = vcombine.low %v1676_v30, %v1692_v31  ;;  %v1701_v33 = vcombine.high %v1676_v30, %v1692_v31  ;;  %v1702_v43 = vcombine.low %v1683_v39, %v1699_v40  ;;  %v1703_v44 = vcombine.high %v1683_v39, %v1699_v40 }
 0x22c   : > { %v1704_v36 = vpack.c.bf16 %v1700_v32, %v1700_v32  ;;  %v1705_v37 = vpack.c.bf16 %v1701_v33, %v1701_v33  ;;  %v1706_v45 = vpack.c.bf16 %v1702_v43, %v1702_v43  ;;  %v1707_v46 = vpack.c.bf16 %v1703_v44, %v1703_v44 }
 0x22e   : > { %2861 = vmatmul.mubr.msk.bf16.vlgmr.msra.gmra.mrb[4].mxu1 %vm1184_vm2, %v1704_v36  ;;  %2867 = vmatmul.mubr.msk.bf16.vlgmr.msra.gmra.mrb[8].mxu0 %vm1184_vm2, %v1705_v37 }
 0x22f   : > { %2871 = vmatpush3.bf16.xpose.msra.mxu1 %v1813_v41  ;;  %2877 = vmatpush3.bf16.xpose.msra.mxu0 %v1859_v42 }
 0x230   : > { %2872 = vmatprep.mubr.msk.bf16.mxu1 %vm3328_vm0, %v3327_v0  ;;  %2878 = vmatprep.mubr.msk.bf16.mxu0 %vm3328_vm0, %v3327_v0 }
 0x231   : > { %2882 = vmatprep.subr.bf16.mxu1 %v3327_v0  ;;  %2888 = vmatprep.subr.bf16.mxu0 %v3327_v0 }
 0x236   : > { %2873 = vmatmul.mubr.msk.bf16.vlgmr.msra.gmra.mrb[8].mxu1 %vm1184_vm2, %v1706_v45  ;;  %2879 = vmatmul.mubr.msk.bf16.vlgmr.msra.gmra.mrb[12].mxu0 %vm1184_vm2, %v1707_v46 }
 0x237   : > { %2884 = vmatprep.mubr.msk.bf16.mxu1 %vm3328_vm0, %v3327_v0  ;;  %2890 = vmatprep.mubr.msk.bf16.mxu0 %vm3328_vm0, %v3327_v0 }
 0x301   : > { %v1757_v52 = vpop.f32.mrb[4].mxu1  ;;  %v1803_v53 = vpop.f32.mrb[8].mxu0 }
 0x302   : > { %v2862_v54 = vpop.f32.mrb[5].mxu1  ;;  %v2868_v55 = vpop.f32.mrb[9].mxu0  ;;  %v1902_v56 = vsel %vm1901_vm3, %v1757_v52, -inf  ;;  %v1905_v57 = vsel %vm1901_vm3, %v1803_v53, -inf }
 0x303   : > { %1903 = vmax.xlane.f32.xlu1 %v1902_v56  ;;  %v1760_v58 = vpop.f32.mrb[6].mxu1  ;;  %1906 = vmax.xlane.f32.xlu0 %v1905_v57  ;;  %v1806_v59 = vpop.f32.mrb[10].mxu0 }
 0x304   : > { %v2863_v60 = vpop.f32.mrb[7].mxu1  ;;  %v2869_v61 = vpop.f32.mrb[11].mxu0 }
 0x309   : > { %v1849_v62 = vpop.f32.mrb[8].mxu1  ;;  %v1895_v63 = vpop.f32.mrb[12].mxu0 }
 0x30a   : > { %v2874_v1 = vpop.f32.mrb[9].mxu1  ;;  %v2880_v2 = vpop.f32.mrb[13].mxu0  ;;  %v1908_v3 = vsel %vm1901_vm3, %v1849_v62, -inf  ;;  %v1911_v4 = vsel %vm1901_vm3, %v1895_v63, -inf }
 0x30b   : > { %v1852_v19 = vpop.f32.mrb[10].mxu1  ;;  %1909 = vmax.xlane.f32.xlu0 %v1908_v3  ;;  %1912 = vmax.xlane.f32.xlu1 %v1911_v4  ;;  %v1898_v5 = vpop.f32.mrb[14].mxu0 }
 0x30c   : > { %v2875_v7 = vpop.f32.mrb[11].mxu1  ;;  %v2881_v8 = vpop.f32.mrb[15].mxu0 }
 0x31c   : > { %1193 = vrot.lane.b32.xlu1 %v885_v10, %s3330_s18 }
 0x320   : > { %1197 = vrot.lane.b32.xlu1 %v882_v11, %s3329_s17 }
 0x321   : > { %1191 = vrot.lane.b32.xlu0 %v882_v11, %s3330_s18 }
 0x324   : > { %1203 = vrot.lane.b32.xlu1 %v882_v11, %s3331_s19 }
 0x325   : > { %1199 = vrot.lane.b32.xlu0 %v885_v10, %s3329_s17  ;;  %s714_s17 = sand.u32 1, %s4067_s26  }
 0x326   : > { %s2734_s18 = sshll.u32 %s714_s17, 3  ;;  %s2560_s26 = scalar_lea.sflag [#allocation6], %s714_s17 }
 0x327   : > { %s716_s5 = scalar_lea.vmem [#allocation13], %s2734_s18  ;;  %s3232_s18 = sshll.u32 %s3337_s21, 4  ;;  %s3233_s18 = int_to_ptr.vmem [resolvable:$false] %s3232_s18 }
 0x328   : > { %s2574_s22 = sshll.u32 %s716_s5, 4  ;;  %s3946_s22 = int_to_ptr.vmem [resolvable:$true] %s2574_s22 }
 0x329   : > { %1205 = vrot.lane.b32.xlu0 %v885_v10, %s3331_s19  ;;  %s3228_s2 = scalar_lea.vmem %s3946_s22, 128  ;;  %s3234_s19 = scalar_lea.vmem %s3233_s18, 256 }
 0x32a   : > { %p3229_p8 = scmp.ne.s32.totalorder %s3946_s22, %s3228_s2  ;;  %p3235_p2 = scmp.lt.s32.totalorder %s3946_s22, %s3233_s18 }
 0x32b   : > { %p3236_p3 = scmp.lt.s32.totalorder %s3234_s19, %s3228_s2 }
 0x32c   : > { %p3230_p11 = pnand %p3229_p8, %p4073_p10 }
 0x32d   : > { %p3237_p5 = por %p3236_p3, %p3235_p2 }
 0x32e   : > { %p3231_p0 = pneg %p3230_p11 }
 0x330   : > { %p3238_p6 = pnand %p3237_p5, %p3231_p0 }
 0x390   : > { %v1904_v12 = vpop.xlane.xlu1 %1903  ;;  %v1907_v13 = vpop.xlane.xlu0 %1906 }
 0x391   : > { %v1914_v14 = vsub.f32 %v1757_v52, %v1904_v12  ;;  %v1915_v15 = vsub.f32 %v1803_v53, %v1907_v13 }
 0x393   : > { %v1918_v16 = vmul.f32 1.442695, %v1914_v14  ;;  %v1920_v17 = vmul.f32 1.442695, %v1915_v15 }
 0x395   : > { %3068 = vpow2.f32 %v1918_v16 }
 0x396   : > { %3070 = vpow2.f32 %v1920_v17 }
 0x398   : > { %v1910_v18 = vpop.xlane.xlu0 %1909  ;;  %v1913_v20 = vpop.xlane.xlu1 %1912 }
 0x399   : > { %v1916_v21 = vsub.f32 %v1849_v62, %v1910_v18  ;;  %v1917_v27 = vsub.f32 %v1895_v63, %v1913_v20 }
 0x39b   : > { %v1922_v22 = vmul.f32 1.442695, %v1916_v21  ;;  %v1924_v34 = vmul.f32 1.442695, %v1917_v27 }
 0x39c   : > { %v1192_v23 = vpop.permute.xlu0 %1191  ;;  %v1194_v24 = vpop.permute.xlu1 %1193 }
 0x39d   : > { %3072 = vpow2.f32 %v1922_v22 }
 0x39e   : > { %3074 = vpow2.f32 %v1924_v34 }
 0x39f   : > { %v3795_v25 = vpop.eup %3068 }
 0x3a0   : > { %v3797_v26 = vpop.eup %3070  ;;  %v1200_v28 = vpop.permute.xlu0 %1199  ;;  %v1926_v30 = vsel %vm1901_vm3, %v3795_v25, 0.0 }
 0x3a1   : > { %v1198_v29 = vpop.permute.xlu1 %1197  ;;  %1927 = vadd.xlane.f32.xlu1 %v1926_v30  ;;  %v1277_v31 = vcombine.low %v885_v10, %v1200_v28  ;;  %v1278_v32 = vcombine.high %v885_v10, %v1200_v28  ;;  %v1929_v33 = vsel %vm1901_vm3, %v3797_v26, 0.0 }
 0x3a2   : > { %1930 = vadd.xlane.f32.xlu0 %v1929_v33  ;;  %v1209_v35 = vcombine.low %v882_v11, %v1198_v29  ;;  %v1210_v36 = vcombine.high %v882_v11, %v1198_v29 }
 0x3a3   : > { %v1285_v44 = vrot.slane %v1277_v31, %v3705_v38  ;;  %v1292_v45 = vrot.slane %v1278_v32, %v3705_v38 }
 0x3a4   : > { %v1206_v37 = vpop.permute.xlu0 %1205  ;;  %v1217_v52 = vrot.slane %v1209_v35, %v3705_v38  ;;  %v1224_v53 = vrot.slane %v1210_v36, %v3705_v38 }
 0x3a5   : > { %v1204_v39 = vpop.permute.xlu1 %1203  ;;  %v1293_v40 = vcombine.low %v1194_v24, %v1206_v37  ;;  %v1294_v41 = vcombine.high %v1194_v24, %v1206_v37 }
 0x3a6   : > { %v1225_v42 = vcombine.low %v1192_v23, %v1204_v39  ;;  %v1226_v43 = vcombine.high %v1192_v23, %v1204_v39 }
 0x3a7   : > { %v3805_v46 = vpop.eup %3072  ;;  %v1301_v47 = vrot.slane %v1293_v40, %v3705_v38  ;;  %v1308_v48 = vrot.slane %v1294_v41, %v3705_v38 }
 0x3a8   : > { %v1233_v50 = vrot.slane %v1225_v42, %v3705_v38  ;;  %v1240_v51 = vrot.slane %v1226_v43, %v3705_v38  ;;  %v1932_v54 = vsel %vm1901_vm3, %v3805_v46, 0.0  ;;  %v3831_v31 = vpop.eup %3074 }
 0x3a9   : > { %v1309_v55 = vcombine.low %v1285_v44, %v1301_v47  ;;  %v1310_v56 = vcombine.high %v1285_v44, %v1301_v47  ;;  %v1325_v57 = vcombine.low %v1292_v45, %v1308_v48  ;;  %v1326_v58 = vcombine.high %v1292_v45, %v1308_v48  ;;  %1933 = vadd.xlane.f32.xlu0 %v1932_v54 }
 0x3aa   : > { %v1241_v59 = vcombine.low %v1217_v52, %v1233_v50  ;;  %v1242_v60 = vcombine.high %v1217_v52, %v1233_v50  ;;  %v1257_v61 = vcombine.low %v1224_v53, %v1240_v51  ;;  %v1258_v62 = vcombine.high %v1224_v53, %v1240_v51 }
 0x3ab   : > { %v1317_v63 = vrot.slane %v1309_v55, %v3711_v49  ;;  %v1324_v1 = vrot.slane %v1310_v56, %v3711_v49  ;;  %v1333_v2 = vrot.slane %v1325_v57, %v3711_v49  ;;  %v1340_v3 = vrot.slane %v1326_v58, %v3711_v49 }
 0x3ac   : > { %v1249_v4 = vrot.slane %v1241_v59, %v3711_v49  ;;  %v1256_v19 = vrot.slane %v1242_v60, %v3711_v49  ;;  %v1265_v5 = vrot.slane %v1257_v61, %v3711_v49  ;;  %v1272_v7 = vrot.slane %v1258_v62, %v3711_v49 }
 0x3ad   : > { %v1413_v8 = vcombine.low %v1317_v63, %v1324_v1  ;;  %v2756_v9 = vcombine.high %v1317_v63, %v1324_v1  ;;  %v1429_v10 = vcombine.low %v1333_v2, %v1340_v3  ;;  %v2757_v11 = vcombine.high %v1333_v2, %v1340_v3 }
 0x3ae   : > { %v1345_v12 = vcombine.low %v1249_v4, %v1256_v19  ;;  %v2754_v13 = vcombine.high %v1249_v4, %v1256_v19  ;;  %v1361_v14 = vcombine.low %v1265_v5, %v1272_v7  ;;  %v2755_v15 = vcombine.high %v1265_v5, %v1272_v7 }
 0x3af   : > { %v1420_v16 = vrot.slane %v1413_v8, %v3705_v38  ;;  %v1428_v17 = vrot.slane %v2756_v9, %v3705_v38  ;;  %v1436_v18 = vrot.slane %v1429_v10, %v3705_v38  ;;  %v1444_v20 = vrot.slane %v2757_v11, %v3705_v38 }
 0x3b0   : > { %v1352_v21 = vrot.slane %v1345_v12, %v3705_v38  ;;  %v1360_v22 = vrot.slane %v2754_v13, %v3705_v38  ;;  %v1368_v23 = vrot.slane %v1361_v14, %v3705_v38  ;;  %v1376_v24 = vrot.slane %v2755_v15, %v3705_v38 }
 0x3b1   : > { %v1445_v27 = vcombine.low %v1420_v16, %v1428_v17  ;;  %v1446_v28 = vcombine.high %v1420_v16, %v1428_v17  ;;  %v1461_v29 = vcombine.low %v1436_v18, %v1444_v20  ;;  %v1462_v30 = vcombine.high %v1436_v18, %v1444_v20 }
 0x3b2   : > { %v1377_v32 = vcombine.low %v1352_v21, %v1360_v22  ;;  %v1378_v33 = vcombine.high %v1352_v21, %v1360_v22  ;;  %v1393_v34 = vcombine.low %v1368_v23, %v1376_v24  ;;  %v1394_v35 = vcombine.high %v1368_v23, %v1376_v24 }
 0x3b3   : > { %v1453_v36 = vrot.slane %v1445_v27, %v3711_v49  ;;  %v1460_v37 = vrot.slane %v1446_v28, %v3711_v49  ;;  %v1469_v39 = vrot.slane %v1461_v29, %v3711_v49  ;;  %v1476_v40 = vrot.slane %v1462_v30, %v3711_v49 }
 0x3b4   : > { %v1385_v41 = vrot.slane %v1377_v32, %v3711_v49  ;;  %v1392_v42 = vrot.slane %v1378_v33, %v3711_v49  ;;  %v1401_v43 = vrot.slane %v1393_v34, %v3711_v49  ;;  %v1408_v44 = vrot.slane %v1394_v35, %v3711_v49 }
 0x3b5   : > { %v1477_v45 = vcombine.low %v1453_v36, %v1469_v39  ;;  %v1478_v47 = vcombine.high %v1453_v36, %v1469_v39  ;;  %v1479_v48 = vcombine.low %v1460_v37, %v1476_v40  ;;  %v1480_v50 = vcombine.high %v1460_v37, %v1476_v40 }
 0x3b6   : > { %v1409_v51 = vcombine.low %v1385_v41, %v1401_v43  ;;  %v1410_v52 = vcombine.high %v1385_v41, %v1401_v43  ;;  %v1411_v53 = vcombine.low %v1392_v42, %v1408_v44  ;;  %v1412_v54 = vcombine.high %v1392_v42, %v1408_v44  ;;  %v3060_v42 = vld [vmem:[%s4001_s9] sm:$0xff]  }
 0x3b7   : > { %v1935_v55 = vsel %vm1901_vm3, %v3831_v31, 0.0 }
 0x3b8   : > { %v1481_v56 = vpack.c.bf16 %v1477_v45, %v1409_v51  ;;  %v1482_v57 = vpack.c.bf16 %v1478_v47, %v1410_v52  ;;  %v1483_v58 = vpack.c.bf16 %v1479_v48, %v1411_v53  ;;  %v1484_v59 = vpack.c.bf16 %v1480_v50, %v1412_v54  ;;  %1936 = vadd.xlane.f32.xlu1 %v1935_v55  ;;  %v3061_v53 = vld [vmem:[%s4001_s9 + $0x8] sm:$0xff]  }
 0x3ba   : > { %1485 = vst.msk [vmem:[#allocation3] sm:$0xff] %vm1184_vm2, %v1481_v56  ;;  %1486 = vst.msk [vmem:[#allocation3 + $0x8] sm:$0xff] %vm1184_vm2, %v1482_v57 }
 0x3bb   : > { %1487 = vst.msk [vmem:[#allocation3 + $0x10] sm:$0xff] %vm1184_vm2, %v1483_v58  ;;  %1488 = vst.msk [vmem:[#allocation3 + $0x18] sm:$0xff] %vm1184_vm2, %v1484_v59 }
 0x3c1   : > { %v1712_v60 = vld [vmem:[#allocation3] sm:$0xff]  ;;  %v1713_v61 = vld [vmem:[#allocation3 + $0x8] sm:$0xff] }
 0x3c2   : > { %2883 = vmatpush3.bf16.msra.mxu1 %v1712_v60  ;;  %2889 = vmatpush3.bf16.msra.mxu0 %v1713_v61  ;;  %v1714_v8 = vld [vmem:[#allocation3 + $0x10] sm:$0xff]  ;;  %v1715_v9 = vld [vmem:[#allocation3 + $0x18] sm:$0xff] }
 0x3c3   : > { %2894 = vmatprep.subr.bf16.mxu1 %v3327_v0  ;;  %2900 = vmatprep.subr.bf16.mxu0 %v3327_v0 }
 0x42e   : > { %v1928_v62 = vpop.xlane.xlu1 %1927 }
 0x42f   : > { %3076 = vrcp.f32 %v1928_v62  ;;  %v1931_v63 = vpop.xlane.xlu0 %1930 }
 0x430   : > { %3078 = vrcp.f32 %v1931_v63 }
 0x436   : > { %v1934_v1 = vpop.xlane.xlu0 %1933 }
 0x437   : > { %3080 = vrcp.f32 %v1934_v1 }
 0x439   : > { %v3077_v2 = vpop.eup %3076 }
 0x43a   : > { %v1942_v3 = vmul.f32 %v3077_v2, %v3795_v25  ;;  %v3079_v4 = vpop.eup %3078 }
 0x43b   : > { %v1943_v19 = vmul.f32 %v3079_v4, %v3797_v26 }
 0x43c   : > { %v1946_v5 = vpack.c.bf16 %v1942_v3, %v1942_v3 }
 0x43d   : > { %v1947_v7 = vpack.c.bf16 %v1943_v19, %v1943_v19 }
 0x43e   : > { %2885 = vmatmul.mubr.msk.bf16.vlgmr.msra.gmra.mrb[12].mxu1 %vm1901_vm3, %v1946_v5 }
 0x43f   : > { %2895 = vmatpush3.bf16.msra.mxu1 %v1714_v8  ;;  %2896 = vmatprep.mubr.msk.bf16.mxu1 %vm3328_vm0, %v3327_v0 }
 0x440   : > { %2891 = vmatmul.mubr.msk.bf16.vlgmr.msra.gmra.mrb[16].mxu0 %vm1901_vm3, %v1947_v7  ;;  %2906 = vmatprep.subr.bf16.mxu1 %v3327_v0 }
 0x441   : > { %v3081_v10 = vpop.eup %3080  ;;  %2901 = vmatpush3.bf16.msra.mxu0 %v1715_v9  ;;  %2902 = vmatprep.mubr.msk.bf16.mxu0 %vm3328_vm0, %v3327_v0 }
 0x442   : > { %v1944_v25 = vmul.f32 %v3081_v10, %v3805_v46  ;;  %2914 = vmatprep.subr.bf16.mxu0 %v3327_v0 }
 0x444   : > { %v1948_v26 = vpack.c.bf16 %v1944_v25, %v1944_v25 }
 0x445   : > { %v1937_v11 = vpop.xlane.xlu1 %1936 }
 0x446   : > { %3082 = vrcp.f32 %v1937_v11  ;;  %2897 = vmatmul.mubr.msk.bf16.vlgmr.msra.gmra.mrb[16].mxu1 %vm1901_vm3, %v1948_v26 }
 0x447   : > { %2910 = vmatprep.mubr.msk.bf16.mxu1 %vm3328_vm0, %v3327_v0  ;;  %2907 = vmatpush3.bf16.msra.mxu1 %v3060_v42 }
 0x448   : > { %2908 = vmatprep.subr.bf16.mxu1 %v3327_v0 }
 0x44b   : > { %2909 = vmatpush3.bf16.msra.mxu1 %v3061_v53 }
 0x44c   : > { %2922 = vmatprep.subr.bf16.mxu1 %v3327_v0 }
 0x450   : > { %v3083_v12 = vpop.eup %3082 }
 0x451   : > { %v1945_v13 = vmul.f32 %v3083_v12, %v3831_v31 }
 0x453   : > { %v1949_v14 = vpack.c.bf16 %v1945_v13, %v1945_v13 }
 0x455   : > { %2903 = vmatmul.mubr.msk.bf16.vlgmr.msra.gmra.mrb[20].mxu0 %vm1901_vm3, %v1949_v14  ;;  %v2774_v14 = vld [vmem:[%s4002_s10] ss:$0 sm:$0xff] }
 0x456   : > { %2918 = vmatprep.mubr.msk.bf16.mxu0 %vm3328_vm0, %v3327_v0 }
 0x511   : > { %v1987_v46 = vpop.f32.mrb[12].mxu1 }
 0x512   : > { %v2886_v15 = vpop.f32.mrb[13].mxu1 }
 0x513   : > { %v2030_v16 = vpop.f32.mrb[16].mxu0  ;;  %v1990_v17 = vpop.f32.mrb[14].mxu1 }
 0x514   : > { %v2892_v18 = vpop.f32.mrb[17].mxu0  ;;  %v2887_v20 = vpop.f32.mrb[15].mxu1 }
 0x515   : > { %v2033_v21 = vpop.f32.mrb[18].mxu0 }
 0x516   : > { %v2893_v22 = vpop.f32.mrb[19].mxu0 }
 0x519   : > { %v2073_v23 = vpop.f32.mrb[16].mxu1 }
 0x51a   : > { %v2122_v24 = vcombine.low %v1987_v46, %v2073_v23  ;;  %v2123_v27 = vcombine.high %v1987_v46, %v2073_v23  ;;  %v2898_v28 = vpop.f32.mrb[17].mxu1 }
 0x51b   : > { %v2076_v29 = vpop.f32.mrb[18].mxu1  ;;  %v3064_v28 = vld [vmem:[%s4005_s13] sm:$0xff]  }
 0x51c   : > { %v2899_v30 = vpop.f32.mrb[19].mxu1  ;;  %v2130_v32 = vrot.slane %v2122_v24, %v3705_v38  ;;  %v2137_v33 = vrot.slane %v2123_v27, %v3705_v38  ;;  %v3062_v24 = vld [vmem:[#allocation12] sm:$0xff]   ;;  %v3063_v27 = vld [vmem:[#allocation12 + $0x8] sm:$0xff]  }
 0x51d   : > { %2915 = vmatpush3.bf16.msra.mxu0 %v3062_v24 }
 0x51e   : > { %2916 = vmatprep.subr.bf16.mxu0 %v3327_v0 }
 0x521   : > { %2917 = vmatpush3.bf16.msra.mxu0 %v3063_v27 }
 0x528   : > { %v2116_v31 = vpop.f32.mrb[20].mxu0 }
 0x529   : > { %v2138_v34 = vcombine.low %v2030_v16, %v2116_v31  ;;  %v2139_v35 = vcombine.high %v2030_v16, %v2116_v31  ;;  %v2904_v36 = vpop.f32.mrb[21].mxu0 }
 0x52a   : > { %v2119_v37 = vpop.f32.mrb[22].mxu0 }
 0x52b   : > { %v2146_v39 = vrot.slane %v2138_v34, %v3705_v38  ;;  %v2153_v40 = vrot.slane %v2139_v35, %v3705_v38  ;;  %v2905_v41 = vpop.f32.mrb[23].mxu0 }
 0x52c   : > { %v2779_v41 = vld [vmem:[%s4008_s16] ss:$0 sm:$0xff] }
 0x52d   : > { %v2154_v43 = vcombine.low %v2130_v32, %v2146_v39  ;;  %v2155_v44 = vcombine.high %v2130_v32, %v2146_v39  ;;  %v2170_v45 = vcombine.low %v2137_v33, %v2153_v40  ;;  %v2171_v47 = vcombine.high %v2137_v33, %v2153_v40  ;;  %v2778_v39 = vld [vmem:[%s4007_s15] ss:$0 sm:$0xff] }
 0x52f   : > { %v2162_v48 = vrot.slane %v2154_v43, %v3711_v49  ;;  %v2169_v50 = vrot.slane %v2155_v44, %v3711_v49  ;;  %v2178_v51 = vrot.slane %v2170_v45, %v3711_v49  ;;  %v2185_v52 = vrot.slane %v2171_v47, %v3711_v49  ;;  %v3066_v45 = vld [vmem:[%s4005_s13 + $0x10] sm:$0xff]   ;;  %v3067_v47 = vld [vmem:[%s4005_s13 + $0x18] sm:$0xff]  }
 0x531   : > { %v2190_v54 = vcombine.low %v2162_v48, %v2169_v50  ;;  %v2772_v55 = vcombine.high %v2162_v48, %v2169_v50  ;;  %v2206_v56 = vcombine.low %v2178_v51, %v2185_v52  ;;  %v2773_v57 = vcombine.high %v2178_v51, %v2185_v52  ;;  %v2780_v48 = vld [vmem:[%s4004_s12] ss:$0 sm:$0xff] }
 0x533   : > { %v2197_v58 = vrot.slane %v2190_v54, %v3705_v38  ;;  %v2205_v59 = vrot.slane %v2772_v55, %v3705_v38  ;;  %v2213_v60 = vrot.slane %v2206_v56, %v3705_v38  ;;  %v2221_v61 = vrot.slane %v2773_v57, %v3705_v38 }
 0x535   : > { %v2223_v62 = vcombine.high %v2197_v58, %v2205_v59  ;;  %v2239_v63 = vcombine.high %v2213_v60, %v2221_v61  ;;  %v2222_v1 = vcombine.low %v2197_v58, %v2205_v59  ;;  %v2238_v2 = vcombine.low %v2213_v60, %v2221_v61 }
 0x537   : > { %v2237_v3 = vrot.slane %v2223_v62, %v3711_v49  ;;  %v2253_v4 = vrot.slane %v2239_v63, %v3711_v49  ;;  %v2230_v19 = vrot.slane %v2222_v1, %v3711_v49  ;;  %v2246_v5 = vrot.slane %v2238_v2, %v3711_v49 }
 0x539   : > { %v2256_v7 = vcombine.low %v2237_v3, %v2253_v4  ;;  %v2255_v8 = vcombine.high %v2230_v19, %v2246_v5  ;;  %v2257_v9 = vcombine.high %v2237_v3, %v2253_v4  ;;  %v2254_v10 = vcombine.low %v2230_v19, %v2246_v5 }
 0x53b   : > { %2263 = vrot.lane.b32.xlu1 %v2256_v7, %s3334_s3  ;;  %2259 = vrot.lane.b32.xlu0 %v2255_v8, %s3335_s20  ;;  %s4071_s20 = sld [smem:[#allocation35_spill]] }
 0x53f   : > { %2267 = vrot.lane.b32.xlu1 %v2257_v9, %s3336_s25 }
 0x541   : > { %s4072_s25 = smov %s4071_s20 }
 0x5ad   : > { %v2264_v38 = vpop.permute.xlu1 %2263  ;;  %v2260_v25 = vpop.permute.xlu0 %2259 }
 0x5ae   : > { %v2270_v26 = vsel %vm1184_vm2, %v2254_v10, %v2260_v25  ;;  %v2790_v25 = vld [vmem:[%s4069_s14] ss:$0 sm:$0xff] }
 0x5af   : > { %v2271_v12 = vsel %vm1901_vm3, %v2270_v26, %v2264_v38 }
 0x5b1   : > { %v2268_v11 = vpop.permute.xlu1 %2267 }
 0x5b2   : > { %v2273_v13 = vsel %vm2272_vm4, %v2271_v12, %v2268_v11  ;;  %v2791_v11 = vld [vmem:[%s4070_s23] ss:$0 sm:$0xff] }
 0x5b3   : > { %v2274_v49 = vpack.c.bf16 %v2273_v13, %v2273_v13 }
 0x5b5   : > { %2911 = vmatmul.mubr.msk.bf16.vlgmr.msra.gmra.mrb[20].mxu1 %vm771_vm1, %v2274_v49 }
 0x5b6   : > { %2930 = vmatprep.mubr.msk.bf16.mxu1 %vm3328_vm0, %v3327_v0  ;;  %2923 = vmatpush3.bf16.msra.mxu1 %v3064_v28 }
 0x5b7   : > { %2924 = vmatprep.subr.bf16.mxu1 %v3327_v0 }
 0x688   : > { %v2335_v46 = vpop.f32.mrb[20].mxu1 }
 0x689   : > { %v2336_v15 = vadd.f32 %v2774_v14, %v2335_v46  ;;  %v2912_v16 = vpop.f32.mrb[21].mxu1 }
 0x68a   : > { %v2338_v17 = vpop.f32.mrb[22].mxu1 }
 0x68b   : > { %v2341_v18 = vadd.f32 %v2336_v15, %v3659_v6  ;;  %v2913_v20 = vpop.f32.mrb[23].mxu1  ;;  %v3065_v6 = vld [vmem:[%s4005_s13 + $0x8] sm:$0xff]  }
 0x68c   : > { %2925 = vmatpush3.bf16.msra.mxu1 %v3065_v6 }
 0x68d   : > { %v2344_v21 = vsel %vm771_vm1, %v2341_v18, 0.0  ;;  %v2349_v22 = vmul.f32 %v2341_v18, %v2341_v18  ;;  %2926 = vmatprep.subr.bf16.mxu1 %v3327_v0 }
 0x68e   : > { %2345 = vadd.xlane.f32.xlu0 %v2344_v21 }
 0x68f   : > { %v2350_v23 = vsel %vm771_vm1, %v2349_v22, 0.0 }
 0x690   : > { %2351 = vadd.xlane.f32.xlu1 %v2350_v23  ;;  %2927 = vmatpush3.bf16.msra.mxu1 %v3066_v45 }
 0x691   : > { %2928 = vmatprep.subr.bf16.mxu1 %v3327_v0  ;;  %v2784_v0 = vld [vmem:[%s4066_s28] ss:$0 sm:$0xff]  ;;  %s3944_s28 = scalar_lea.hbm %s4071_s20, %s2793_s29 }
 0x694   : > { %2929 = vmatpush3.bf16.msra.mxu1 %v3067_v47 }
 0x71b   : > { %v2346_v29 = vpop.xlane.xlu0 %2345 }
 0x71c   : > { %v2348_v30 = vmul.f32 0.03125, %v2346_v29 }
 0x71d   : > { %v2352_v31 = vpop.xlane.xlu1 %2351 }
 0x71e   : > { %v2354_v32 = vmul.f32 %v2348_v30, %v2348_v30  ;;  %v2353_v33 = vmul.f32 0.03125, %v2352_v31  ;;  %v2356_v36 = vsub.f32 %v2341_v18, %v2348_v30 }
 0x720   : > { %v2355_v34 = vsub.f32 %v2353_v33, %v2354_v32 }
 0x722   : > { %v2357_v35 = vadd.f32 1e-05, %v2355_v34 }
 0x724   : > { %3084 = vrsqrt.f32 %v2357_v35 }
 0x72e   : > { %v3085_v37 = vpop.eup %3084 }
 0x72f   : > { %v2359_v40 = vmul.f32 %v3085_v37, %v2356_v36 }
 0x731   : > { %v2366_v42 = vmul.f32 %v2778_v39, %v2359_v40 }
 0x733   : > { %v2373_v43 = vadd.f32 %v2779_v41, %v2366_v42 }
 0x735   : > { %v2374_v44 = vpack.c.bf16 %v2373_v43, %v2373_v43 }
 0x737   : > { %2919 = vmatmul.mubr.msk.bf16.vlgmr.msra.gmra.mrb[24].mxu0 %vm771_vm1, %v2374_v44 }
 0x80a   : > { %v2435_v50 = vpop.f32.mrb[24].mxu0 }
 0x80b   : > { %v2436_v51 = vadd.f32 %v2780_v48, %v2435_v50  ;;  %v2920_v52 = vpop.f32.mrb[25].mxu0 }
 0x80c   : > { %v2438_v53 = vpop.f32.mrb[26].mxu0 }
 0x80d   : > { %v2441_v54 = vmax.f32 %v2436_v51, 0.0  ;;  %v2921_v55 = vpop.f32.mrb[27].mxu0 }
 0x80f   : > { %v2442_v56 = vpack.c.bf16 %v2441_v54, %v2441_v54 }
 0x811   : > { %2931 = vmatmul.mubr.msk.bf16.vlgmr.msra.gmra.mrb[24].mxu1 %vm2482_vm5, %v2442_v56 }
 0x8e4   : > { %v2520_v57 = vpop.f32.mrb[24].mxu1 }
 0x8e5   : > { %v2521_v58 = vadd.f32 %v2784_v0, %v2520_v57  ;;  %v2932_v59 = vpop.f32.mrb[25].mxu1 }
 0x8e6   : > { %v2523_v60 = vpop.f32.mrb[26].mxu1 }
 0x8e7   : > { %v2526_v61 = vadd.f32 %v2521_v58, %v2373_v43  ;;  %v2933_v62 = vpop.f32.mrb[27].mxu1 }
 0x8e9   : > { %v2529_v63 = vsel %vm771_vm1, %v2526_v61, 0.0  ;;  %v2533_v1 = vmul.f32 %v2526_v61, %v2526_v61 }
 0x8ea   : > { %2530 = vadd.xlane.f32.xlu0 %v2529_v63 }
 0x8eb   : > { %v2534_v2 = vsel %vm771_vm1, %v2533_v1, 0.0 }
 0x8ee   : > { %2535 = vadd.xlane.f32.xlu0 %v2534_v2 }
 0x977   : > { %v2531_v3 = vpop.xlane.xlu0 %2530 }
 0x978   : > { %v2532_v4 = vmul.f32 0.03125, %v2531_v3 }
 0x97a   : > { %v2538_v5 = vmul.f32 %v2532_v4, %v2532_v4  ;;  %v2540_v10 = vsub.f32 %v2526_v61, %v2532_v4 }
 0x97b   : > { %v2536_v19 = vpop.xlane.xlu0 %2535 }
 0x97c   : > { %v2537_v7 = vmul.f32 0.03125, %v2536_v19 }
 0x97e   : > { %v2539_v8 = vsub.f32 %v2537_v7, %v2538_v5 }
 0x980   : > { %v2541_v9 = vadd.f32 1e-05, %v2539_v8 }
 0x982   : > { %3086 = vrsqrt.f32 %v2541_v9 }
 0x98c   : > { %v3087_v38 = vpop.eup %3086 }
 0x98d   : > { %v2543_v26 = vmul.f32 %v3087_v38, %v2540_v10 }
 0x98f   : > { %v2550_v12 = vmul.f32 %v2790_v25, %v2543_v26 }
 0x991   : > { %v2557_v13 = vadd.f32 %v2791_v11, %v2550_v12 }
 0x993   : > { %2558 = vst.msk [vmem:[%s716_s5] sm:$0xff] %vm771_vm1, %v2557_v13 }
 0x994   : > { %3241 = shalt.err (!%p3238_p6)
}
 0x995   : > { %s3242_s17 = scalar_lea.hbm %s3944_s28, 128  ;;  %s3246_s0 = scalar_lea.hbm %s4072_s25, 256 }
 0x996   : > { %p3243_p7 = scmp.ne.s32.totalorder %s3944_s28, %s3242_s17  ;;  %p3247_p4 = scmp.lt.u32.totalorder %s3944_s28, %s4072_s25 }
 0x997   : > { %p3248_p1 = scmp.lt.u32.totalorder %s3246_s0, %s3242_s17  ;;  %p3250_p8 = scmp.lt.u32.totalorder %s3242_s17, %s3944_s28 }
 0x998   : > { %p3244_p9 = pnand %p3243_p7, %p4073_p10 }
 0x999   : > { %p3249_p13 = por %p3248_p1, %p3247_p4 }
 0x99a   : > { %p3245_p12 = pneg %p3244_p9 }
 0x99b   : > { %p3251_p11 = por %p3250_p8, %p3249_p13 }
 0x99d   : > { %p3252_p0 = pnand %p3251_p11, %p3245_p12 }
 0x99f   : > { %3255 = shalt.err (!%p3252_p0)
}
 0x9a0   : > { %2954 = dma.vmem_to_hbm [thread:$0]  (%p4073_p10), %s3946_s22, 128, %s3944_s28, %s2560_s26  }
 0x9a1 PF: > { %s4074_s5 = sld [smem:[#allocation22_spill]]  ;;  %s4075_s30 = sld [smem:[#allocation18_spill]] }
 0x9a2   : > { %s4076_s3 = sld [smem:[#allocation25_spill]] }
 0x9a7   : > { %p2986_p2 = scmp.ge.s32.totalorder %s4074_s5, 2  ;;  %s2586_s20 = sand.u32 1, %s4075_s30  }
 0x9a8   : > { %p4077_p3 = scmp.ne.s32.totalorder %s4076_s3, 0  ;;  %s2587_s2 = scalar_lea.sflag [#allocation6], %s2586_s20 }
 0x9aa   : > { %p2973_p5 = pnand %p2986_p2, %p4077_p3 }
 0x9ac   : > { %3293 = dma.done.wait (!%p2973_p5), %s2587_s2, 128  }
 0x9ad   : > { %3295 = vsyncadd (!%p2973_p5), %s2587_s2, 4294967168  ;;  %s35_s22 = sadd.s32 1, %s4074_s5   ;;  %s4078_s0 = sld [smem:[#allocation19_spill]] }
 0x9ae   : > { %p32_p6 = scmp.ge.s32.totalorder %s35_s22, 4   ;;  %s4079_s30 = sld [smem:[#allocation20_spill]] }
 0x9af   : > { %s4080_s20 = sld [smem:[#allocation26_spill]]  ;;  %s4081_s21 = sld [smem:[#allocation21_spill]] }
 0x9b0   : > { %s4082_s1 = sld [smem:[#allocation23_spill]]  ;;  %34 = sbr.rel (!%p32_p6) target bundleno = 17 (0x11), region = 162 }
 0x9b7   :  { %2592 = vsyncpa [#allocation5], 1 }
 0x9b8   :  { %2594 = vsyncpa [#allocation5 + $0x1], 1 }
 0x9b9   :  { %2595 = vsyncpa [#allocation8], 1 }
 0x9ba   :  { %2596 = vsyncpa [#allocation11], 1 }
 0x9bb   :  { %2597 = vsyncpa [#allocation6], 1 }
 0x9bc   :  { %2599 = vsyncpa [#allocation6 + $0x1], 1 }

</bundles_post_ra>
